<compile_context>
chip_gen: v7x
topology: tpu7x:2x2x1
jax: 0.10.0
libtpu: 0.0.40
codegen_flags: <defaults>
</compile_context>

<pallas_src>
import functools

import jax
import jax.numpy as jnp
from jax import lax
from jax.experimental import pallas as pl
from jax.experimental.pallas import tpu as pltpu


def _round_up(x, m):
    return ((x + m - 1) // m) * m


# ---------------------------------------------------------------------------
# Fused kernel: conv3x3 -> ReLU -> conv3x3 -> activation for one row tile
# ---------------------------------------------------------------------------
def _fused_cnn_kernel(x_ref, w1_ref, b1_ref, w2_ref, b2_ref, o_ref,
                      *, tile_h, n_row_tiles, img_h, img_w, c_out, activation):
    T, H, W = tile_h, img_h, img_w
    cin_p = x_ref.shape[-1]
    hid_p = w1_ref.shape[-1]
    cout_p = w2_ref.shape[-1]

    # Global index of the first output row handled by this grid step.
    r0 = (pl.program_id(0) % n_row_tiles) * T

    xs = x_ref[0]                                   # (T+4, W+2, cin_p) bf16

    # -------- conv1 (3x3, pad=1): ONE matmul with K = 9*cin_p --------------
    # Tap order (kh, kw, cin) matches the flattened weight layout.
    taps1 = [xs[kh:kh + T + 2, kw:kw + W, :].reshape((T + 2) * W, cin_p)
             for kh in range(3) for kw in range(3)]
    p1 = jnp.concatenate(taps1, axis=-1)            # ((T+2)*W, 9*cin_p)
    acc1 = jnp.dot(p1, w1_ref[...], preferred_element_type=jnp.float32)
    h1 = jnp.maximum(acc1 + b1_ref[...], 0.0).reshape(T + 2, W, hid_p)

    # h1 rows that fall outside the image must be exactly zero (that is what
    # conv2's zero padding sees), NOT relu(b1) computed from zero-padded x.
    gi = r0 - 1 + lax.broadcasted_iota(jnp.int32, (T + 2, 1, 1), 0)
    h1 = jnp.where(jnp.logical_and(gi >= 0, gi < H), h1, 0.0)
    h1 = h1.astype(jnp.bfloat16)                    # bf16 staging (half bytes)

    # Zero column halo for conv2's pad=1.
    zcol = jnp.zeros((T + 2, 1, hid_p), jnp.bfloat16)
    h1p = jnp.concatenate([zcol, h1, zcol], axis=1)  # (T+2, W+2, hid_p)

    # -------- conv2 (3x3, pad=1): ONE matmul with K = 9*hid_p --------------
    taps2 = [h1p[kh:kh + T, kw:kw + W, :].reshape(T * W, hid_p)
             for kh in range(3) for kw in range(3)]
    p2 = jnp.concatenate(taps2, axis=-1)            # (T*W, 9*hid_p), 128-lane
    logits = jnp.dot(p2, w2_ref[...], preferred_element_type=jnp.float32)
    logits = logits + b2_ref[...]

    # -------- module activation --------------------------------------------
    if activation == "softmax":
        # Padded output lanes must not contribute to the softmax denominator.
        col = lax.broadcasted_iota(jnp.int32, (1, cout_p), 1)
        logits = jnp.where(col < c_out, logits, -1e30)
        m = jnp.max(logits, axis=-1, keepdims=True)
        e = jnp.exp(logits - m)
        s = jnp.sum(e, axis=-1, keepdims=True)
        out = e * pl.reciprocal(s, approx=True)     # EUP reciprocal
    elif activation == "relu":
        out = jnp.maximum(logits, 0.0)
    else:                                           # identity
        out = logits

    o_ref[0] = out.reshape(T, W, cout_p).astype(o_ref.dtype)


# ---------------------------------------------------------------------------
# Wrapper: layout / padding / tiling + pallas_call
# ---------------------------------------------------------------------------
def simple_cnn_forward(x_nchw, params, activation="softmax", tile_h=None):
    w1, b1, w2, b2 = params        # w1:(9*Cin,HID) b1:(1,HID) w2:(9*HID,CO) b2:(1,CO)
    N, C, H, W = x_nchw.shape
    hidden = w1.shape[1]
    c_out = w2.shape[1]

    cin_p = _round_up(C, 8)          # conv1 K sublane alignment (per tap)
    hid_p = _round_up(hidden, 128)   # lane-dense h1 / conv2 K (per tap)
    cout_p = _round_up(c_out, 128)   # lane-dense output stores (no vst.msk)

    # Row-tile: large enough to amortize per-step overhead, but bound each
    # conv's matmul M ((T+2)*W rows) to ~512 so accumulator / im2col temps
    # stay a few hundred KiB (no spills; fits every generation's VMEM budget).
    if tile_h is None:
        tile_h = max(8, 512 // max(W, 1))
    T = max(1, min(tile_h, H))
    while H % T:                     # keep the BlockSpec exact
        T -= 1
    nT = H // T

    # Weights -> (9*Kin, Kout) bf16, tap-major (kh, kw, cin); zero-padded
    # rows/lanes contribute exactly 0 to the matmuls.
    w1_p = jnp.zeros((9, cin_p, hid_p), jnp.bfloat16)
    w1_p = w1_p.at[:, :C, :hidden].set(
        w1.reshape(9, C, hidden).astype(jnp.bfloat16))
    w1_p = w1_p.reshape(9 * cin_p, hid_p)
    w2_p = jnp.zeros((9, hid_p, cout_p), jnp.bfloat16)
    w2_p = w2_p.at[:, :hidden, :c_out].set(
        w2.reshape(9, hidden, c_out).astype(jnp.bfloat16))
    w2_p = w2_p.reshape(9 * hid_p, cout_p)
    b1_p = jnp.zeros((1, hid_p), jnp.float32).at[:, :hidden].set(
        b1.reshape(1, hidden).astype(jnp.float32))
    b2_p = jnp.zeros((1, cout_p), jnp.float32).at[:, :c_out].set(
        b2.reshape(1, c_out).astype(jnp.float32))

    # Activations: NCHW -> NHWC, bf16, channel pad, 2-row / 1-col spatial halo.
    x = jnp.transpose(x_nchw, (0, 2, 3, 1)).astype(jnp.bfloat16)
    x = jnp.pad(x, ((0, 0), (2, 2), (1, 1), (0, cin_p - C)))

    if nT == 1:
        slabs = x                                    # no halo duplication
    else:
        # TODO(synk): replace with element-offset index_maps or manual DMA of
        # overlapping windows so halo rows are fetched by DMA, not duplicated.
        slabs = jnp.stack([x[:, t * T: t * T + T + 4] for t in range(nT)],
                          axis=1)
        slabs = slabs.reshape(N * nT, T + 4, W + 2, cin_p)

    kernel = functools.partial(
        _fused_cnn_kernel, tile_h=T, n_row_tiles=nT, img_h=H, img_w=W,
        c_out=c_out, activation=activation)

    out = pl.pallas_call(
        kernel,
        out_shape=jax.ShapeDtypeStruct((N * nT, T, W, cout_p), jnp.bfloat16),
        grid=(N * nT,),
        in_specs=[
            pl.BlockSpec((1, T + 4, W + 2, cin_p), lambda i: (i, 0, 0, 0)),
            pl.BlockSpec((9 * cin_p, hid_p), lambda i: (0, 0)),   # resident
            pl.BlockSpec((1, hid_p), lambda i: (0, 0)),           # resident
            pl.BlockSpec((9 * hid_p, cout_p), lambda i: (0, 0)),  # resident
            pl.BlockSpec((1, cout_p), lambda i: (0, 0)),          # resident
        ],
        out_specs=pl.BlockSpec((1, T, W, cout_p), lambda i: (i, 0, 0, 0)),
        compiler_params=pltpu.CompilerParams(
            dimension_semantics=("parallel",)),      # megacore-shardable loop
    )(slabs, w1_p, b1_p, w2_p, b2_p)

    # Valid-channel slice + NHWC->NCHW + f32 upcast fuse into one XLA pass.
    out = out.reshape(N, H, W, cout_p)[..., :c_out].astype(jnp.float32)
    return jnp.transpose(out, (0, 3, 1, 2))


# ---------------------------------------------------------------------------
# Pure-JAX f32 reference (correctness check)
# ---------------------------------------------------------------------------
def _reference_forward(x_nchw, params, activation="softmax"):
    w1, b1, w2, b2 = params
    x = jnp.transpose(x_nchw, (0, 2, 3, 1)).astype(jnp.float32)
    cin = x.shape[-1]
    hid = w1.shape[1]
    k1 = w1.reshape(3, 3, cin, hid)
    k2 = w2.reshape(3, 3, hid, w2.shape[1])
    dn = ("NHWC", "HWIO", "NHWC")
    y = lax.conv_general_dilated(x, k1, (1, 1), "SAME", dimension_numbers=dn)
    y = jnp.maximum(y + b1.reshape(1, 1, 1, -1), 0.0)
    y = lax.conv_general_dilated(y, k2, (1, 1), "SAME", dimension_numbers=dn)
    y = y + b2.reshape(1, 1, 1, -1)
    if activation == "softmax":
        y = jax.nn.softmax(y, axis=-1)            # dim=1 in NCHW == last in NHWC
    elif activation == "relu":
        y = jnp.maximum(y, 0.0)
    return jnp.transpose(y, (0, 3, 1, 2))


if __name__ == "__main__":
    N, C_IN, H, W = 2, 4, 16, 16
    HIDDEN, C_OUT = 32, 8

    key = jax.random.PRNGKey(0)
    k_x, k_w1, k_b1, k_w2, k_b2 = jax.random.split(key, 5)

    x = jax.random.normal(k_x, (N, C_IN, H, W), dtype=jnp.float32)
    w1 = jax.random.normal(k_w1, (9 * C_IN, HIDDEN), dtype=jnp.float32) * 0.1
    b1 = jax.random.normal(k_b1, (1, HIDDEN), dtype=jnp.float32) * 0.1
    w2 = jax.random.normal(k_w2, (9 * HIDDEN, C_OUT), dtype=jnp.float32) * 0.1
    b2 = jax.random.normal(k_b2, (1, C_OUT), dtype=jnp.float32) * 0.1
    params = (w1, b1, w2, b2)

    for act in ("softmax", "relu", "identity"):
        out = jax.block_until_ready(simple_cnn_forward(x, params, activation=act))
        ref = jax.block_until_ready(_reference_forward(x, params, activation=act))
        assert out.shape == (N, C_OUT, H, W)
        # bf16 matmul inputs / bf16 output (f32 accumulation) vs f32 reference
        assert jnp.allclose(out, ref, atol=3e-2, rtol=3e-2), f"mismatch ({act})"

    print("KERNEL_OK")
</pallas_src>

<mosaic_0001>
module attributes {stable_mosaic.version = 11 : i64} {
  func.func @_fused_cnn_kernel(%arg0: i32, %arg1: memref<1x20x18x8xbf16, #tpu.memory_space<vmem>>, %arg2: memref<72x128xbf16, #tpu.memory_space<vmem>>, %arg3: memref<1x128xf32, #tpu.memory_space<vmem>>, %arg4: memref<1152x128xbf16, #tpu.memory_space<vmem>>, %arg5: memref<1x128xf32, #tpu.memory_space<vmem>>, %arg6: memref<1x16x16x128xbf16, #tpu.memory_space<vmem>>) attributes {dimension_semantics = [#tpu.dimension_semantics<parallel>], iteration_bounds = array<i64: 2>, scalar_prefetch = 0 : i64, scratch_operands = 0 : i64, tpu.core_type = #tpu.core_type<tc>, window_params = [{transform_indices = @transform_0, window_bounds = array<i64: 1, 20, 18, 8>}, {pipeline_mode = #tpu.pipeline_mode<synchronous>, transform_indices = @transform_1, window_bounds = array<i64: 72, 128>}, {pipeline_mode = #tpu.pipeline_mode<synchronous>, transform_indices = @transform_2, window_bounds = array<i64: 1, 128>}, {pipeline_mode = #tpu.pipeline_mode<synchronous>, transform_indices = @transform_3, window_bounds = array<i64: 1152, 128>}, {pipeline_mode = #tpu.pipeline_mode<synchronous>, transform_indices = @transform_4, window_bounds = array<i64: 1, 128>}, {transform_indices = @transform_5, window_bounds = array<i64: 1, 16, 16, 128>}]} {
    %c1_i32 = arith.constant 1 : i32
    %c0_i32 = arith.constant 0 : i32
    %0 = arith.cmpi eq, %c1_i32, %c0_i32 : i32
    %c1_i32_0 = arith.constant 1 : i32
    %1 = arith.select %0, %c1_i32_0, %c1_i32 : i32
    %2 = arith.remsi %arg0, %1 : i32
    %c0_i32_1 = arith.constant 0 : i32
    %3 = arith.cmpi ne, %2, %c0_i32_1 : i32
    %c0_i32_2 = arith.constant 0 : i32
    %4 = arith.cmpi slt, %2, %c0_i32_2 : i32
    %c0_i32_3 = arith.constant 0 : i32
    %5 = arith.cmpi slt, %1, %c0_i32_3 : i32
    %6 = arith.xori %4, %5 : i1
    %7 = arith.andi %6, %3 : i1
    %8 = arith.addi %2, %1 : i32
    %9 = arith.select %7, %8, %2 : i32
    %c16_i32 = arith.constant 16 : i32
    %10 = arith.muli %9, %c16_i32 : i32
    %c0 = arith.constant 0 : index
    %c0_4 = arith.constant 0 : index
    %c0_5 = arith.constant 0 : index
    %c0_6 = arith.constant 0 : index
    %11 = vector.load %arg1[%c0, %c0_4, %c0_5, %c0_6] : memref<1x20x18x8xbf16, #tpu.memory_space<vmem>>, vector<1x20x18x8xbf16>
    %12 = vector.shape_cast %11 : vector<1x20x18x8xbf16> to vector<20x18x8xbf16>
    %13 = vector.extract_strided_slice %12 {offsets = [0, 0, 0], sizes = [18, 16, 8], strides = [1, 1, 1]} : vector<20x18x8xbf16> to vector<18x16x8xbf16>
    %14 = vector.shape_cast %13 : vector<18x16x8xbf16> to vector<288x8xbf16>
    %15 = vector.extract_strided_slice %12 {offsets = [0, 1, 0], sizes = [18, 16, 8], strides = [1, 1, 1]} : vector<20x18x8xbf16> to vector<18x16x8xbf16>
    %16 = vector.shape_cast %15 : vector<18x16x8xbf16> to vector<288x8xbf16>
    %17 = vector.extract_strided_slice %12 {offsets = [0, 2, 0], sizes = [18, 16, 8], strides = [1, 1, 1]} : vector<20x18x8xbf16> to vector<18x16x8xbf16>
    %18 = vector.shape_cast %17 : vector<18x16x8xbf16> to vector<288x8xbf16>
    %19 = vector.extract_strided_slice %12 {offsets = [1, 0, 0], sizes = [18, 16, 8], strides = [1, 1, 1]} : vector<20x18x8xbf16> to vector<18x16x8xbf16>
    %20 = vector.shape_cast %19 : vector<18x16x8xbf16> to vector<288x8xbf16>
    %21 = vector.extract_strided_slice %12 {offsets = [1, 1, 0], sizes = [18, 16, 8], strides = [1, 1, 1]} : vector<20x18x8xbf16> to vector<18x16x8xbf16>
    %22 = vector.shape_cast %21 : vector<18x16x8xbf16> to vector<288x8xbf16>
    %23 = vector.extract_strided_slice %12 {offsets = [1, 2, 0], sizes = [18, 16, 8], strides = [1, 1, 1]} : vector<20x18x8xbf16> to vector<18x16x8xbf16>
    %24 = vector.shape_cast %23 : vector<18x16x8xbf16> to vector<288x8xbf16>
    %25 = vector.extract_strided_slice %12 {offsets = [2, 0, 0], sizes = [18, 16, 8], strides = [1, 1, 1]} : vector<20x18x8xbf16> to vector<18x16x8xbf16>
    %26 = vector.shape_cast %25 : vector<18x16x8xbf16> to vector<288x8xbf16>
    %27 = vector.extract_strided_slice %12 {offsets = [2, 1, 0], sizes = [18, 16, 8], strides = [1, 1, 1]} : vector<20x18x8xbf16> to vector<18x16x8xbf16>
    %28 = vector.shape_cast %27 : vector<18x16x8xbf16> to vector<288x8xbf16>
    %29 = vector.extract_strided_slice %12 {offsets = [2, 2, 0], sizes = [18, 16, 8], strides = [1, 1, 1]} : vector<20x18x8xbf16> to vector<18x16x8xbf16>
    %30 = vector.shape_cast %29 : vector<18x16x8xbf16> to vector<288x8xbf16>
    %31 = tpu.concatenate %14, %16, %18, %20, %22, %24, %26, %28, %30 in 1 : vector<288x8xbf16>, vector<288x8xbf16>, vector<288x8xbf16>, vector<288x8xbf16>, vector<288x8xbf16>, vector<288x8xbf16>, vector<288x8xbf16>, vector<288x8xbf16>, vector<288x8xbf16> -> vector<288x72xbf16>
    %c0_7 = arith.constant 0 : index
    %c0_8 = arith.constant 0 : index
    %32 = vector.load %arg2[%c0_7, %c0_8] : memref<72x128xbf16, #tpu.memory_space<vmem>>, vector<72x128xbf16>
    %cst = arith.constant dense<0.000000e+00> : vector<288x128xf32>
    %33 = tpu.matmul %31, %32, %cst {dimension_numbers = #tpu.dot_dimension_numbers<[1], [0], [0], [1], [0, 0, 1, 1], [], []>} : vector<288x72xbf16>, vector<72x128xbf16>, vector<288x128xf32> -> vector<288x128xf32>
    %c0_9 = arith.constant 0 : index
    %c0_10 = arith.constant 0 : index
    %34 = vector.load %arg3[%c0_9, %c0_10] : memref<1x128xf32, #tpu.memory_space<vmem>>, vector<1x128xf32>
    %35 = vector.broadcast %34 : vector<1x128xf32> to vector<288x128xf32>
    %36 = arith.addf %33, %35 : vector<288x128xf32>
    %cst_11 = arith.constant 0.000000e+00 : f32
    %37 = vector.broadcast %cst_11 : f32 to vector<288x128xf32>
    %38 = arith.maximumf %36, %37 : vector<288x128xf32>
    %39 = vector.shape_cast %38 : vector<288x128xf32> to vector<18x16x128xf32>
    %c1_i32_12 = arith.constant 1 : i32
    %40 = arith.subi %10, %c1_i32_12 : i32
    %41 = tpu.iota {dimensions = array<i32: 0>} : vector<18x1x1xi32>
    %42 = vector.broadcast %40 : i32 to vector<18x1x1xi32>
    %43 = arith.addi %42, %41 : vector<18x1x1xi32>
    %c0_i32_13 = arith.constant 0 : i32
    %44 = vector.broadcast %c0_i32_13 : i32 to vector<18x1x1xi32>
    %45 = arith.cmpi sge, %43, %44 : vector<18x1x1xi32>
    %c16_i32_14 = arith.constant 16 : i32
    %46 = vector.broadcast %c16_i32_14 : i32 to vector<18x1x1xi32>
    %47 = arith.cmpi slt, %43, %46 : vector<18x1x1xi32>
    %48 = arith.andi %45, %47 : vector<18x1x1xi1>
    %cst_15 = arith.constant 0.000000e+00 : f32
    %49 = vector.shape_cast %48 : vector<18x1x1xi1> to vector<18x1x1xi1>
    %50 = vector.broadcast %49 : vector<18x1x1xi1> to vector<18x16x128xi1>
    %51 = vector.broadcast %cst_15 : f32 to vector<18x16x128xf32>
    %52 = arith.select %50, %39, %51 : vector<18x16x128xi1>, vector<18x16x128xf32>
    %53 = arith.truncf %52 : vector<18x16x128xf32> to vector<18x16x128xbf16>
    %cst_16 = arith.constant 0.000000e+00 : bf16
    %54 = vector.broadcast %cst_16 : bf16 to vector<18x1x128xbf16>
    %55 = tpu.concatenate %54, %53, %54 in 1 : vector<18x1x128xbf16>, vector<18x16x128xbf16>, vector<18x1x128xbf16> -> vector<18x18x128xbf16>
    %56 = vector.extract_strided_slice %55 {offsets = [0, 0, 0], sizes = [16, 16, 128], strides = [1, 1, 1]} : vector<18x18x128xbf16> to vector<16x16x128xbf16>
    %57 = vector.shape_cast %56 : vector<16x16x128xbf16> to vector<256x128xbf16>
    %58 = vector.extract_strided_slice %55 {offsets = [0, 1, 0], sizes = [16, 16, 128], strides = [1, 1, 1]} : vector<18x18x128xbf16> to vector<16x16x128xbf16>
    %59 = vector.shape_cast %58 : vector<16x16x128xbf16> to vector<256x128xbf16>
    %60 = vector.extract_strided_slice %55 {offsets = [0, 2, 0], sizes = [16, 16, 128], strides = [1, 1, 1]} : vector<18x18x128xbf16> to vector<16x16x128xbf16>
    %61 = vector.shape_cast %60 : vector<16x16x128xbf16> to vector<256x128xbf16>
    %62 = vector.extract_strided_slice %55 {offsets = [1, 0, 0], sizes = [16, 16, 128], strides = [1, 1, 1]} : vector<18x18x128xbf16> to vector<16x16x128xbf16>
    %63 = vector.shape_cast %62 : vector<16x16x128xbf16> to vector<256x128xbf16>
    %64 = vector.extract_strided_slice %55 {offsets = [1, 1, 0], sizes = [16, 16, 128], strides = [1, 1, 1]} : vector<18x18x128xbf16> to vector<16x16x128xbf16>
    %65 = vector.shape_cast %64 : vector<16x16x128xbf16> to vector<256x128xbf16>
    %66 = vector.extract_strided_slice %55 {offsets = [1, 2, 0], sizes = [16, 16, 128], strides = [1, 1, 1]} : vector<18x18x128xbf16> to vector<16x16x128xbf16>
    %67 = vector.shape_cast %66 : vector<16x16x128xbf16> to vector<256x128xbf16>
    %68 = vector.extract_strided_slice %55 {offsets = [2, 0, 0], sizes = [16, 16, 128], strides = [1, 1, 1]} : vector<18x18x128xbf16> to vector<16x16x128xbf16>
    %69 = vector.shape_cast %68 : vector<16x16x128xbf16> to vector<256x128xbf16>
    %70 = vector.extract_strided_slice %55 {offsets = [2, 1, 0], sizes = [16, 16, 128], strides = [1, 1, 1]} : vector<18x18x128xbf16> to vector<16x16x128xbf16>
    %71 = vector.shape_cast %70 : vector<16x16x128xbf16> to vector<256x128xbf16>
    %72 = vector.extract_strided_slice %55 {offsets = [2, 2, 0], sizes = [16, 16, 128], strides = [1, 1, 1]} : vector<18x18x128xbf16> to vector<16x16x128xbf16>
    %73 = vector.shape_cast %72 : vector<16x16x128xbf16> to vector<256x128xbf16>
    %74 = tpu.concatenate %57, %59, %61, %63, %65, %67, %69, %71, %73 in 1 : vector<256x128xbf16>, vector<256x128xbf16>, vector<256x128xbf16>, vector<256x128xbf16>, vector<256x128xbf16>, vector<256x128xbf16>, vector<256x128xbf16>, vector<256x128xbf16>, vector<256x128xbf16> -> vector<256x1152xbf16>
    %c0_17 = arith.constant 0 : index
    %c0_18 = arith.constant 0 : index
    %75 = vector.load %arg4[%c0_17, %c0_18] : memref<1152x128xbf16, #tpu.memory_space<vmem>>, vector<1152x128xbf16>
    %cst_19 = arith.constant dense<0.000000e+00> : vector<256x128xf32>
    %76 = tpu.matmul %74, %75, %cst_19 {dimension_numbers = #tpu.dot_dimension_numbers<[1], [0], [0], [1], [0, 0, 1, 1], [], []>} : vector<256x1152xbf16>, vector<1152x128xbf16>, vector<256x128xf32> -> vector<256x128xf32>
    %c0_20 = arith.constant 0 : index
    %c0_21 = arith.constant 0 : index
    %77 = vector.load %arg5[%c0_20, %c0_21] : memref<1x128xf32, #tpu.memory_space<vmem>>, vector<1x128xf32>
    %78 = vector.broadcast %77 : vector<1x128xf32> to vector<256x128xf32>
    %79 = arith.addf %76, %78 : vector<256x128xf32>
    %80 = tpu.iota {dimensions = array<i32: 1>} : vector<1x128xi32>
    %c8_i32 = arith.constant 8 : i32
    %81 = vector.broadcast %c8_i32 : i32 to vector<1x128xi32>
    %82 = arith.cmpi slt, %80, %81 : vector<1x128xi32>
    %cst_22 = arith.constant -1.000000e+30 : f32
    %83 = vector.shape_cast %82 : vector<1x128xi1> to vector<1x128xi1>
    %84 = vector.broadcast %83 : vector<1x128xi1> to vector<256x128xi1>
    %85 = vector.broadcast %cst_22 : f32 to vector<256x128xf32>
    %86 = arith.select %84, %79, %85 : vector<256x128xi1>, vector<256x128xf32>
    %cst_23 = arith.constant dense<0xFF800000> : vector<256xf32>
    %87 = vector.multi_reduction <maximumf>, %86, %cst_23 [1] : vector<256x128xf32> to vector<256xf32>
    %88 = vector.shape_cast %87 : vector<256xf32> to vector<256x1xf32>
    %89 = vector.broadcast %88 : vector<256x1xf32> to vector<256x128xf32>
    %90 = arith.subf %86, %89 : vector<256x128xf32>
    %91 = math.exp %90 : vector<256x128xf32>
    %cst_24 = arith.constant dense<0.000000e+00> : vector<256xf32>
    %92 = vector.multi_reduction <add>, %91, %cst_24 [1] : vector<256x128xf32> to vector<256xf32>
    %93 = vector.shape_cast %92 : vector<256xf32> to vector<256x1xf32>
    %94 = tpu.reciprocal %93 {approx = true} : vector<256x1xf32> -> vector<256x1xf32>
    %95 = vector.broadcast %94 : vector<256x1xf32> to vector<256x128xf32>
    %96 = arith.mulf %91, %95 : vector<256x128xf32>
    %97 = vector.shape_cast %96 : vector<256x128xf32> to vector<16x16x128xf32>
    %98 = arith.truncf %97 : vector<16x16x128xf32> to vector<16x16x128xbf16>
    %c0_25 = arith.constant 0 : index
    %c0_26 = arith.constant 0 : index
    %c0_27 = arith.constant 0 : index
    %c0_28 = arith.constant 0 : index
    %99 = vector.load %arg6[%c0_25, %c0_26, %c0_27, %c0_28] : memref<1x16x16x128xbf16, #tpu.memory_space<vmem>>, vector<1x16x16x128xbf16>
    %100 = vector.shape_cast %99 : vector<1x16x16x128xbf16> to vector<16x16x128xbf16>
    %101 = vector.shape_cast %98 : vector<16x16x128xbf16> to vector<1x16x16x128xbf16>
    tpu.vector_store %arg6[%c0_25, %c0_26, %c0_27, %c0_28], %101 {strides = array<i32>} : memref<1x16x16x128xbf16, #tpu.memory_space<vmem>>, vector<1x16x16x128xbf16>,
    return
  }
  func.func @transform_0(%arg0: i32) -> (i32, i32, i32, i32) {
    %c0_i32 = arith.constant 0 : i32
    %c0_i32_0 = arith.constant 0 : i32
    %c0_i32_1 = arith.constant 0 : i32
    %c0_i32_2 = arith.constant 0 : i32
    return %arg0, %c0_i32, %c0_i32_0, %c0_i32_1 : i32, i32, i32, i32
  }
  func.func @transform_1(%arg0: i32) -> (i32, i32) {
    %c0_i32 = arith.constant 0 : i32
    %c0_i32_0 = arith.constant 0 : i32
    %c0_i32_1 = arith.constant 0 : i32
    return %c0_i32, %c0_i32_0 : i32, i32
  }
  func.func @transform_2(%arg0: i32) -> (i32, i32) {
    %c0_i32 = arith.constant 0 : i32
    %c0_i32_0 = arith.constant 0 : i32
    %c0_i32_1 = arith.constant 0 : i32
    return %c0_i32, %c0_i32_0 : i32, i32
  }
  func.func @transform_3(%arg0: i32) -> (i32, i32) {
    %c0_i32 = arith.constant 0 : i32
    %c0_i32_0 = arith.constant 0 : i32
    %c0_i32_1 = arith.constant 0 : i32
    return %c0_i32, %c0_i32_0 : i32, i32
  }
  func.func @transform_4(%arg0: i32) -> (i32, i32) {
    %c0_i32 = arith.constant 0 : i32
    %c0_i32_0 = arith.constant 0 : i32
    %c0_i32_1 = arith.constant 0 : i32
    return %c0_i32, %c0_i32_0 : i32, i32
  }
  func.func @transform_5(%arg0: i32) -> (i32, i32, i32, i32) {
    %c0_i32 = arith.constant 0 : i32
    %c0_i32_0 = arith.constant 0 : i32
    %c0_i32_1 = arith.constant 0 : i32
    %c0_i32_2 = arith.constant 0 : i32
    return %arg0, %c0_i32, %c0_i32_0, %c0_i32_1 : i32, i32, i32, i32
  }
}

</mosaic_0001>

<bundles_post_ra>
// kernel: tpu_custom_call.1
= control target key start
LH: loop header
LB: loop body
LE: loop exit
PB: predicated region body
PF: predicated region fallthrough
CT: control target
= control target key end

     0   :  { %10 = vsyncpa [#allocation3], 0  ;;  %s8311_s0 = inlined_call_operand.vmem [shape: bf16[2,20,18,8], index: 0, kind: input, shape index: {}]   ;;  %s8312_s1 = inlined_call_operand.vmem [shape: bf16[72,128], index: 1, kind: input, shape index: {}]   ;;  %s8313_s2 = inlined_call_operand.vmem [shape: f32[1,128], index: 2, kind: input, shape index: {}]   ;;  %s8314_s3 = inlined_call_operand.vmem [shape: bf16[1152,128], index: 3, kind: input, shape index: {}]   ;;  %s8315_s4 = inlined_call_operand.vmem [shape: f32[1,128], index: 4, kind: input, shape index: {}]   ;;  %s8316_s5 = inlined_call_operand.hbm [shape: bf16[2,16,16,128], index: 5, kind: output, shape index: {}]  }
   0x1   :  { %12 = vsyncpa [#allocation3 + $0x1], 0  ;;  %s5916_s18 = smov 0   ;;  %s5918_s19 = smov 0  }
   0x2   :  { %s5920_s20 = smov 0   ;;  %s5922_s21 = smov 0  }
   0x3 LB: > { %s5937_s22 = sadd.s32 4294967295, %s5873_s21   ;;  %s4597_s23 = sadd.s32 4294967294, %s5873_s21   ;;  %s5873_s21 = sphi %s5922_s21, %s8350_s21   ;;  %s5869_s20 = sphi %s5920_s20, %s8349_s20   ;;  %s5865_s19 = sphi %s5918_s19, %s8348_s19   ;;  %s5861_s18 = sphi %s5916_s18, %s8347_s18  }
   0x4   : > { %s5941_s24 = sadd.s32 1, %s5873_s21   ;;  %s135_s25 = sadd.s32 1, %s5869_s20 }
   0x5   : > { %s132_s26 = ssub.s32 %s5873_s21, %s5941_s24  ;;  %p145_p0 = scmp.ne.s32.totalorder %s5869_s20, %s5865_s19 }
   0x6   : > { %p133_p1 = scmp.eq.s32.totalorder %s132_s26, 0  ;;  %p146_p2 = scmp.eq.s32.totalorder %s5937_s22, 1 }
   0x7   : > { %p151_p3 = scmp.ne.s32.totalorder %s5865_s19, %s5861_s18  ;;  %p152_p4 = scmp.eq.s32.totalorder %s4597_s23, 1 }
   0x8   : > { %s5952_s27 = scalar_select %p133_p1, %s5869_s20, %s135_s25  }
   0x9   : > { %p5954_p5 = por %p146_p2, %p145_p0  ;;  %p5958_p6 = por %p152_p4, %p151_p3 }
   0xa   : > { %p4600_p7 = scmp.ge.s32.totalorder %s5873_s21, 1  ;;  %p190_p8 = scmp.lt.s32.totalorder %s5873_s21, 3 }
   0xc   : > { %p191_p9 = pnand %p4600_p7, %p190_p8 }
   0xe   : > { %194 = sbr.rel (%p191_p9) target bundleno = 1400 (0x578), region = 40 }
  0x15   : > { %p218_p10 = scmp.lt.s32.totalorder %s5937_s22, 1  ;;  %vm773_vm0 = vcmask 1042432   ;;  %vm774_vm1 = vcmask 1046532   ;;  %vm284_vm2 = vsmask.f32 3328  ;;  %s5875_s10 = smov 24  }
  0x16   : > { %vm285_vm3 = vsmask.f32 7440  ;;  %vm5991_vm4 = vmor %vm773_vm0, %vm774_vm1  ;;  %s5876_s11 = smov 40   ;;  %v5595_v48 = vld [vmem:[%s8312_s1] sm:$0xff]   ;;  %s5877_s14 = smov 16   ;;  %vm1832_vm6 = vcmask 1043456  }
  0x17   : > { %s219_s30 = scalar_select %p218_p10, %s5937_s22, 1  ;;  %vm6032_vm5 = vmor %vm284_vm2, %vm285_vm3  ;;  %5440 = vmatprep.subr.bf16.mxu0 %v5595_v48  ;;  %vm1438_vm7 = vcmask 64512   ;;  %vm1493_vm8 = vcmask 130048   ;;  %vm1530_vm9 = vcmask 195584   ;;  %vm1567_vm10 = vcmask 261120  }
  0x18   : > { %5441 = vmatpush3.bf16.msra.mxu0 %v5595_v48  ;;  %s5878_s15 = smov 8   ;;  %s5880_s7 = smov 48   ;;  %vm1604_vm11 = vcmask 326656   ;;  %vm1641_vm12 = vcmask 392192   ;;  %vm1678_vm13 = vcmask 457728   ;;  %vm1715_vm14 = vcmask 523264  }
  0x19   : > { %s5535_s6 = smul.u32 240, %s219_s30  ;;  %s5881_s8 = smov 56   ;;  %vm1795_vm15 = vcmask 588800   ;;  %vm2265_vm0 = vcmask 1040384   ;;  %vm2266_vm1 = vsmask.f32 256 }
  0x1a   : > { %s5882_s12 = smov 64   ;;  %vm6772_vm2 = vmand %vm2265_vm0, %vm2266_vm1  ;;  %vm2304_vm3 = vsmask.f32 7424  ;;  %s4849_s13 = sshll.u32 %s5937_s22, 11 }
  0x1b   : > { %s5969_s9 = scalar_lea.vmem %s8311_s0, %s5535_s6  ;;  %s5879_s6 = smov 32  }
  0x1c   : > { %v5972_v0 = vld [vmem:[%s5969_s9 + $0x18] sm:$0xf]  ;;  %v5975_v1 = vld [vmem:[%s5969_s9 + $0x1c] sm:$0xf]  ;;  %v227_v2 = vld [vmem:[%s5969_s9 + $0xc] sm:$0xf] }
  0x1d   : > { %v349_v3 = vshrl.u32 %v5975_v1, 16  ;;  %v5981_v4 = vcombine.low %v5972_v0, %v5975_v1  ;;  %v336_v5 = vshrl.u32 %v5972_v0, 16  ;;  %v339_v6 = vshll.u32 %v5972_v0, 16  ;;  %v228_v7 = vld [vmem:[%s5969_s9 + $0x10] sm:$0xf]  ;;  %s5884_s23 = smov [#allocation2]  }
  0x1e   : > { %v321_v8 = vshll.u32 %v228_v7, 16  ;;  %v325_v9 = vshrl.u32 %v228_v7, 16  ;;  %v5986_v10 = vcombine.low %v227_v2, %v228_v7  ;;  %v312_v11 = vshrl.u32 %v227_v2, 16  ;;  %v229_v12 = vld [vmem:[%s5969_s9 + $0x14] sm:$0x1] }
  0x1f   : > { %1209 = vrot.lane.b32.xlu1 %v5981_v4, %s5875_s10  ;;  %v315_v14 = vshll.u32 %v227_v2, 16  ;;  %v4604_v15 = vrot.slane %v227_v2, 9  ;;  %v785_v16 = vrot.slane %v228_v7, 5  ;;  %v788_v17 = vrot.slane %v229_v12, 5  ;;  %v5998_v18 = vld [vmem:[%s5969_s9] sm:$0xf] }
  0x20   : > { %v327_v19 = vrot.slane %v325_v9, 4  ;;  %1207 = vrot.lane.b32.xlu0 %v5986_v10, %s5875_s10  ;;  %v314_v20 = vrot.slane %v312_v11, 4  ;;  %v6003_v21 = vld [vmem:[%s5969_s9 + $0x4] sm:$0xf]  ;;  %v226_v22 = vld [vmem:[%s5969_s9 + $0x8] sm:$0x1] }
  0x21   : > { %v317_v23 = vrot.slane %v315_v14, 5  ;;  %v786_v24 = vsel %vm5991_vm4, %v4604_v15, %v785_v16  ;;  %v787_v25 = vrot.slane %v785_v16, 4  ;;  %v4603_v26 = vrot.slane %v5998_v18, 9  ;;  %v6017_v35 = vld [vmem:[%s5969_s9 + $0x20] sm:$0x1] }
  0x22   : > { %v778_v27 = vrot.slane %v6003_v21, 5  ;;  %v781_v28 = vrot.slane %v226_v22, 5  ;;  %v288_v29 = vshrl.u32 %v5998_v18, 16  ;;  %v291_v30 = vshll.u32 %v5998_v18, 16  ;;  %v6057_v14 = vld [vmem:[%s5969_s9 + $0x28] sm:$0xf] }
  0x23   : > { %v789_v31 = vsel %vm5991_vm4, %v787_v25, %v788_v17  ;;  %v297_v32 = vshll.u32 %v6003_v21, 16  ;;  %v301_v33 = vshrl.u32 %v6003_v21, 16  ;;  %v307_v34 = vshll.u32 %v226_v22, 16 }
  0x24   : > { %v4660_v36 = vcombine.low %v786_v24, %v789_v31  ;;  %v779_v37 = vsel %vm5991_vm4, %v4603_v26, %v778_v27  ;;  %v780_v38 = vrot.slane %v778_v27, 4  ;;  %v290_v39 = vrot.slane %v288_v29, 4  ;;  %v235_v27 = vld [vmem:[%s5969_s9 + $0x2c] sm:$0x1]  ;;  %v5597_v29 = vld [vmem:[%s8312_s1 + $0x10] sm:$0xff]  }
  0x25   : > { %v293_v40 = vrot.slane %v291_v30, 5  ;;  %v299_v41 = vrot.slane %v297_v32, 5  ;;  %v303_v42 = vrot.slane %v301_v33, 4  ;;  %v309_v43 = vrot.slane %v307_v34, 5 }
  0x26   : > { %1285 = vrot.lane.b32.xlu0 %v4660_v36, %s5876_s11  ;;  %v782_v44 = vsel %vm5991_vm4, %v780_v38, %v781_v28  ;;  %v4605_v45 = vrot.slane %v5972_v0, 9  ;;  %v792_v46 = vrot.slane %v5975_v1, 5  ;;  %v795_v47 = vrot.slane %v6017_v35, 5 }
  0x27   : > { %v4659_v49 = vcombine.low %v779_v37, %v782_v44  ;;  %v294_v50 = vor.u32 %v293_v40, %v290_v39  ;;  %v304_v51 = vor.u32 %v303_v42, %v299_v41  ;;  %v318_v52 = vor.u32 %v317_v23, %v314_v20  ;;  %v5599_v40 = vld [vmem:[%s8312_s1 + $0x18] sm:$0xff]  }
  0x28   : > { %v793_v54 = vsel %vm5991_vm4, %v4605_v45, %v792_v46  ;;  %v794_v55 = vrot.slane %v792_v46, 4  ;;  %v323_v56 = vrot.slane %v321_v8, 5  ;;  %v331_v57 = vshll.u32 %v229_v12, 16  ;;  %v6046_v8 = vld [vmem:[%s5969_s9 + $0x24] sm:$0xf] }
  0x29   : > { %1168 = vrot.lane.b32.xlu1 %v4659_v49, %s5877_s14  ;;  %v295_v58 = vrot.slane %v294_v50, 4  ;;  %v305_v59 = vrot.slane %v304_v51, 4  ;;  %v319_v60 = vrot.slane %v318_v52, 4  ;;  %v338_v61 = vrot.slane %v336_v5, 4  ;;  %v236_v51 = vld [vmem:[%s5969_s9 + $0x30] sm:$0xf] }
  0x2a   : > { %v796_v62 = vsel %vm5991_vm4, %v794_v55, %v795_v47  ;;  %v328_v63 = vor.u32 %v327_v19, %v323_v56  ;;  %v333_v2 = vrot.slane %v331_v57, 5  ;;  %v341_v7 = vrot.slane %v339_v6, 5  ;;  %v237_v52 = vld [vmem:[%s5969_s9 + $0x34] sm:$0xf] }
  0x2b   : > { %v300_v9 = vsel %vm6032_vm5, %v295_v58, %v299_v41  ;;  %v310_v11 = vsel %vm6032_vm5, %v305_v59, %v309_v43  ;;  %v6052_v12 = vcombine.low %v793_v54, %v796_v62  ;;  %v324_v5 = vsel %vm6032_vm5, %v319_v60, %v323_v56 }
  0x2c   : > { %v4641_v15 = vcombine.low %v300_v9, %v310_v11  ;;  %v329_v16 = vrot.slane %v328_v63, 4  ;;  %v342_v0 = vor.u32 %v341_v7, %v338_v61  ;;  %v345_v6 = vshll.u32 %v5975_v1, 16  ;;  %v5596_v1 = vld [vmem:[%s8312_s1 + $0x8] sm:$0xff]  }
  0x2d   : > { %1170 = vrot.lane.b32.xlu1 %v4660_v36, %s5877_s14  ;;  %v351_v17 = vrot.slane %v349_v3, 4  ;;  %v355_v19 = vshll.u32 %v6017_v35, 16  ;;  %v360_v20 = vshrl.u32 %v6046_v8, 16  ;;  %v363_v22 = vshll.u32 %v6046_v8, 16  ;;  %5442 = vmatprep.subr.bf16.mxu0 %v5596_v1 }
  0x2e   : > { %1078 = vrot.lane.b32.xlu0 %v4641_v15, %s5878_s15  ;;  %v334_v23 = vsel %vm6032_vm5, %v329_v16, %v333_v2  ;;  %v343_v24 = vrot.slane %v342_v0, 4  ;;  %v347_v25 = vrot.slane %v345_v6, 5  ;;  %v373_v26 = vshrl.u32 %v6057_v14, 16  ;;  %5443 = vmatpush3.bf16.msra.mxu0 %v5596_v1  ;;  %v238_v2 = vld [vmem:[%s5969_s9 + $0x38] sm:$0x1] }
  0x2f   : > { %v4642_v3 = vcombine.low %v324_v5, %v334_v23  ;;  %v362_v28 = vrot.slane %v360_v20, 4  ;;  %v357_v31 = vrot.slane %v355_v19, 5  ;;  %v365_v32 = vrot.slane %v363_v22, 5  ;;  %5444 = vmatprep.subr.bf16.mxu0 %v5597_v29  ;;  %v239_v0 = vld [vmem:[%s5969_s9 + $0x3c] sm:$0xf] }
  0x30   : > { %v352_v30 = vor.u32 %v351_v17, %v347_v25  ;;  %v369_v33 = vshll.u32 %v6057_v14, 16  ;;  %v375_v34 = vrot.slane %v373_v26, 4  ;;  %v379_v35 = vshll.u32 %v235_v27, 16  ;;  %v240_v6 = vld [vmem:[%s5969_s9 + $0x40] sm:$0xf] }
  0x31   : > { %1287 = vrot.lane.b32.xlu1 %v6052_v12, %s5876_s11  ;;  %v348_v36 = vsel %vm6032_vm5, %v343_v24, %v347_v25  ;;  %v366_v38 = vor.u32 %v365_v32, %v362_v28  ;;  %v799_v47 = vrot.slane %v6057_v14, 5  ;;  %v6093_v48 = vcombine.low %v6046_v8, %v6057_v14 }
  0x32   : > { %1080 = vrot.lane.b32.xlu0 %v4642_v3, %s5878_s15  ;;  %v353_v37 = vrot.slane %v352_v30, 4  ;;  %v371_v39 = vrot.slane %v369_v33, 5  ;;  %v381_v44 = vrot.slane %v379_v35, 5  ;;  %5445 = vmatpush3.bf16.msra.mxu0 %v5597_v29  ;;  %v4606_v54 = vrot.slane %v6046_v8, 9  ;;  %v241_v35 = vld [vmem:[%s5969_s9 + $0x44] sm:$0x1] }
  0x33   : > { %v367_v42 = vrot.slane %v366_v38, 4  ;;  %5446 = vmatprep.subr.bf16.mxu0 %v5599_v40  ;;  %v801_v55 = vrot.slane %v799_v47, 4  ;;  %v802_v56 = vrot.slane %v235_v27, 5  ;;  %v384_v58 = vshrl.u32 %v236_v51, 16 }
  0x34   : > { %v358_v41 = vsel %vm6032_vm5, %v353_v37, %v357_v31  ;;  %v376_v43 = vor.u32 %v375_v34, %v371_v39  ;;  %v387_v59 = vshll.u32 %v236_v51, 16  ;;  %v397_v60 = vshrl.u32 %v237_v52, 16 }
  0x35   : > { %v4643_v45 = vcombine.low %v348_v36, %v358_v41  ;;  %v372_v49 = vsel %vm6032_vm5, %v367_v42, %v371_v39  ;;  %v393_v61 = vshll.u32 %v237_v52, 16  ;;  %v800_v62 = vsel %vm5991_vm4, %v4606_v54, %v799_v47 }
  0x36   : > { %1246 = vrot.lane.b32.xlu0 %v4642_v3, %s5879_s6  ;;  %v377_v46 = vrot.slane %v376_v43, 4  ;;  %5447 = vmatpush3.bf16.msra.mxu0 %v5599_v40  ;;  %v803_v63 = vsel %vm5991_vm4, %v801_v55, %v802_v56  ;;  %v386_v7 = vrot.slane %v384_v58, 4  ;;  %v389_v8 = vrot.slane %v387_v59, 5  ;;  %v243_v56 = vld [vmem:[%s5969_s9 + $0x4c] sm:$0xf] }
  0x37   : > { %1248 = vrot.lane.b32.xlu1 %v4643_v45, %s5879_s6  ;;  %v395_v9 = vrot.slane %v393_v61, 5  ;;  %v399_v11 = vrot.slane %v397_v60, 4  ;;  %v4662_v5 = vcombine.low %v800_v62, %v803_v63  ;;  %v403_v14 = vshll.u32 %v238_v2, 16 }
  0x38   : > { %v382_v50 = vsel %vm6032_vm5, %v377_v46, %v381_v44  ;;  %v390_v15 = vor.u32 %v389_v8, %v386_v7  ;;  %v806_v19 = vrot.slane %v237_v52, 5  ;;  %v408_v20 = vshrl.u32 %v239_v0, 16  ;;  %v244_v8 = vld [vmem:[%s5969_s9 + $0x50] sm:$0x1] }
  0x39   : > { %v4644_v57 = vcombine.low %v372_v49, %v382_v50  ;;  %v400_v16 = vor.u32 %v399_v11, %v395_v9  ;;  %v405_v17 = vrot.slane %v403_v14, 5  ;;  %v411_v22 = vshll.u32 %v239_v0, 16  ;;  %v6145_v49 = vld [vmem:[%s5969_s9 + $0x48] sm:$0xf] }
  0x3a   : > { %1324 = vrot.lane.b32.xlu0 %v5981_v4, %s5880_s7  ;;  %v391_v23 = vrot.slane %v390_v15, 4  ;;  %v421_v25 = vshrl.u32 %v240_v6, 16  ;;  %v417_v26 = vshll.u32 %v240_v6, 16  ;;  %v6122_v27 = vcombine.low %v236_v51, %v237_v52 }
  0x3b   : > { %1326 = vrot.lane.b32.xlu1 %v6093_v48, %s5880_s7  ;;  %v401_v24 = vrot.slane %v400_v16, 4  ;;  %v4607_v1 = vrot.slane %v236_v51, 9  ;;  %v808_v3 = vrot.slane %v806_v19, 4  ;;  %v809_v28 = vrot.slane %v238_v2, 5  ;;  %v5600_v2 = vld [vmem:[%s8312_s1 + $0x20] ss:$0 sps:$4 sm:$0xff]  }
  0x3c   : > { %v410_v29 = vrot.slane %v408_v20, 4  ;;  %v413_v30 = vrot.slane %v411_v22, 5  ;;  %v396_v31 = vsel %vm6032_vm5, %v391_v23, %v395_v9  ;;  %v419_v33 = vrot.slane %v417_v26, 5  ;;  %5534 = vmatprep.subr.msk.bf16.mxu0 %vm1832_vm6, %v5600_v2 }
  0x3d   : > { %v406_v32 = vsel %vm6032_vm5, %v401_v24, %v405_v17  ;;  %v423_v34 = vrot.slane %v421_v25, 4  ;;  %v807_v36 = vsel %vm5991_vm4, %v4607_v1, %v806_v19  ;;  %v810_v37 = vsel %vm5991_vm4, %v808_v3, %v809_v28  ;;  %v245_v17 = vld [vmem:[%s5969_s9 + $0x54] sm:$0xf]  ;;  %v246_v19 = vld [vmem:[%s5969_s9 + $0x58] sm:$0xf] }
  0x3e   : > { %1363 = vrot.lane.b32.xlu0 %v4643_v45, %s5881_s8  ;;  %v414_v38 = vor.u32 %v413_v30, %v410_v29  ;;  %v427_v40 = vshll.u32 %v241_v35, 16  ;;  %v4663_v41 = vcombine.low %v807_v36, %v810_v37  ;;  %v6142_v46 = vcombine.low %v239_v0, %v240_v6  ;;  %v247_v37 = vld [vmem:[%s5969_s9 + $0x5c] sm:$0x1] }
  0x3f   : > { %1365 = vrot.lane.b32.xlu1 %v4644_v57, %s5881_s8  ;;  %v424_v39 = vor.u32 %v423_v34, %v419_v33  ;;  %v4608_v47 = vrot.slane %v239_v0, 9  ;;  %v4623_v50 = vcombine.low %v5998_v18, %v6003_v21  ;;  %v816_v55 = vrot.slane %v241_v35, 5 }
  0x40   : > { %v415_v42 = vrot.slane %v414_v38, 4  ;;  %v429_v44 = vrot.slane %v427_v40, 5  ;;  %v432_v59 = vshrl.u32 %v6145_v49, 16  ;;  %v435_v61 = vshll.u32 %v6145_v49, 16 }
  0x41   : > { %v425_v43 = vrot.slane %v424_v39, 4  ;;  %v445_v62 = vshrl.u32 %v243_v56, 16  ;;  %v441_v63 = vshll.u32 %v243_v56, 16  ;;  %v1834_v15 = vsel %vm1832_vm6, %v5600_v2, 0 }
  0x42   : > { %1402 = vrot.lane.b32.xlu0 %v6052_v12, %s5882_s12  ;;  %v420_v51 = vsel %vm6032_vm5, %v415_v42, %v419_v33  ;;  %v434_v9 = vrot.slane %v432_v59, 4  ;;  %v437_v11 = vrot.slane %v435_v61, 5  ;;  %v451_v16 = vshll.u32 %v244_v8, 16  ;;  %5449 = vmatpush3.bf16.msra.mxu0 %v1834_v15  ;;  %v248_v59 = vld [vmem:[%s5969_s9 + $0x60] sm:$0xf] }
  0x43   : > { %1082 = vrot.lane.b32.xlu1 %v4643_v45, %s5878_s15  ;;  %v813_v45 = vrot.slane %v240_v6, 5  ;;  %v430_v52 = vsel %vm6032_vm5, %v425_v43, %v429_v44  ;;  %v447_v14 = vrot.slane %v445_v62, 4  ;;  %v820_v22 = vrot.slane %v243_v56, 5 }
  0x44   : > { %v438_v0 = vor.u32 %v437_v11, %v434_v9  ;;  %v453_v20 = vrot.slane %v451_v16, 5  ;;  %v456_v23 = vshrl.u32 %v245_v17, 16  ;;  %v459_v24 = vshll.u32 %v245_v17, 16 }
  0x45   : > { %v815_v54 = vrot.slane %v813_v45, 4  ;;  %v814_v58 = vsel %vm5991_vm4, %v4608_v47, %v813_v45  ;;  %v469_v1 = vshrl.u32 %v246_v19, 16  ;;  %v465_v3 = vshll.u32 %v246_v19, 16 }
  0x46   : > { %1404 = vrot.lane.b32.xlu0 %v4662_v5, %s5882_s12  ;;  %v439_v25 = vrot.slane %v438_v0, 4  ;;  %v6178_v28 = vcombine.low %v6145_v49, %v243_v56  ;;  %v4609_v29 = vrot.slane %v6145_v49, 9  ;;  %v822_v30 = vrot.slane %v820_v22, 4 }
  0x47   : > { %1084 = vrot.lane.b32.xlu1 %v4644_v57, %s5878_s15  ;;  %v817_v60 = vsel %vm5991_vm4, %v815_v54, %v816_v55  ;;  %v461_v33 = vrot.slane %v459_v24, 5  ;;  %v471_v36 = vrot.slane %v469_v1, 4  ;;  %v475_v43 = vshll.u32 %v247_v37, 16 }
  0x48   : > { %v4664_v7 = vcombine.low %v814_v58, %v817_v60  ;;  %v821_v39 = vsel %vm5991_vm4, %v4609_v29, %v820_v22  ;;  %v4610_v54 = vrot.slane %v245_v17, 9  ;;  %v830_v58 = vrot.slane %v247_v37, 5  ;;  %v249_v60 = vld [vmem:[%s5969_s9 + $0x64] sm:$0xf] }
  0x49   : > { %v477_v49 = vrot.slane %v475_v43, 5  ;;  %v480_v62 = vshrl.u32 %v248_v59, 16  ;;  %v489_v9 = vshll.u32 %v249_v60, 16 }
  0x4a   : > { %1172 = vrot.lane.b32.xlu0 %v6052_v12, %s5877_s14  ;;  %v4645_v12 = vcombine.low %v396_v31, %v406_v32  ;;  %v823_v31 = vrot.slane %v244_v8, 5  ;;  %v458_v32 = vrot.slane %v456_v23, 4  ;;  %v493_v8 = vshrl.u32 %v249_v60, 16 }
  0x4b   : > { %1174 = vrot.lane.b32.xlu1 %v4662_v5, %s5877_s14  ;;  %v491_v16 = vrot.slane %v489_v9, 5  ;;  %v834_v23 = vrot.slane %v249_v60, 5 }
  0x4c   : > { %v824_v40 = vsel %vm5991_vm4, %v822_v30, %v823_v31  ;;  %v495_v0 = vrot.slane %v493_v8, 4  ;;  %v253_v31 = vld [vmem:[%s5969_s9 + $0x74] sm:$0x1]  ;;  %v6268_v8 = vld [vmem:[%s5969_s9 + $0x7c] sm:$0xf] }
  0x4d   : > { %v4665_v44 = vcombine.low %v821_v39, %v824_v40 }
  0x4e   : > { %1211 = vrot.lane.b32.xlu0 %v6093_v48, %s5875_s10  ;;  %v496_v22 = vor.u32 %v495_v0, %v491_v16 }
  0x4f   : > { %1213 = vrot.lane.b32.xlu1 %v6122_v27, %s5875_s10 }
  0x52   : > { %1250 = vrot.lane.b32.xlu0 %v4644_v57, %s5879_s6  ;;  %v4646_v57 = vcombine.low %v420_v51, %v430_v52  ;;  %v827_v51 = vrot.slane %v246_v19, 5  ;;  %v6199_v52 = vcombine.low %v245_v17, %v246_v19  ;;  %v6220_v17 = vld [vmem:[%s5969_s9 + $0x6c] sm:$0xf]  ;;  %v252_v19 = vld [vmem:[%s5969_s9 + $0x70] sm:$0xf] }
  0x53   : > { %1252 = vrot.lane.b32.xlu1 %v4645_v12, %s5879_s6  ;;  %v517_v29 = vshrl.u32 %v252_v19, 16  ;;  %v513_v30 = vshll.u32 %v252_v19, 16 }
  0x54   : > { %v828_v2 = vsel %vm5991_vm4, %v4610_v54, %v827_v51  ;;  %v841_v54 = vrot.slane %v252_v19, 5 }
  0x55   : > { %v515_v39 = vrot.slane %v513_v30, 5  ;;  %v519_v40 = vrot.slane %v517_v29, 4 }
  0x56   : > { %1289 = vrot.lane.b32.xlu0 %v4662_v5, %s5876_s11  ;;  %v443_v5 = vrot.slane %v441_v63, 5  ;;  %v483_v63 = vshll.u32 %v248_v59, 16 }
  0x57   : > { %1291 = vrot.lane.b32.xlu1 %v4663_v41, %s5876_s11 }
  0x58   : > { %v448_v6 = vor.u32 %v447_v14, %v443_v5  ;;  %v444_v34 = vsel %vm6032_vm5, %v439_v25, %v443_v5  ;;  %v250_v5 = vld [vmem:[%s5969_s9 + $0x68] sm:$0x1]  ;;  %v482_v14 = vrot.slane %v480_v62, 4  ;;  %v485_v15 = vrot.slane %v483_v63, 5 }
  0x59   : > { %v504_v25 = vshrl.u32 %v6220_v17, 16  ;;  %v843_v63 = vrot.slane %v841_v54, 4 }
  0x5a   : > { %1328 = vrot.lane.b32.xlu0 %v6122_v27, %s5880_s7  ;;  %v449_v26 = vrot.slane %v448_v6, 4  ;;  %v499_v6 = vshll.u32 %v250_v5, 16 }
  0x5b   : > { %1330 = vrot.lane.b32.xlu1 %v6142_v46, %s5880_s7 }
  0x5c   : > { %v454_v35 = vsel %vm6032_vm5, %v449_v26, %v453_v20  ;;  %v486_v20 = vor.u32 %v485_v15, %v482_v14  ;;  %v501_v24 = vrot.slane %v499_v6, 5  ;;  %v507_v26 = vshll.u32 %v6220_v17, 16 }
  0x5d   : > { %v4647_v38 = vcombine.low %v444_v34, %v454_v35  ;;  %v837_v34 = vrot.slane %v250_v5, 5  ;;  %v6231_v35 = vcombine.low %v248_v59, %v249_v60  ;;  %v4612_v60 = vrot.slane %v6220_v17, 9 }
  0x5e   : > { %1367 = vrot.lane.b32.xlu0 %v4645_v12, %s5881_s8  ;;  %v487_v1 = vrot.slane %v486_v20, 4  ;;  %v541_v6 = vshrl.u32 %v6268_v8, 16 }
  0x5f   : > { %1369 = vrot.lane.b32.xlu1 %v4646_v57, %s5881_s8 }
  0x60   : > { %v492_v37 = vsel %vm6032_vm5, %v487_v1, %v491_v16  ;;  %v842_v16 = vsel %vm5991_vm4, %v4612_v60, %v841_v54  ;;  %v543_v1 = vrot.slane %v541_v6, 4 }
  0x62   : > { %1406 = vrot.lane.b32.xlu0 %v4663_v41, %s5882_s12 }
  0x63   : > { %1408 = vrot.lane.b32.xlu1 %v4664_v7, %s5882_s12 }
  0x66   : > { %1086 = vrot.lane.b32.xlu0 %v4645_v12, %s5878_s15  ;;  %v467_v12 = vrot.slane %v465_v3, 5  ;;  %v497_v3 = vrot.slane %v496_v22, 4 }
  0x67   : > { %1088 = vrot.lane.b32.xlu1 %v4646_v57, %s5878_s15 }
  0x68   : > { %v472_v42 = vor.u32 %v471_v36, %v467_v12  ;;  %v509_v36 = vrot.slane %v507_v26, 5 }
  0x6a   : > { %1176 = vrot.lane.b32.xlu0 %v4663_v41, %s5877_s14  ;;  %v462_v41 = vor.u32 %v461_v33, %v458_v32  ;;  %v473_v47 = vrot.slane %v472_v42, 4  ;;  %v4611_v32 = vrot.slane %v248_v59, 9  ;;  %v836_v33 = vrot.slane %v834_v23, 4 }
  0x6b   : > { %1178 = vrot.lane.b32.xlu1 %v4664_v7, %s5877_s14  ;;  %v6257_v59 = vcombine.low %v6220_v17, %v252_v19  ;;  %v537_v17 = vshll.u32 %v6268_v8, 16 }
  0x6c   : > { %v463_v45 = vrot.slane %v462_v41, 4  ;;  %v478_v56 = vsel %vm6032_vm5, %v473_v47, %v477_v49  ;;  %v523_v41 = vshll.u32 %v253_v31, 16  ;;  %v835_v43 = vsel %vm5991_vm4, %v4611_v32, %v834_v23 }
  0x6d   : > { %v520_v47 = vor.u32 %v519_v40, %v515_v39  ;;  %v539_v26 = vrot.slane %v537_v17, 5 }
  0x6e   : > { %1215 = vrot.lane.b32.xlu0 %v6142_v46, %s5875_s10  ;;  %v468_v55 = vsel %vm6032_vm5, %v463_v45, %v467_v12  ;;  %v506_v12 = vrot.slane %v504_v25, 4  ;;  %v256_v25 = vld [vmem:[%s5969_s9 + $0x80] sm:$0x1] }
  0x6f   : > { %1217 = vrot.lane.b32.xlu1 %v6178_v28, %s5875_s10  ;;  %v4648_v61 = vcombine.low %v468_v55, %v478_v56  ;;  %v547_v30 = vshll.u32 %v256_v25, 16  ;;  %v544_v32 = vor.u32 %v543_v1, %v539_v26 }
  0x70   : > { %v510_v45 = vor.u32 %v509_v36, %v506_v12  ;;  %v848_v12 = vrot.slane %v6268_v8, 5 }
  0x72   : > { %1254 = vrot.lane.b32.xlu0 %v4646_v57, %s5879_s6  ;;  %v829_v57 = vrot.slane %v827_v51, 4  ;;  %v525_v51 = vrot.slane %v523_v41, 5  ;;  %v511_v56 = vrot.slane %v510_v45, 4 }
  0x73   : > { %1256 = vrot.lane.b32.xlu1 %v4647_v38, %s5879_s6 }
  0x76   : > { %1293 = vrot.lane.b32.xlu0 %v4664_v7, %s5876_s11  ;;  %v831_v7 = vsel %vm5991_vm4, %v829_v57, %v830_v58  ;;  %v521_v57 = vrot.slane %v520_v47, 4 }
  0x77   : > { %1295 = vrot.lane.b32.xlu1 %v4665_v44, %s5876_s11  ;;  %v4666_v11 = vcombine.low %v828_v2, %v831_v7  ;;  %v844_v2 = vrot.slane %v253_v31, 5  ;;  %v6265_v7 = vld [vmem:[%s5969_s9 + $0x78] sm:$0xf] }
  0x78   : > { %v526_v62 = vsel %vm6032_vm5, %v521_v57, %v525_v51  ;;  %v528_v14 = vshrl.u32 %v6265_v7, 16  ;;  %v531_v15 = vshll.u32 %v6265_v7, 16  ;;  %v6322_v18 = vcombine.low %v6265_v7, %v6268_v8 }
  0x79   : > { %v845_v0 = vsel %vm5991_vm4, %v843_v63, %v844_v2  ;;  %v4613_v21 = vrot.slane %v6265_v7, 9  ;;  %v259_v7 = vld [vmem:[%s5969_s9 + $0x8c] sm:$0x1] }
  0x7a   : > { %1332 = vrot.lane.b32.xlu0 %v6178_v28, %s5880_s7  ;;  %v6289_v20 = vcombine.low %v842_v16, %v845_v0  ;;  %v530_v22 = vrot.slane %v528_v14, 4  ;;  %v533_v23 = vrot.slane %v531_v15, 5 }
  0x7b   : > { %1334 = vrot.lane.b32.xlu1 %v6199_v52, %s5880_s7  ;;  %v849_v15 = vsel %vm5991_vm4, %v4613_v21, %v848_v12 }
  0x7c   : > { %v534_v29 = vor.u32 %v533_v23, %v530_v22 }
  0x7e   : > { %1371 = vrot.lane.b32.xlu0 %v4647_v38, %s5881_s8  ;;  %v535_v36 = vrot.slane %v534_v29, 4 }
  0x7f   : > { %1373 = vrot.lane.b32.xlu1 %v4648_v61, %s5881_s8 }
  0x80   : > { %v540_v54 = vsel %vm6032_vm5, %v535_v36, %v539_v26 }
  0x82   : > { %1410 = vrot.lane.b32.xlu0 %v4665_v44, %s5882_s12 }
  0x83   : > { %1412 = vrot.lane.b32.xlu1 %v4666_v11, %s5882_s12 }
  0x86   : > { %1090 = vrot.lane.b32.xlu0 %v4647_v38, %s5878_s15  ;;  %v502_v38 = vsel %vm6032_vm5, %v497_v3, %v501_v24 }
  0x87   : > { %1092 = vrot.lane.b32.xlu1 %v4648_v61, %s5878_s15  ;;  %v4649_v42 = vcombine.low %v492_v37, %v502_v38  ;;  %v549_v37 = vrot.slane %v547_v30, 5 }
  0x8a   : > { %1180 = vrot.lane.b32.xlu0 %v4665_v44, %s5877_s14  ;;  %v838_v44 = vsel %vm5991_vm4, %v836_v33, %v837_v34  ;;  %v6299_v33 = vld [vmem:[%s5969_s9 + $0x84] sm:$0xf]  ;;  %v6302_v34 = vld [vmem:[%s5969_s9 + $0x88] sm:$0xf] }
  0x8b   : > { %1182 = vrot.lane.b32.xlu1 %v4666_v11, %s5877_s14  ;;  %v6247_v49 = vcombine.low %v835_v43, %v838_v44  ;;  %v552_v38 = vshrl.u32 %v6299_v33, 16  ;;  %v545_v43 = vrot.slane %v544_v32, 4  ;;  %v561_v44 = vshll.u32 %v6302_v34, 16 }
  0x8c   : > { %v855_v26 = vrot.slane %v6302_v34, 5 }
  0x8e   : > { %1219 = vrot.lane.b32.xlu0 %v6199_v52, %s5875_s10 }
  0x8f   : > { %1221 = vrot.lane.b32.xlu1 %v6231_v35, %s5875_s10 }
  0x91   : > { %v6251_v58 = vpop.permute.xlu1 %1209 }
  0x92   : > { %1258 = vrot.lane.b32.xlu0 %v4648_v61, %s5879_s6  ;;  %v6249_v55 = vpop.permute.xlu0 %1207  ;;  %v516_v61 = vsel %vm6032_vm5, %v511_v56, %v515_v39  ;;  %v555_v39 = vshll.u32 %v6299_v33, 16  ;;  %v554_v56 = vrot.slane %v552_v38, 4  ;;  %v4614_v38 = vrot.slane %v6299_v33, 9 }
  0x93   : > { %1260 = vrot.lane.b32.xlu1 %v4649_v42, %s5879_s6  ;;  %v6276_v5 = vcombine.low %v516_v61, %v526_v62  ;;  %v563_v61 = vrot.slane %v561_v44, 5 }
  0x94   : > { %v557_v60 = vrot.slane %v555_v39, 5  ;;  %v858_v39 = vrot.slane %v259_v7, 5 }
  0x96   : > { %1297 = vrot.lane.b32.xlu0 %v4666_v11, %s5876_s11  ;;  %v558_v6 = vor.u32 %v557_v60, %v554_v56 }
  0x97   : > { %1299 = vrot.lane.b32.xlu1 %v6247_v49, %s5876_s11 }
  0x98   : > { %v6272_v9 = vpop.permute.xlu0 %1285 }
  0x9a   : > { %1336 = vrot.lane.b32.xlu0 %v6231_v35, %s5880_s7 }
  0x9b   : > { %1338 = vrot.lane.b32.xlu1 %v6257_v59, %s5880_s7  ;;  %v1169_v11 = vpop.permute.xlu1 %1168 }
  0x9e   : > { %1375 = vrot.lane.b32.xlu0 %v4649_v42, %s5881_s8 }
  0x9f   : > { %1377 = vrot.lane.b32.xlu1 %v6276_v5, %s5881_s8  ;;  %v1171_v19 = vpop.permute.xlu1 %1170 }
  0xa0   : > { %v1079_v24 = vpop.permute.xlu0 %1078 }
  0xa1   : > { %v1441_v40 = vsel %vm1438_vm7, %v4623_v50, %v1079_v24  ;;  %v851_v50 = vrot.slane %v256_v25, 5 }
  0xa2   : > { %1414 = vrot.lane.b32.xlu0 %v6247_v49, %s5882_s12  ;;  %v1495_v51 = vsel %vm1493_vm8, %v1441_v40, %v1169_v11 }
  0xa3   : > { %1416 = vrot.lane.b32.xlu1 %v6289_v20, %s5882_s12  ;;  %v6296_v3 = vpop.permute.xlu1 %1287  ;;  %v1532_v8 = vsel %vm1530_vm9, %v1495_v51, %v6249_v55  ;;  %v856_v51 = vsel %vm5991_vm4, %v4614_v38, %v855_v26 }
  0xa4   : > { %v1081_v31 = vpop.permute.xlu0 %1080 }
  0xa5   : > { %v1444_v47 = vsel %vm1438_vm7, %v5986_v10, %v1081_v31  ;;  %v850_v10 = vrot.slane %v848_v12, 4 }
  0xa6   : > { %1094 = vrot.lane.b32.xlu0 %v4649_v42, %s5878_s15  ;;  %v565_v42 = vshrl.u32 %v6302_v34, 16  ;;  %v1497_v63 = vsel %vm1493_vm8, %v1444_v47, %v1171_v19  ;;  %v571_v19 = vshll.u32 %v259_v7, 16 }
  0xa7   : > { %1096 = vrot.lane.b32.xlu1 %v6276_v5, %s5878_s15  ;;  %v852_v16 = vsel %vm5991_vm4, %v850_v10, %v851_v50  ;;  %v1534_v55 = vsel %vm1530_vm9, %v1497_v63, %v6251_v58  ;;  %v262_v63 = vld [vmem:[%s5969_s9 + $0x98] sm:$0x1] }
  0xa8   : > { %v1247_v41 = vpop.permute.xlu0 %1246  ;;  %v567_v62 = vrot.slane %v565_v42, 4  ;;  %v6357_v58 = vcombine.low %v849_v15, %v852_v16  ;;  %v573_v31 = vrot.slane %v571_v19, 5  ;;  %v6383_v42 = vld [vmem:[%s5969_s9 + $0x90] sm:$0xf]  ;;  %v595_v15 = vshll.u32 %v262_v63, 16 }
  0xa9   : > { %v1249_v45 = vpop.permute.xlu1 %1248  ;;  %v1569_v11 = vsel %vm1567_vm10, %v1532_v8, %v1247_v41  ;;  %v576_v47 = vshrl.u32 %v6383_v42, 16  ;;  %v579_v21 = vshll.u32 %v6383_v42, 16 }
  0xaa   : > { %1184 = vrot.lane.b32.xlu0 %v6247_v49, %s5877_s14  ;;  %v550_v49 = vsel %vm6032_vm5, %v545_v43, %v549_v37  ;;  %v568_v17 = vor.u32 %v567_v62, %v563_v61  ;;  %v1606_v23 = vsel %vm1604_vm11, %v1569_v11, %v6272_v9  ;;  %v1571_v24 = vsel %vm1567_vm10, %v1534_v55, %v1249_v45  ;;  %v6389_v45 = vld [vmem:[%s5969_s9 + $0x94] sm:$0xf] }
  0xab   : > { %1186 = vrot.lane.b32.xlu1 %v6289_v20, %s5877_s14  ;;  %v6341_v14 = vcombine.low %v540_v54, %v550_v49  ;;  %v559_v9 = vrot.slane %v558_v6, 4  ;;  %v1608_v12 = vsel %vm1604_vm11, %v1571_v24, %v6296_v3  ;;  %v6374_v37 = vcombine.low %v6299_v33, %v6302_v34 }
  0xac   : > { %v1325_v57 = vpop.permute.xlu0 %1324  ;;  %v569_v30 = vrot.slane %v568_v17, 4  ;;  %v857_v43 = vrot.slane %v855_v26, 4  ;;  %v589_v10 = vshrl.u32 %v6389_v45, 16  ;;  %v585_v56 = vshll.u32 %v6389_v45, 16  ;;  %v6421_v17 = vld [vmem:[%s5969_s9 + $0xa0] sm:$0xf] }
  0xad   : > { %v1327_v2 = vpop.permute.xlu1 %1326  ;;  %v1643_v25 = vsel %vm1641_vm12, %v1606_v23, %v1325_v57  ;;  %v578_v60 = vrot.slane %v576_v47, 4  ;;  %v862_v19 = vrot.slane %v6389_v45, 5  ;;  %v597_v23 = vrot.slane %v595_v15, 5 }
  0xae   : > { %1223 = vrot.lane.b32.xlu0 %v6257_v59, %s5875_s10  ;;  %v1645_v36 = vsel %vm1641_vm12, %v1608_v12, %v1327_v2  ;;  %v574_v41 = vsel %vm6032_vm5, %v569_v30, %v573_v31  ;;  %v859_v54 = vsel %vm5991_vm4, %v857_v43, %v858_v39  ;;  %v587_v2 = vrot.slane %v585_v56, 5 }
  0xaf   : > { %1225 = vrot.lane.b32.xlu1 %v6322_v18, %s5875_s10  ;;  %v6410_v49 = vcombine.low %v856_v51, %v859_v54  ;;  %v591_v7 = vrot.slane %v589_v10, 4  ;;  %v864_v31 = vrot.slane %v862_v19, 4  ;;  %v6439_v12 = vcombine.low %v6383_v42, %v6389_v45 }
  0xb0   : > { %v1364_v0 = vpop.permute.xlu0 %1363 }
  0xb1   : > { %v1366_v22 = vpop.permute.xlu1 %1365  ;;  %v1680_v1 = vsel %vm1678_vm13, %v1643_v25, %v1364_v0  ;;  %v592_v55 = vor.u32 %v591_v7, %v587_v2  ;;  %v6418_v0 = vld [vmem:[%s5969_s9 + $0x9c] sm:$0xf] }
  0xb2   : > { %1262 = vrot.lane.b32.xlu0 %v6276_v5, %s5879_s6  ;;  %v1682_v3 = vsel %vm1678_vm13, %v1645_v36, %v1366_v22  ;;  %v600_v24 = vshrl.u32 %v6418_v0, 16 }
  0xb3   : > { %1264 = vrot.lane.b32.xlu1 %v6341_v14, %s5879_s6  ;;  %v593_v26 = vrot.slane %v592_v55, 4 }
  0xb4   : > { %v1403_v29 = vpop.permute.xlu0 %1402  ;;  %v602_v38 = vrot.slane %v600_v24, 4  ;;  %v6494_v24 = vcombine.low %v6418_v0, %v6421_v17 }
  0xb5   : > { %v6361_v5 = vpop.permute.xlu1 %1082  ;;  %v1717_v32 = vsel %vm1715_vm14, %v1680_v1, %v1403_v29  ;;  %v603_v1 = vshll.u32 %v6418_v0, 16  ;;  %v613_v29 = vshrl.u32 %v6421_v17, 16 }
  0xb6   : > { %1301 = vrot.lane.b32.xlu0 %v6289_v20, %s5876_s11  ;;  %5450 = vmatprep.mubr.msk.bf16.mxu0 %vm1795_vm15, %v1717_v32  ;;  %v564_v20 = vsel %vm6032_vm5, %v559_v9, %v563_v61  ;;  %v581_v61 = vrot.slane %v579_v21, 5  ;;  %v609_v9 = vshll.u32 %v6421_v17, 16  ;;  %v865_v32 = vrot.slane %v262_v63, 5 }
  0xb7   : > { %1303 = vrot.lane.b32.xlu1 %v6357_v58, %s5876_s11  ;;  %v6396_v33 = vcombine.low %v564_v20, %v574_v41  ;;  %v615_v41 = vrot.slane %v613_v29, 4 }
  0xb8   : > { %v1405_v40 = vpop.permute.xlu0 %1404  ;;  %v582_v11 = vor.u32 %v581_v61, %v578_v60  ;;  %v611_v20 = vrot.slane %v609_v9, 5  ;;  %v866_v45 = vsel %vm5991_vm4, %v864_v31, %v865_v32  ;;  %v267_v31 = vld [vmem:[%s5969_s9 + $0xac] sm:$0xf] }
  0xb9   : > { %v6385_v44 = vpop.permute.xlu1 %1084  ;;  %v1719_v34 = vsel %vm1715_vm14, %v1682_v3, %v1405_v40  ;;  %v598_v3 = vsel %vm6032_vm5, %v593_v26, %v597_v23  ;;  %v605_v40 = vrot.slane %v603_v1, 5 }
  0xba   : > { %1340 = vrot.lane.b32.xlu0 %v6322_v18, %s5880_s7  ;;  %5451 = vmatmul.mubr.msk.bf16.vlgmr.msra.gmra.mrb[0].mxu0 %vm1795_vm15, %v1719_v34  ;;  %v583_v22 = vrot.slane %v582_v11, 4  ;;  %v1447_v34 = vsel %vm1438_vm7, %v5981_v4, %v6361_v5  ;;  %v1450_v47 = vsel %vm1438_vm7, %v6093_v48, %v6385_v44  ;;  %v616_v60 = vor.u32 %v615_v41, %v611_v20 }
  0xbb   : > { %1342 = vrot.lane.b32.xlu1 %v6374_v37, %s5880_s7  ;;  %v606_v56 = vor.u32 %v605_v40, %v602_v38 }
  0xbc   : > { %v1173_v50 = vpop.permute.xlu0 %1172  ;;  %v588_v36 = vsel %vm6032_vm5, %v583_v22, %v587_v2 }
  0xbd   : > { %v1175_v57 = vpop.permute.xlu1 %1174  ;;  %v1499_v21 = vsel %vm1493_vm8, %v1447_v34, %v1173_v50  ;;  %v6463_v51 = vcombine.low %v588_v36, %v598_v3  ;;  %v607_v55 = vrot.slane %v606_v56, 4  ;;  %v637_v3 = vshrl.u32 %v267_v31, 16  ;;  %v6534_v56 = vld [vmem:[%s5969_s9 + $0xb4] sm:$0xf] }
  0xbe   : > { %1379 = vrot.lane.b32.xlu0 %v6341_v14, %s5881_s8  ;;  %v1501_v5 = vsel %vm1493_vm8, %v1450_v47, %v1175_v57 }
  0xbf   : > { %1381 = vrot.lane.b32.xlu1 %v6396_v33, %s5881_s8  ;;  %v612_v1 = vsel %vm6032_vm5, %v607_v55, %v611_v20  ;;  %v639_v47 = vrot.slane %v637_v3, 4 }
  0xc0   : > { %v1212_v62 = vpop.permute.xlu0 %1211 }
  0xc1   : > { %v1214_v8 = vpop.permute.xlu1 %1213  ;;  %v1536_v54 = vsel %vm1530_vm9, %v1499_v21, %v1212_v62 }
  0xc2   : > { %1418 = vrot.lane.b32.xlu0 %v6357_v58, %s5882_s12  ;;  %v1538_v61 = vsel %vm1530_vm9, %v1501_v5, %v1214_v8  ;;  %v869_v8 = vrot.slane %v6421_v17, 5 }
  0xc3   : > { %1420 = vrot.lane.b32.xlu1 %v6410_v49, %s5882_s12 }
  0xc4   : > { %v1251_v16 = vpop.permute.xlu0 %1250  ;;  %v871_v29 = vrot.slane %v869_v8, 4 }
  0xc5   : > { %v1253_v6 = vpop.permute.xlu1 %1252  ;;  %v1573_v48 = vsel %vm1567_vm10, %v1536_v54, %v1251_v16 }
  0xc6   : > { %1098 = vrot.lane.b32.xlu0 %v6341_v14, %s5878_s15  ;;  %v4615_v14 = vrot.slane %v6383_v42, 9  ;;  %v1575_v50 = vsel %vm1567_vm10, %v1538_v61, %v1253_v6  ;;  %v617_v6 = vrot.slane %v616_v60, 4  ;;  %v6537_v61 = vld [vmem:[%s5969_s9 + $0xb8] sm:$0xf] }
  0xc7   : > { %1100 = vrot.lane.b32.xlu1 %v6396_v33, %s5878_s15 }
  0xc8   : > { %v1290_v25 = vpop.permute.xlu0 %1289  ;;  %v863_v42 = vsel %vm5991_vm4, %v4615_v14, %v862_v19 }
  0xc9   : > { %v1292_v30 = vpop.permute.xlu1 %1291  ;;  %v1610_v63 = vsel %vm1604_vm11, %v1573_v48, %v1290_v25  ;;  %v6474_v2 = vcombine.low %v863_v42, %v866_v45  ;;  %v4616_v25 = vrot.slane %v6418_v0, 9  ;;  %v268_v42 = vld [vmem:[%s5969_s9 + $0xb0] sm:$0x1]  ;;  %v876_v48 = vrot.slane %v267_v31, 5 }
  0xca   : > { %1188 = vrot.lane.b32.xlu0 %v6357_v58, %s5877_s14  ;;  %v6446_v58 = vld [vmem:[%s5969_s9 + $0xa4] sm:$0x1]  ;;  %v1612_v57 = vsel %vm1604_vm11, %v1575_v50, %v1292_v30  ;;  %v6505_v30 = vld [vmem:[%s5969_s9 + $0xa8] sm:$0xf]  ;;  %v643_v5 = vshll.u32 %v268_v42, 16  ;;  %v879_v55 = vrot.slane %v268_v42, 5 }
  0xcb   : > { %1190 = vrot.lane.b32.xlu1 %v6410_v49, %s5877_s14  ;;  %v619_v4 = vshll.u32 %v6446_v58, 16  ;;  %v872_v9 = vrot.slane %v6446_v58, 5  ;;  %v624_v17 = vshrl.u32 %v6505_v30, 16  ;;  %v627_v32 = vshll.u32 %v6505_v30, 16 }
  0xcc   : > { %v1329_v39 = vpop.permute.xlu0 %1328  ;;  %v870_v38 = vsel %vm5991_vm4, %v4616_v25, %v869_v8  ;;  %v633_v58 = vshll.u32 %v267_v31, 16  ;;  %v645_v50 = vrot.slane %v643_v5, 5  ;;  %v661_v8 = vshrl.u32 %v6537_v61, 16  ;;  %v6560_v25 = vld [vmem:[%s5969_s9 + $0xbc] sm:$0x1] }
  0xcd   : > { %v1331_v43 = vpop.permute.xlu1 %1330  ;;  %v1647_v62 = vsel %vm1641_vm12, %v1610_v63, %v1329_v39  ;;  %v621_v7 = vrot.slane %v619_v4, 5  ;;  %v873_v39 = vsel %vm5991_vm4, %v871_v29, %v872_v9  ;;  %v626_v41 = vrot.slane %v624_v17, 4 }
  0xce   : > { %1227 = vrot.lane.b32.xlu0 %v6374_v37, %s5875_s10  ;;  %v1649_v11 = vsel %vm1641_vm12, %v1612_v57, %v1331_v43  ;;  %v6526_v20 = vcombine.low %v870_v38, %v873_v39  ;;  %v629_v43 = vrot.slane %v627_v32, 5  ;;  %v635_v45 = vrot.slane %v633_v58, 5 }
  0xcf   : > { %1229 = vrot.lane.b32.xlu1 %v6439_v12, %s5875_s10  ;;  %v648_v63 = vshrl.u32 %v6534_v56, 16 }
  0xd0   : > { %v1368_v10 = vpop.permute.xlu0 %1367  ;;  %v630_v4 = vor.u32 %v629_v43, %v626_v41 }
  0xd1   : > { %v1370_v44 = vpop.permute.xlu1 %1369  ;;  %v1684_v15 = vsel %vm1678_vm13, %v1647_v62, %v1368_v10  ;;  %v640_v10 = vor.u32 %v639_v47, %v635_v45 }
  0xd2   : > { %1266 = vrot.lane.b32.xlu0 %v6396_v33, %s5879_s6  ;;  %v1686_v33 = vsel %vm1678_vm13, %v1649_v11, %v1370_v44  ;;  %v631_v44 = vrot.slane %v630_v4, 4  ;;  %v657_v11 = vshll.u32 %v6537_v61, 16 }
  0xd3   : > { %1268 = vrot.lane.b32.xlu1 %v6463_v51, %s5879_s6  ;;  %v641_v62 = vrot.slane %v640_v10, 4 }
  0xd4   : > { %v1407_v16 = vpop.permute.xlu0 %1406 }
  0xd5   : > { %v1409_v19 = vpop.permute.xlu1 %1408  ;;  %v1721_v22 = vsel %vm1715_vm14, %v1684_v15, %v1407_v16  ;;  %v878_v16 = vrot.slane %v876_v48, 4 }
  0xd6   : > { %v1723_v23 = vsel %vm1715_vm14, %v1686_v33, %v1409_v19  ;;  %1305 = vrot.lane.b32.xlu0 %v6410_v49, %s5876_s11  ;;  %5454 = vmatprep.mubr.msk.bf16.mxu0 %vm1795_vm15, %v1721_v22  ;;  %v622_v49 = vsel %vm6032_vm5, %v617_v6, %v621_v7  ;;  %v651_v7 = vshll.u32 %v6534_v56, 16  ;;  %v6553_v6 = vcombine.low %v6505_v30, %v267_v31 }
  0xd7   : > { %1307 = vrot.lane.b32.xlu1 %v6474_v2, %s5876_s11  ;;  %5455 = vmatmul.mubr.msk.bf16.gmra.mrb[4].mxu0 %vm1795_vm15, %v1723_v23  ;;  %v6514_v0 = vcombine.low %v612_v1, %v622_v49  ;;  %v636_v33 = vsel %vm6032_vm5, %v631_v44, %v635_v45  ;;  %v650_v19 = vrot.slane %v648_v63, 4  ;;  %v646_v23 = vsel %vm6032_vm5, %v641_v62, %v645_v50 }
  0xd8   : > { %v6497_v26 = vpop.permute.xlu0 %1086  ;;  %v659_v1 = vrot.slane %v657_v11, 5  ;;  %v663_v49 = vrot.slane %v661_v8, 4  ;;  %v880_v31 = vsel %vm5991_vm4, %v878_v16, %v879_v55  ;;  %v6577_v38 = vcombine.low %v636_v33, %v646_v23  ;;  %v6624_v16 = vld [vmem:[%s5969_s9 + $0xc4] sm:$0xf] }
  0xd9   : > { %v6507_v14 = vpop.permute.xlu1 %1088  ;;  %v1453_v9 = vsel %vm1438_vm7, %v6122_v27, %v6497_v26  ;;  %v667_v27 = vshll.u32 %v6560_v25, 16  ;;  %v6608_v63 = vcombine.low %v6534_v56, %v6537_v61  ;;  %v886_v11 = vrot.slane %v6560_v25, 5 }
  0xda   : > { %1344 = vrot.lane.b32.xlu0 %v6439_v12, %s5880_s7  ;;  %v1456_v17 = vsel %vm1438_vm7, %v6142_v46, %v6507_v14  ;;  %v664_v41 = vor.u32 %v663_v49, %v659_v1  ;;  %v685_v23 = vshrl.u32 %v6624_v16, 16  ;;  %v681_v25 = vshll.u32 %v6624_v16, 16  ;;  %v5611_v49 = vld [vmem:[%s8314_s3] sm:$0xff]  }
  0xdb   : > { %1346 = vrot.lane.b32.xlu1 %v6494_v24, %s5880_s7  ;;  %v669_v47 = vrot.slane %v667_v27, 5  ;;  %v5612_v27 = vld [vmem:[%s8314_s3 + $0x48] sm:$0xff]  }
  0xdc   : > { %v1177_v36 = vpop.permute.xlu0 %1176 }
  0xdd   : > { %v1179_v40 = vpop.permute.xlu1 %1178  ;;  %v1503_v32 = vsel %vm1493_vm8, %v1453_v9, %v1177_v36 }
  0xde   : > { %1383 = vrot.lane.b32.xlu0 %v6463_v51, %s5881_s8  ;;  %v1505_v26 = vsel %vm1493_vm8, %v1456_v17, %v1179_v40  ;;  %v6658_v17 = vrot.slane %v681_v25, 5  ;;  %v5618_v25 = vld [vmem:[%s8314_s3 + $0x60] sm:$0xff]  }
  0xdf   : > { %1385 = vrot.lane.b32.xlu1 %v6514_v0, %s5881_s8 }
  0xe0   : > { %v1216_v34 = vpop.permute.xlu0 %1215 }
  0xe1   : > { %v1218_v21 = vpop.permute.xlu1 %1217  ;;  %v1540_v39 = vsel %vm1530_vm9, %v1503_v32, %v1216_v34  ;;  %v687_v32 = vrot.slane %v685_v23, 4 }
  0xe2   : > { %1422 = vrot.lane.b32.xlu0 %v6474_v2, %s5882_s12  ;;  %v1542_v43 = vsel %vm1530_vm9, %v1505_v26, %v1218_v21  ;;  %v883_v21 = vrot.slane %v6537_v61, 5 }
  0xe3   : > { %1424 = vrot.lane.b32.xlu1 %v6526_v20, %s5882_s12 }
  0xe4   : > { %v1255_v54 = vpop.permute.xlu0 %1254  ;;  %v885_v8 = vrot.slane %v883_v21, 4 }
  0xe5   : > { %v1257_v60 = vpop.permute.xlu1 %1256  ;;  %v1577_v46 = vsel %vm1567_vm10, %v1540_v39, %v1255_v54  ;;  %v274_v39 = vld [vmem:[%s5969_s9 + $0xc8] sm:$0x1] }
  0xe6   : > { %1102 = vrot.lane.b32.xlu0 %v6463_v51, %s5878_s15  ;;  %v4617_v51 = vrot.slane %v6505_v30, 9  ;;  %v1579_v36 = vsel %vm1567_vm10, %v1542_v43, %v1257_v60  ;;  %v665_v60 = vrot.slane %v664_v41, 4 }
  0xe7   : > { %1104 = vrot.lane.b32.xlu1 %v6514_v0, %s5878_s15 }
  0xe8   : > { %v1294_v57 = vpop.permute.xlu0 %1293  ;;  %v877_v30 = vsel %vm5991_vm4, %v4617_v51, %v876_v48 }
  0xe9   : > { %v1296_v15 = vpop.permute.xlu1 %1295  ;;  %v1614_v42 = vsel %vm1604_vm11, %v1577_v46, %v1294_v57  ;;  %v6588_v45 = vcombine.low %v877_v30, %v880_v31  ;;  %v4618_v57 = vrot.slane %v6534_v56, 9  ;;  %v688_v46 = vor.u32 %v687_v32, %v6658_v17 }
  0xea   : > { %1192 = vrot.lane.b32.xlu0 %v6474_v2, %s5877_s14  ;;  %v653_v2 = vrot.slane %v651_v7, 5  ;;  %v1616_v40 = vsel %vm1604_vm11, %v1579_v36, %v1296_v15  ;;  %v6619_v15 = vld [vmem:[%s5969_s9 + $0xc0] sm:$0xf]  ;;  %v5614_v36 = vld [vmem:[%s8314_s3 + $0x50] sm:$0xff]  }
  0xeb   : > { %1194 = vrot.lane.b32.xlu1 %v6526_v20, %s5877_s14  ;;  %v672_v61 = vshrl.u32 %v6619_v15, 16  ;;  %v675_v55 = vshll.u32 %v6619_v15, 16 }
  0xec   : > { %v1333_v22 = vpop.permute.xlu0 %1332  ;;  %v654_v58 = vor.u32 %v653_v2, %v650_v19  ;;  %v884_v19 = vsel %vm5991_vm4, %v4618_v57, %v883_v21  ;;  %v5610_v2 = vld [vmem:[%s8314_s3 + $0x40] sm:$0xff]   ;;  %v5615_v21 = vld [vmem:[%s8314_s3 + $0x10] sm:$0xff]  }
  0xed   : > { %v1335_v29 = vpop.permute.xlu1 %1334  ;;  %v1651_v34 = vsel %vm1641_vm12, %v1614_v42, %v1333_v22  ;;  %v887_v22 = vsel %vm5991_vm4, %v885_v8, %v886_v11  ;;  %4968 = vmatprep.subr.bf16.mxu1 %v5610_v2  ;;  %v674_v9 = vrot.slane %v672_v61, 4  ;;  %v677_v30 = vrot.slane %v675_v55, 5 }
  0xee   : > { %1231 = vrot.lane.b32.xlu0 %v6494_v24, %s5875_s10  ;;  %v1653_v4 = vsel %vm1641_vm12, %v1616_v40, %v1335_v29  ;;  %v655_v10 = vrot.slane %v654_v58, 4  ;;  %v6654_v29 = vcombine.low %v884_v19, %v887_v22  ;;  %4969 = vmatpush3.bf16.msra.mxu1 %v5611_v49  ;;  %v6672_v58 = vld [vmem:[%s5969_s9 + $0xcc] sm:$0xf]  ;;  %v6681_v40 = vld [vmem:[%s5969_s9 + $0xd0] sm:$0xf]  ;;  %v893_v11 = vrot.slane %v274_v39, 5 }
  0xef   : > { %1233 = vrot.lane.b32.xlu1 %v6553_v6, %s5875_s10  ;;  %4970 = vmatprep.subr.bf16.mxu1 %v5612_v27  ;;  %v678_v41 = vor.u32 %v677_v30, %v674_v9  ;;  %v6708_v61 = vcombine.low %v6619_v15, %v6624_v16  ;;  %v5619_v9 = vld [vmem:[%s8314_s3 + $0x20] sm:$0xff]  }
  0xf0   : > { %v1372_v3 = vpop.permute.xlu0 %1371  ;;  %v660_v7 = vsel %vm6032_vm5, %v655_v10, %v659_v1  ;;  %v689_v10 = vrot.slane %v688_v46, 4 }
  0xf1   : > { %v1374_v14 = vpop.permute.xlu1 %1373  ;;  %v1688_v5 = vsel %vm1678_vm13, %v1651_v34, %v1372_v3  ;;  %v5613_v3 = vld [vmem:[%s8314_s3 + $0x8] sm:$0xff]   ;;  %v696_v34 = vshrl.u32 %v6672_v58, 16 }
  0xf2   : > { %1270 = vrot.lane.b32.xlu0 %v6514_v0, %s5879_s6  ;;  %v1690_v0 = vsel %vm1678_vm13, %v1653_v4, %v1374_v14  ;;  %4971 = vmatpush3.bf16.msra.mxu1 %v5613_v3  ;;  %v691_v14 = vshll.u32 %v274_v39, 16  ;;  %v890_v4 = vrot.slane %v6624_v16, 5  ;;  %v6723_v16 = vld [vmem:[%s5969_s9 + $0xd4] sm:$0x1] }
  0xf3   : > { %1272 = vrot.lane.b32.xlu1 %v6577_v38, %s5879_s6  ;;  %4972 = vmatprep.subr.bf16.mxu1 %v5614_v36  ;;  %v698_v57 = vrot.slane %v696_v34, 4 }
  0xf4   : > { %v1411_v54 = vpop.permute.xlu0 %1410  ;;  %v892_v8 = vrot.slane %v890_v4, 4 }
  0xf5   : > { %v1413_v48 = vpop.permute.xlu1 %1412  ;;  %v1725_v44 = vsel %vm1715_vm14, %v1688_v5, %v1411_v54  ;;  %v679_v5 = vrot.slane %v678_v41, 4 }
  0xf6   : > { %v1727_v50 = vsel %vm1715_vm14, %v1690_v0, %v1413_v48  ;;  %1309 = vrot.lane.b32.xlu0 %v6526_v20, %s5876_s11  ;;  %5458 = vmatprep.mubr.msk.bf16.mxu0 %vm1795_vm15, %v1725_v44  ;;  %v670_v20 = vsel %vm6032_vm5, %v665_v60, %v669_v47  ;;  %v699_v47 = vshll.u32 %v6672_v58, 16  ;;  %v693_v60 = vrot.slane %v691_v14, 5  ;;  %v5616_v44 = vld [vmem:[%s8314_s3 + $0x58] sm:$0xff]  }
  0xf7   : > { %1311 = vrot.lane.b32.xlu1 %v6588_v45, %s5876_s11  ;;  %5459 = vmatmul.mubr.msk.bf16.gmra.mrb[8].mxu0 %vm1795_vm15, %v1727_v50  ;;  %v6630_v56 = vcombine.low %v660_v7, %v670_v20  ;;  %v709_v0 = vshrl.u32 %v6681_v40, 16  ;;  %v705_v48 = vshll.u32 %v6681_v40, 16  ;;  %v4619_v50 = vrot.slane %v6619_v15, 9  ;;  %v5617_v20 = vld [vmem:[%s8314_s3 + $0x18] sm:$0xff]  }
  0xf8   : > { %v6611_v62 = vpop.permute.xlu0 %1090  ;;  %4973 = vmatpush3.bf16.msra.mxu1 %v5615_v21  ;;  %v701_v7 = vrot.slane %v699_v47, 5  ;;  %v684_v19 = vsel %vm6032_vm5, %v679_v5, %v6658_v17  ;;  %v694_v22 = vsel %vm6032_vm5, %v689_v10, %v693_v60  ;;  %v894_v32 = vsel %vm5991_vm4, %v892_v8, %v893_v11 }
  0xf9   : > { %v6621_v51 = vpop.permute.xlu1 %1092  ;;  %4974 = vmatprep.subr.bf16.mxu1 %v5616_v44  ;;  %v711_v23 = vrot.slane %v709_v0, 4  ;;  %v891_v15 = vsel %vm5991_vm4, %v4619_v50, %v890_v4  ;;  %v1459_v17 = vsel %vm1438_vm7, %v6178_v28, %v6611_v62  ;;  %v897_v21 = vrot.slane %v6681_v40, 5 }
  0xfa   : > { %1348 = vrot.lane.b32.xlu0 %v6553_v6, %s5880_s7  ;;  %v702_v49 = vor.u32 %v701_v7, %v698_v57  ;;  %v1462_v30 = vsel %vm1438_vm7, %v6199_v52, %v6621_v51  ;;  %v6744_v52 = vcombine.low %v684_v19, %v694_v22  ;;  %v6757_v36 = vcombine.low %v891_v15, %v894_v32  ;;  %v5623_v57 = vld [vmem:[%s8314_s3 + $0x30] sm:$0xff]  }
  0xfb   : > { %1350 = vrot.lane.b32.xlu1 %v6608_v63, %s5880_s7  ;;  %v6794_v8 = vcombine.low %v6672_v58, %v6681_v40  ;;  %v4620_v19 = vrot.slane %v6672_v58, 9  ;;  %v900_v22 = vrot.slane %v6723_v16, 5  ;;  %v5624_v58 = vld [vmem:[%s8314_s3 + $0x78] sm:$0xff]  }
  0xfc   : > { %v6634_v33 = vpop.permute.xlu0 %1180  ;;  %4975 = vmatpush3.bf16.msra.mxu1 %v5617_v20 }
  0xfd   : > { %v6645_v1 = vpop.permute.xlu1 %1182  ;;  %4976 = vmatprep.subr.bf16.mxu1 %v5618_v25  ;;  %v1507_v39 = vsel %vm1493_vm8, %v1459_v17, %v6634_v33  ;;  %v5620_v33 = vld [vmem:[%s8314_s3 + $0x68] sm:$0xff]  }
  0xfe   : > { %1387 = vrot.lane.b32.xlu0 %v6577_v38, %s5881_s8  ;;  %v1509_v27 = vsel %vm1493_vm8, %v1462_v30, %v6645_v1  ;;  %v715_v1 = vshll.u32 %v6723_v16, 16  ;;  %v5625_v30 = vld [vmem:[%s8314_s3 + $0x38] sm:$0xff]  }
  0xff   : > { %1389 = vrot.lane.b32.xlu1 %v6630_v56, %s5881_s8 }
 0x100   : > { %v6656_v31 = vpop.permute.xlu0 %1219  ;;  %4977 = vmatpush3.bf16.msra.mxu1 %v5619_v9 }
 0x101   : > { %v6663_v26 = vpop.permute.xlu1 %1221  ;;  %v1544_v62 = vsel %vm1530_vm9, %v1507_v39, %v6656_v31  ;;  %v5621_v31 = vld [vmem:[%s8314_s3 + $0x28] sm:$0xff]   ;;  %4978 = vmatprep.subr.bf16.mxu1 %v5620_v33 }
 0x102   : > { %1426 = vrot.lane.b32.xlu0 %v6588_v45, %s5882_s12  ;;  %v1546_v28 = vsel %vm1530_vm9, %v1509_v27, %v6663_v26  ;;  %v703_v26 = vrot.slane %v702_v49, 4 }
 0x103   : > { %1428 = vrot.lane.b32.xlu1 %v6654_v29, %s5882_s12 }
 0x104   : > { %v1259_v43 = vpop.permute.xlu0 %1258  ;;  %4979 = vmatpush3.bf16.msra.mxu1 %v5621_v31  ;;  %v5626_v31 = vld [vmem:[%s8314_s3 + $0xc0] sm:$0xff]  }
 0x105   : > { %v1261_v42 = vpop.permute.xlu1 %1260  ;;  %v1581_v46 = vsel %vm1567_vm10, %v1544_v62, %v1259_v43  ;;  %5080 = vmatprep.subr.bf16.mxu0 %v5626_v31 }
 0x106   : > { %1106 = vrot.lane.b32.xlu0 %v6577_v38, %s5878_s15  ;;  %v1583_v41 = vsel %vm1567_vm10, %v1546_v28, %v1261_v42  ;;  %v5883_v42 = vmov 0  }
 0x107   : > { %1108 = vrot.lane.b32.xlu1 %v6630_v56, %s5878_s15  ;;  %v2106_v4 = vrot.slane %v5883_v42, 7 }
 0x108   : > { %v1298_v54 = vpop.permute.xlu0 %1297 }
 0x109   : > { %v1300_v38 = vpop.permute.xlu1 %1299  ;;  %v1618_v47 = vsel %vm1604_vm11, %v1581_v46, %v1298_v54  ;;  %v6786_v7 = vsel %vm6772_vm2, 0, %v2106_v4  ;;  %v6810_v40 = vsel %vm6772_vm2, %v2106_v4, 0  ;;  %v280_v4 = vld [vmem:[%s5969_s9 + $0xe0] sm:$0x1] }
 0x10a   : > { %1196 = vrot.lane.b32.xlu0 %v6588_v45, %s5877_s14  ;;  %v6715_v45 = vrot.slane %v705_v48, 5  ;;  %v1620_v34 = vsel %vm1604_vm11, %v1583_v41, %v1300_v38  ;;  %v5622_v48 = vld [vmem:[%s8314_s3 + $0x70] sm:$0xff]   ;;  %8333 = vst [vmem:[#allocation5_spill] sm:$0xff] %v6786_v7  ;;  %v2306_v15 = vshrl.u32 %v6786_v7, 16  ;;  %v2313_v49 = vshll.u32 %v6810_v40, 16 }
 0x10b   : > { %1198 = vrot.lane.b32.xlu1 %v6654_v29, %s5877_s14  ;;  %4980 = vmatprep.subr.bf16.mxu1 %v5622_v48  ;;  %v5629_v48 = vld [vmem:[%s8314_s3 + $0x88] sm:$0xff]  }
 0x10c   : > { %v1337_v55 = vpop.permute.xlu0 %1336  ;;  %v712_v3 = vor.u32 %v711_v23, %v6715_v45  ;;  %v708_v11 = vsel %vm6032_vm5, %v703_v26, %v6715_v45  ;;  %v6806_v23 = vld [vmem:[%s5969_s9 + $0xd8] sm:$0xf]  ;;  %4981 = vmatpush3.bf16.msra.mxu1 %v5623_v57  ;;  %v2315_v39 = vrot.slane %v2313_v49, 1  ;;  %v6883_v57 = vld [vmem:[%s5969_s9 + $0xe8] sm:$0xf] }
 0x10d   : > { %v1339_v2 = vpop.permute.xlu1 %1338  ;;  %v1655_v43 = vsel %vm1641_vm12, %v1618_v47, %v1337_v55  ;;  %v2308_v55 = vshll.u32 %v6786_v7, 16  ;;  %v903_v17 = vshrl.u32 %v6806_v23, 16  ;;  %v906_v32 = vshll.u32 %v6806_v23, 16  ;;  %4982 = vmatprep.subr.bf16.mxu1 %v5624_v58 }
 0x10e   : > { %1235 = vrot.lane.b32.xlu0 %v6608_v63, %s5875_s10  ;;  %v1657_v5 = vsel %vm1641_vm12, %v1620_v34, %v1339_v2  ;;  %v713_v60 = vrot.slane %v712_v3, 4  ;;  %v6817_v2 = vld [vmem:[%s5969_s9 + $0xdc] sm:$0xf]  ;;  %v5627_v34 = vld [vmem:[%s8314_s3 + $0x80] sm:$0xff]  }
 0x10f   : > { %1237 = vrot.lane.b32.xlu1 %v6708_v61, %s5875_s10  ;;  %v2310_v16 = vrot.slane %v2308_v55, 1  ;;  %v916_v62 = vshrl.u32 %v6817_v2, 16  ;;  %v908_v26 = vrot.slane %v906_v32, 5  ;;  %5081 = vmatpush3.bf16.msra.mxu0 %v5627_v34  ;;  %v5630_v55 = vld [vmem:[%s8314_s3 + $0xd0] sm:$0xff]  }
 0x110   : > { %v1376_v51 = vpop.permute.xlu0 %1375  ;;  %4983 = vmatpush3.bf16.msra.mxu1 %v5625_v30  ;;  %v6904_v30 = vcombine.low %v6806_v23, %v6817_v2 }
 0x111   : > { %v1378_v14 = vpop.permute.xlu1 %1377  ;;  %v1692_v54 = vsel %vm1678_vm13, %v1655_v43, %v1376_v51  ;;  %v2311_v27 = vor.u32 %v2310_v16, %v2306_v15  ;;  %v912_v51 = vshll.u32 %v6817_v2, 16  ;;  %v918_v43 = vrot.slane %v916_v62, 4 }
 0x112   : > { %1274 = vrot.lane.b32.xlu0 %v6630_v56, %s5879_s6  ;;  %v717_v56 = vrot.slane %v715_v1, 5  ;;  %v1694_v44 = vsel %vm1678_vm13, %v1657_v5, %v1378_v14  ;;  %v898_v1 = vsel %vm5991_vm4, %v4620_v19, %v897_v21  ;;  %v905_v14 = vrot.slane %v903_v17, 4  ;;  %v5631_v19 = vld [vmem:[%s8314_s3 + $0x90] sm:$0xff]  }
 0x113   : > { %1276 = vrot.lane.b32.xlu1 %v6744_v52, %s5879_s6  ;;  %v6846_v41 = vsel %vm2304_vm3, %v2311_v27, %v2315_v39  ;;  %v950_v15 = vshrl.u32 %v6883_v57, 16  ;;  %v946_v16 = vshll.u32 %v6883_v57, 16  ;;  %v4621_v17 = vrot.slane %v6806_v23, 9  ;;  %v5632_v39 = vld [vmem:[%s8314_s3 + $0xd8] sm:$0xff]  }
 0x114   : > { %v1415_v10 = vpop.permute.xlu0 %1414  ;;  %v718_v45 = vsel %vm6032_vm5, %v713_v60, %v717_v56  ;;  %8334 = vst [vmem:[#allocation6_spill] sm:$0xff] %v6846_v41  ;;  %3263 = vmatprep.mubr.bf16.mxu1 %v6846_v41  ;;  %v922_v56 = vshll.u32 %v280_v4, 16  ;;  %v934_v27 = vrot.slane %v280_v4, 5  ;;  %v5633_v23 = vld [vmem:[%s8314_s3 + $0x98] sm:$0xff]  }
 0x115   : > { %v1417_v38 = vpop.permute.xlu1 %1416  ;;  %v1729_v50 = vsel %vm1715_vm14, %v1692_v54, %v1415_v10  ;;  %v6835_v28 = vcombine.low %v708_v11, %v718_v45  ;;  %3264 = vmatmul.mubr.bf16.vlgmr.msra.gmra.mrb[0].mxu1 %v6786_v7  ;;  %v909_v54 = vor.u32 %v908_v26, %v905_v14  ;;  %v5628_v10 = vld [vmem:[%s8314_s3 + $0xc8] sm:$0xff]   ;;  %v931_v11 = vrot.slane %v6817_v2, 5 }
 0x116   : > { %v1731_v20 = vsel %vm1715_vm14, %v1694_v44, %v1417_v38  ;;  %1313 = vrot.lane.b32.xlu0 %v6654_v29, %s5876_s11  ;;  %5462 = vmatprep.mubr.msk.bf16.mxu0 %vm1795_vm15, %v1729_v50  ;;  %v899_v29 = vrot.slane %v897_v21, 4  ;;  %v914_v21 = vrot.slane %v912_v51, 5  ;;  %v6880_v38 = vld [vmem:[%s5969_s9 + $0xe4] sm:$0xf]  ;;  %v6922_v14 = vrot.slane %v946_v16, 5 }
 0x117   : > { %1315 = vrot.lane.b32.xlu1 %v6757_v36, %s5876_s11  ;;  %5463 = vmatmul.mubr.msk.bf16.gmra.mrb[12].mxu0 %vm1795_vm15, %v1731_v20  ;;  %v910_v20 = vrot.slane %v909_v54, 4  ;;  %v937_v45 = vshrl.u32 %v6880_v38, 16  ;;  %v933_v32 = vrot.slane %v931_v11, 4  ;;  %v952_v26 = vrot.slane %v950_v15, 4  ;;  %v5634_v54 = vld [vmem:[%s8314_s3 + $0xe0] sm:$0xff]  }
 0x118   : > { %v6812_v25 = vpop.permute.xlu0 %1094  ;;  %v901_v33 = vsel %vm5991_vm4, %v899_v29, %v900_v22  ;;  %v919_v60 = vor.u32 %v918_v43, %v914_v21  ;;  %5082 = vmatprep.subr.bf16.mxu0 %v5628_v10  ;;  %v924_v22 = vrot.slane %v922_v56, 5  ;;  %v932_v43 = vsel %vm5991_vm4, %v4621_v17, %v931_v11  ;;  %v5635_v56 = vld [vmem:[%s8314_s3 + $0xa0] sm:$0xff]  }
 0x119   : > { %v6824_v9 = vpop.permute.xlu1 %1096  ;;  %v6861_v47 = vcombine.low %v898_v1, %v901_v33  ;;  %5083 = vmatpush3.bf16.msra.mxu0 %v5629_v48  ;;  %v915_v62 = vsel %vm6032_vm5, %v910_v20, %v914_v21  ;;  %v939_v51 = vrot.slane %v937_v45, 4  ;;  %v6920_v33 = vld [vmem:[%s5969_s9 + $0xec] sm:$0x1]  ;;  %v1465_v34 = vsel %vm1438_vm7, %v6231_v35, %v6812_v25 }
 0x11a   : > { %1352 = vrot.lane.b32.xlu0 %v6708_v61, %s5880_s7  ;;  %v920_v29 = vrot.slane %v919_v60, 4  ;;  %5084 = vmatprep.subr.bf16.mxu0 %v5630_v55  ;;  %v935_v4 = vsel %vm5991_vm4, %v933_v32, %v934_v27  ;;  %v1468_v10 = vsel %vm1438_vm7, %v6257_v59, %v6824_v9  ;;  %v956_v60 = vshll.u32 %v6920_v33, 16 }
 0x11b   : > { %1354 = vrot.lane.b32.xlu1 %v6794_v8, %s5880_s7  ;;  %v953_v9 = vor.u32 %v952_v26, %v6922_v14  ;;  %v965_v16 = vrot.slane %v6883_v57, 5  ;;  %v968_v26 = vrot.slane %v6920_v33, 5 }
 0x11c   : > { %v6839_v3 = vpop.permute.xlu0 %1184  ;;  %v958_v45 = vrot.slane %v956_v60, 5 }
 0x11d   : > { %v6848_v46 = vpop.permute.xlu1 %1186  ;;  %5085 = vmatpush3.bf16.msra.mxu0 %v5631_v19  ;;  %v1511_v35 = vsel %vm1493_vm8, %v1465_v34, %v6839_v3  ;;  %v954_v15 = vrot.slane %v953_v9, 4 }
 0x11e   : > { %1391 = vrot.lane.b32.xlu0 %v6744_v52, %s5881_s8  ;;  %5086 = vmatprep.subr.bf16.mxu0 %v5632_v39  ;;  %v1513_v48 = vsel %vm1493_vm8, %v1468_v10, %v6848_v46  ;;  %v4679_v46 = vcombine.low %v932_v43, %v935_v4  ;;  %v5638_v39 = vld [vmem:[%s8314_s3 + $0xf0] sm:$0xff]  }
 0x11f   : > { %1393 = vrot.lane.b32.xlu1 %v6835_v28, %s5881_s8 }
 0x120   : > { %v6863_v42 = vpop.permute.xlu0 %1223 }
 0x121   : > { %v6867_v5 = vpop.permute.xlu1 %1225  ;;  %5087 = vmatpush3.bf16.msra.mxu0 %v5633_v23  ;;  %v1548_v20 = vsel %vm1530_vm9, %v1511_v35, %v6863_v42  ;;  %v5636_v42 = vld [vmem:[%s8314_s3 + $0xe8] sm:$0xff]   ;;  %v4622_v23 = vrot.slane %v6880_v38, 9 }
 0x122   : > { %1430 = vrot.lane.b32.xlu0 %v6757_v36, %s5882_s12  ;;  %5088 = vmatprep.subr.bf16.mxu0 %v5634_v54  ;;  %v1550_v3 = vsel %vm1530_vm9, %v1513_v48, %v6867_v5 }
 0x123   : > { %1432 = vrot.lane.b32.xlu1 %v6861_v47, %s5882_s12  ;;  %v966_v33 = vsel %vm5991_vm4, %v4622_v23, %v965_v16 }
 0x124   : > { %v1263_v44 = vpop.permute.xlu0 %1262 }
 0x125   : > { %v1265_v50 = vpop.permute.xlu1 %1264  ;;  %v1585_v11 = vsel %vm1567_vm10, %v1548_v20, %v1263_v44  ;;  %5089 = vmatpush3.bf16.msra.mxu0 %v5635_v56 }
 0x126   : > { %1110 = vrot.lane.b32.xlu0 %v6744_v52, %s5878_s15  ;;  %v940_v52 = vshll.u32 %v6880_v38, 16  ;;  %v1587_v19 = vsel %vm1567_vm10, %v1550_v3, %v1265_v50  ;;  %v5637_v50 = vld [vmem:[%s8314_s3 + $0xa8] sm:$0xff]   ;;  %5090 = vmatprep.subr.bf16.mxu0 %v5636_v42 }
 0x127   : > { %1112 = vrot.lane.b32.xlu1 %v6835_v28, %s5878_s15  ;;  %s5815_s15 = sshll.u32 %s5884_s23, 4  ;;  %s5816_s15 = int_to_ptr.vmem [resolvable:$false] %s5815_s15 }
 0x128   : > { %v1302_v58 = vpop.permute.xlu0 %1301  ;;  %v942_v2 = vrot.slane %v940_v52, 5 }
 0x129   : > { %v1304_v49 = vpop.permute.xlu1 %1303  ;;  %5091 = vmatpush3.bf16.msra.mxu0 %v5637_v50 }
 0x12a   : > { %1200 = vrot.lane.b32.xlu0 %v6757_v36, %s5877_s14  ;;  %v925_v36 = vsel %vm6032_vm5, %v920_v29, %v924_v22  ;;  %v943_v25 = vor.u32 %v942_v2, %v939_v51  ;;  %v1622_v29 = vsel %vm1604_vm11, %v1585_v11, %v1302_v58  ;;  %v1624_v22 = vsel %vm1604_vm11, %v1587_v19, %v1304_v49 }
 0x12b   : > { %1202 = vrot.lane.b32.xlu1 %v6861_v47, %s5877_s14  ;;  %v6929_v21 = vcombine.low %v915_v62, %v925_v36  ;;  %v4680_v62 = vcombine.low %v6880_v38, %v6883_v57  ;;  %v959_v2 = vsel %vm6032_vm5, %v954_v15, %v958_v45  ;;  %5092 = vmatprep.subr.bf16.mxu0 %v5638_v39  ;;  %v5640_v57 = vld [vmem:[%s8314_s3 + $0xf8] sm:$0xff]  }
 0x12c   : > { %v1341_v1 = vpop.permute.xlu0 %1340  ;;  %v944_v44 = vrot.slane %v943_v25, 4 }
 0x12d   : > { %v1343_v31 = vpop.permute.xlu1 %1342  ;;  %v1659_v5 = vsel %vm1641_vm12, %v1622_v29, %v1341_v1  ;;  %v967_v1 = vrot.slane %v965_v16, 4 }
 0x12e   : > { %1239 = vrot.lane.b32.xlu0 %v6794_v8, %s5875_s10  ;;  %v949_v36 = vsel %vm6032_vm5, %v944_v44, %v6922_v14  ;;  %v5641_v14 = vld [vmem:[%s8314_s3 + $0xb8] sm:$0xff]  }
 0x12f   : > { %1241 = vrot.lane.b32.xlu1 %v6904_v30, %s5875_s10  ;;  %v4681_v53 = vcombine.low %v949_v36, %v959_v2  ;;  %v969_v34 = vsel %vm5991_vm4, %v967_v1, %v968_v26  ;;  %vm2545_vm4 = vcmask 1046528   ;;  %s8261_s10 = scalar_lea.hbm %s8316_s5, %s4849_s13 }
 0x130   : > { %v1380_v59 = vpop.permute.xlu0 %1379  ;;  %v4682_v4 = vcombine.low %v966_v33, %v969_v34 }
 0x131   : > { %v1382_v55 = vpop.permute.xlu1 %1381  ;;  %v1696_v52 = vsel %vm1678_vm13, %v1659_v5, %v1380_v59 }
 0x132   : > { %1278 = vrot.lane.b32.xlu0 %v6835_v28, %s5879_s6  ;;  %v1661_v28 = vsel %vm1641_vm12, %v1624_v22, %v1343_v31 }
 0x133   : > { %1280 = vrot.lane.b32.xlu1 %v6929_v21, %s5879_s6  ;;  %v1698_v49 = vsel %vm1678_vm13, %v1661_v28, %v1382_v55  ;;  %s5817_s6 = scalar_lea.vmem %s5816_s15, 4096 }
 0x134   : > { %v1419_v58 = vpop.permute.xlu0 %1418 }
 0x135   : > { %v1421_v17 = vpop.permute.xlu1 %1420  ;;  %v1733_v32 = vsel %vm1715_vm14, %v1696_v52, %v1419_v58 }
 0x136   : > { %v1735_v27 = vsel %vm1715_vm14, %v1698_v49, %v1421_v17  ;;  %1317 = vrot.lane.b32.xlu0 %v6861_v47, %s5876_s11  ;;  %5466 = vmatprep.mubr.msk.bf16.mxu0 %vm1795_vm15, %v1733_v32  ;;  %v5639_v47 = vld [vmem:[%s8314_s3 + $0xb0] sm:$0xff]  }
 0x137   : > { %1319 = vrot.lane.b32.xlu1 %v4679_v46, %s5876_s11  ;;  %5467 = vmatmul.mubr.msk.bf16.gmra.mrb[16].mxu0 %vm1795_vm15, %v1735_v27  ;;  %s215_s11 = sand.u32 1, %s5865_s19  }
 0x138   : > { %v1099_v51 = vpop.permute.xlu0 %1098  ;;  %5093 = vmatpush3.bf16.msra.mxu0 %v5639_v47  ;;  %s4601_s9 = sshll.u32 %s215_s11, 7  ;;  %s8268_s22 = scalar_lea.sflag [#allocation3], %s215_s11 }
 0x139   : > { %v1101_v31 = vpop.permute.xlu1 %1100  ;;  %5094 = vmatprep.subr.bf16.mxu0 %v5640_v57  ;;  %v1471_v48 = vsel %vm1438_vm7, %v6322_v18, %v1099_v51  ;;  %s8210_s14 = scalar_lea.vmem [#allocation2], %s4601_s9 }
 0x13a   : > { %1356 = vrot.lane.b32.xlu0 %v6904_v30, %s5880_s7 }
 0x13b   : > { %1358 = vrot.lane.b32.xlu1 %v4680_v62, %s5880_s7  ;;  %s4535_s7 = sshll.u32 %s8210_s14, 4  ;;  %s8263_s7 = int_to_ptr.vmem [resolvable:$true] %s4535_s7 }
 0x13c   : > { %v1189_v38 = vpop.permute.xlu0 %1188  ;;  %5095 = vmatpush3.bf16.msra.mxu0 %v5641_v14  ;;  %s5811_s17 = scalar_lea.vmem %s8263_s7, 2048  ;;  %p5818_p0 = scmp.lt.s32.totalorder %s8263_s7, %s5816_s15 }
 0x13d   : > { %v1191_v43 = vpop.permute.xlu1 %1190  ;;  %v1515_v20 = vsel %vm1493_vm8, %v1471_v48, %v1189_v38  ;;  %p5812_p11 = scmp.ne.s32.totalorder %s8263_s7, %s5811_s17  ;;  %p5819_p1 = scmp.lt.s32.totalorder %s5817_s6, %s5811_s17 }
 0x13e   : > { %1395 = vrot.lane.b32.xlu0 %v6929_v21, %s5881_s8  ;;  %v1474_v21 = vsel %vm1438_vm7, %v6374_v37, %v1101_v31 }
 0x13f   : > { %1397 = vrot.lane.b32.xlu1 %v4681_v53, %s5881_s8  ;;  %v1517_v59 = vsel %vm1493_vm8, %v1474_v21, %v1191_v43  ;;  %p5813_p12 = pnand %p5812_p11, %p5954_p5  ;;  %p5820_p2 = por %p5819_p1, %p5818_p0 }
 0x140   : > { %v1228_v30 = vpop.permute.xlu0 %1227 }
 0x141   : > { %v1230_v54 = vpop.permute.xlu1 %1229  ;;  %v1552_v9 = vsel %vm1530_vm9, %v1515_v20, %v1228_v30  ;;  %p5814_p13 = pneg %p5813_p12 }
 0x142   : > { %1434 = vrot.lane.b32.xlu0 %v4679_v46, %s5882_s12  ;;  %v1554_v11 = vsel %vm1530_vm9, %v1517_v59, %v1230_v54 }
 0x143   : > { %1436 = vrot.lane.b32.xlu1 %v4682_v4, %s5882_s12  ;;  %p5821_p3 = pnand %p5820_p2, %p5814_p13 }
 0x144   : > { %v1267_v10 = vpop.permute.xlu0 %1266 }
 0x145   : > { %v1269_v35 = vpop.permute.xlu1 %1268  ;;  %v1589_v55 = vsel %vm1567_vm10, %v1552_v9, %v1267_v10 }
 0x146   : > { %v1591_v29 = vsel %vm1567_vm10, %v1554_v11, %v1269_v35  ;;  %v7058_v11 = vld [vmem:[%s8313_s2] ss:$0 sm:$0xff] }
 0x148   : > { %v1306_v25 = vpop.permute.xlu0 %1305 }
 0x149   : > { %v1308_v60 = vpop.permute.xlu1 %1307  ;;  %v1626_v46 = vsel %vm1604_vm11, %v1589_v55, %v1306_v25 }
 0x14a   : > { %v1628_v18 = vsel %vm1604_vm11, %v1591_v29, %v1308_v60 }
 0x14c   : > { %v1345_v13 = vpop.permute.xlu0 %1344 }
 0x14d   : > { %v1347_v56 = vpop.permute.xlu1 %1346  ;;  %v1663_v37 = vsel %vm1641_vm12, %v1626_v46, %v1345_v13 }
 0x14e   : > { %v1665_v42 = vsel %vm1641_vm12, %v1628_v18, %v1347_v56 }
 0x150   : > { %v1384_v3 = vpop.permute.xlu0 %1383 }
 0x151   : > { %v1386_v19 = vpop.permute.xlu1 %1385  ;;  %v1700_v22 = vsel %vm1678_vm13, %v1663_v37, %v1384_v3 }
 0x152   : > { %v1702_v44 = vsel %vm1678_vm13, %v1665_v42, %v1386_v19 }
 0x154   : > { %v1423_v5 = vpop.permute.xlu0 %1422 }
 0x155   : > { %v1425_v45 = vpop.permute.xlu1 %1424  ;;  %v1737_v50 = vsel %vm1715_vm14, %v1700_v22, %v1423_v5 }
 0x156   : > { %v1739_v28 = vsel %vm1715_vm14, %v1702_v44, %v1425_v45  ;;  %5470 = vmatprep.mubr.msk.bf16.mxu0 %vm1795_vm15, %v1737_v50 }
 0x157   : > { %5471 = vmatmul.mubr.msk.bf16.gmra.mrb[20].mxu0 %vm1795_vm15, %v1739_v28 }
 0x158   : > { %v1103_v52 = vpop.permute.xlu0 %1102 }
 0x159   : > { %v1105_v58 = vpop.permute.xlu1 %1104  ;;  %v1477_v51 = vsel %vm1438_vm7, %v6439_v12, %v1103_v52 }
 0x15a   : > { %v1480_v2 = vsel %vm1438_vm7, %v6494_v24, %v1105_v58 }
 0x15c   : > { %v1193_v15 = vpop.permute.xlu0 %1192 }
 0x15d   : > { %v1195_v16 = vpop.permute.xlu1 %1194  ;;  %v1519_v23 = vsel %vm1493_vm8, %v1477_v51, %v1193_v15 }
 0x15e   : > { %v1521_v1 = vsel %vm1493_vm8, %v1480_v2, %v1195_v16 }
 0x160   : > { %v1232_v49 = vpop.permute.xlu0 %1231 }
 0x161   : > { %v1234_v17 = vpop.permute.xlu1 %1233  ;;  %v1556_v26 = vsel %vm1530_vm9, %v1519_v23, %v1232_v49 }
 0x162   : > { %v1558_v57 = vsel %vm1530_vm9, %v1521_v1, %v1234_v17 }
 0x164   : > { %v1271_v32 = vpop.permute.xlu0 %1270 }
 0x165   : > { %v1273_v27 = vpop.permute.xlu1 %1272  ;;  %v1593_v14 = vsel %vm1567_vm10, %v1556_v26, %v1271_v32 }
 0x166   : > { %v1595_v38 = vsel %vm1567_vm10, %v1558_v57, %v1273_v27 }
 0x168   : > { %v1310_v39 = vpop.permute.xlu0 %1309 }
 0x169   : > { %v1312_v62 = vpop.permute.xlu1 %1311  ;;  %v1630_v33 = vsel %vm1604_vm11, %v1593_v14, %v1310_v39 }
 0x16a   : > { %v1632_v12 = vsel %vm1604_vm11, %v1595_v38, %v1312_v62  ;;  %v5643_v38 = vld [vmem:[%s8314_s3 + $0x100] sm:$0xff]  }
 0x16c   : > { %v1349_v36 = vpop.permute.xlu0 %1348 }
 0x16d   : > { %v1351_v47 = vpop.permute.xlu1 %1350  ;;  %v1667_v24 = vsel %vm1641_vm12, %v1630_v33, %v1349_v36 }
 0x16e   : > { %v1669_v34 = vsel %vm1641_vm12, %v1632_v12, %v1351_v47 }
 0x170   : > { %v1388_v31 = vpop.permute.xlu0 %1387 }
 0x171   : > { %v1390_v53 = vpop.permute.xlu1 %1389  ;;  %v1704_v43 = vsel %vm1678_vm13, %v1667_v24, %v1388_v31 }
 0x172   : > { %v1706_v30 = vsel %vm1678_vm13, %v1669_v34, %v1390_v53  ;;  %v5642_v53 = vld [vmem:[%s8314_s3 + $0x140] sm:$0xff]  }
 0x173   : > { %5192 = vmatprep.subr.bf16.mxu1 %v5642_v53 }
 0x174   : > { %v1427_v4 = vpop.permute.xlu0 %1426  ;;  %5193 = vmatpush3.bf16.msra.mxu1 %v5643_v38 }
 0x175   : > { %v1429_v54 = vpop.permute.xlu1 %1428  ;;  %v1741_v10 = vsel %vm1715_vm14, %v1704_v43, %v1427_v4 }
 0x176   : > { %v1743_v35 = vsel %vm1715_vm14, %v1706_v30, %v1429_v54  ;;  %5474 = vmatprep.mubr.msk.bf16.mxu0 %vm1795_vm15, %v1741_v10 }
 0x177   : > { %5475 = vmatmul.mubr.msk.bf16.gmra.mrb[24].mxu0 %vm1795_vm15, %v1743_v35 }
 0x178   : > { %v1107_v25 = vpop.permute.xlu0 %1106 }
 0x179   : > { %v1109_v60 = vpop.permute.xlu1 %1108  ;;  %v1483_v46 = vsel %vm1438_vm7, %v6553_v6, %v1107_v25 }
 0x17a   : > { %v1486_v42 = vsel %vm1438_vm7, %v6608_v63, %v1109_v60 }
 0x17c   : > { %v1197_v13 = vpop.permute.xlu0 %1196 }
 0x17d   : > { %v1199_v56 = vpop.permute.xlu1 %1198  ;;  %v1523_v22 = vsel %vm1493_vm8, %v1483_v46, %v1197_v13 }
 0x17e   : > { %v1525_v44 = vsel %vm1493_vm8, %v1486_v42, %v1199_v56 }
 0x180   : > { %v1236_v48 = vpop.permute.xlu0 %1235 }
 0x181   : > { %v1238_v21 = vpop.permute.xlu1 %1237  ;;  %v1560_v45 = vsel %vm1530_vm9, %v1523_v22, %v1236_v48 }
 0x182   : > { %v1562_v58 = vsel %vm1530_vm9, %v1525_v44, %v1238_v21 }
 0x184   : > { %v1275_v20 = vpop.permute.xlu0 %1274 }
 0x185   : > { %v1277_v59 = vpop.permute.xlu1 %1276  ;;  %v1597_v6 = vsel %vm1567_vm10, %v1560_v45, %v1275_v20  ;;  %v5644_v20 = vld [vmem:[%s8314_s3 + $0x148] sm:$0xff]  }
 0x186   : > { %v1599_v16 = vsel %vm1567_vm10, %v1562_v58, %v1277_v59  ;;  %5194 = vmatprep.subr.bf16.mxu1 %v5644_v20 }
 0x188   : > { %v1314_v9 = vpop.permute.xlu0 %1313 }
 0x189   : > { %v1316_v3 = vpop.permute.xlu1 %1315  ;;  %v1634_v63 = vsel %vm1604_vm11, %v1597_v6, %v1314_v9 }
 0x18a   : > { %v1636_v32 = vsel %vm1604_vm11, %v1599_v16, %v1316_v3 }
 0x18c   : > { %v1353_v55 = vpop.permute.xlu0 %1352 }
 0x18d   : > { %v1355_v19 = vpop.permute.xlu1 %1354  ;;  %v5452_v29 = vpop.f32.mrb[0].mxu0  ;;  %v1671_v27 = vsel %vm1641_vm12, %v1634_v63, %v1353_v55 }
 0x18e   : > { %v1879_v18 = vadd.f32 %v5452_v29, %v7058_v11  ;;  %v1870_v37 = vpop.f32.mrb[1].mxu0  ;;  %v1673_v39 = vsel %vm1641_vm12, %v1636_v32, %v1355_v19 }
 0x18f   : > { %v5453_v5 = vpop.f32.mrb[2].mxu0 }
 0x190   : > { %v1882_v50 = vadd.f32 %v5453_v5, %v7058_v11  ;;  %v1873_v28 = vpop.f32.mrb[3].mxu0  ;;  %v1392_v52 = vpop.permute.xlu0 %1391  ;;  %v2015_v49 = vmax.f32 %v1879_v18, 0.0 }
 0x191   : > { %v1394_v15 = vpop.permute.xlu1 %1393  ;;  %v1708_v36 = vsel %vm1678_vm13, %v1671_v27, %v1392_v52 }
 0x192   : > { %v2016_v17 = vmax.f32 %v1882_v50, 0.0  ;;  %v1710_v51 = vsel %vm1678_vm13, %v1673_v39, %v1394_v15 }
 0x194   : > { %v2086_v62 = vpack.c.bf16 %v2016_v17, %v2015_v49  ;;  %v1431_v47 = vpop.permute.xlu0 %1430 }
 0x195   : > { %v1433_v2 = vpop.permute.xlu1 %1432  ;;  %v1745_v23 = vsel %vm1715_vm14, %v1708_v36, %v1431_v47 }
 0x196   : > { %v2111_v1 = vshrl.u32 %v2086_v62, 16  ;;  %v1747_v26 = vsel %vm1715_vm14, %v1710_v51, %v1433_v2  ;;  %5478 = vmatprep.mubr.msk.bf16.mxu0 %vm1795_vm15, %v1745_v23  ;;  %v2114_v57 = vshll.u32 %v2086_v62, 16 }
 0x197   : > { %5479 = vmatmul.mubr.msk.bf16.gmra.mrb[28].mxu0 %vm1795_vm15, %v1747_v26 }
 0x198   : > { %v2113_v31 = vrot.slane %v2111_v1, 7  ;;  %v1111_v14 = vpop.permute.xlu0 %1110 }
 0x199   : > { %v1113_v33 = vpop.permute.xlu1 %1112  ;;  %v1489_v25 = vsel %vm1438_vm7, %v6708_v61, %v1111_v14  ;;  %v5645_v61 = vld [vmem:[%s8314_s3 + $0x108] sm:$0xff]  }
 0x19a   : > { %v2116_v12 = vor.u32 %v2114_v57, %v2113_v31  ;;  %v7090_v24 = vsel %vm6772_vm2, %v2113_v31, 0  ;;  %v1492_v13 = vsel %vm1438_vm7, %v6794_v8, %v1113_v33  ;;  %5195 = vmatpush3.bf16.msra.mxu1 %v5645_v61 }
 0x19b   : > { %v2325_v54 = vshll.u32 %v7090_v24, 16 }
 0x19c   : > { %v7094_v34 = vsel %vm6772_vm2, 0, %v2116_v12  ;;  %v1201_v43 = vpop.permute.xlu0 %1200 }
 0x19d   : > { %v1203_v4 = vpop.permute.xlu1 %1202  ;;  %v2320_v30 = vshll.u32 %v7094_v34, 16  ;;  %v2318_v10 = vshrl.u32 %v7094_v34, 16  ;;  %v2327_v21 = vrot.slane %v2325_v54, 1  ;;  %v1527_v59 = vsel %vm1493_vm8, %v1489_v25, %v1201_v43 }
 0x19e   : > { %v1529_v3 = vsel %vm1493_vm8, %v1492_v13, %v1203_v4  ;;  %v2547_v54 = vrot.slane %v6810_v40, 1  ;;  %v2546_v25 = vrot.slane %v6786_v7, 1  ;;  %v5647_v13 = vld [vmem:[%s8314_s3 + $0x110] sm:$0xff]  }
 0x19f   : > { %v2322_v35 = vrot.slane %v2320_v30, 1 }
 0x1a0   : > { %v1240_v60 = vpop.permute.xlu0 %1239  ;;  %v7160_v61 = vsel %vm2545_vm4, %v2546_v25, %v2547_v54 }
 0x1a1   : > { %v1242_v56 = vpop.permute.xlu1 %1241  ;;  %v2323_v48 = vor.u32 %v2322_v35, %v2318_v10  ;;  %v1564_v19 = vsel %vm1530_vm9, %v1527_v59, %v1240_v60  ;;  %v5646_v60 = vld [vmem:[%s8314_s3 + $0x150] sm:$0xff]   ;;  %8335 = vst [vmem:[#allocation7_spill] sm:$0xff] %v7160_v61 }
 0x1a2   : > { %v1566_v29 = vsel %vm1530_vm9, %v1529_v3, %v1242_v56  ;;  %5196 = vmatprep.subr.bf16.mxu1 %v5646_v60 }
 0x1a3   : > { %v7108_v9 = vsel %vm2304_vm3, %v2323_v48, %v2327_v21  ;;  %5197 = vmatpush3.bf16.msra.mxu1 %v5647_v13 }
 0x1a4   : > { %3271 = vmatprep.mubr.bf16.mxu1 %v7108_v9  ;;  %v1279_v8 = vpop.permute.xlu0 %1278 }
 0x1a5   : > { %v1281_v55 = vpop.permute.xlu1 %1280  ;;  %3272 = vmatmul.mubr.bf16.gmra.mrb[4].mxu1 %v7094_v34  ;;  %v1601_v18 = vsel %vm1567_vm10, %v1564_v19, %v1279_v8 }
 0x1a6   : > { %v1603_v42 = vsel %vm1567_vm10, %v1566_v29, %v1281_v55 }
 0x1a8   : > { %v1318_v46 = vpop.permute.xlu0 %1317 }
 0x1a9   : > { %v1320_v37 = vpop.permute.xlu1 %1319  ;;  %v1638_v45 = vsel %vm1604_vm11, %v1601_v18, %v1318_v46 }
 0x1aa   : > { %v5456_v22 = vpop.f32.mrb[4].mxu0  ;;  %v1640_v58 = vsel %vm1604_vm11, %v1603_v42, %v1320_v37 }
 0x1ab   : > { %v1895_v5 = vadd.f32 %v5456_v22, %v7058_v11  ;;  %v1886_v44 = vpop.f32.mrb[5].mxu0 }
 0x1ac   : > { %v1887_v50 = vadd.f32 %v7058_v11, %v1886_v44  ;;  %v5457_v28 = vpop.f32.mrb[6].mxu0  ;;  %v1357_v52 = vpop.permute.xlu0 %1356  ;;  %v5648_v44 = vld [vmem:[%s8314_s3 + $0x158] sm:$0xff]  }
 0x1ad   : > { %v1898_v6 = vadd.f32 %v5457_v28, %v7058_v11  ;;  %v1359_v15 = vpop.permute.xlu1 %1358  ;;  %v1889_v16 = vpop.f32.mrb[7].mxu0  ;;  %v2019_v49 = vmax.f32 %v1895_v5, 0.0  ;;  %v1675_v32 = vsel %vm1641_vm12, %v1638_v45, %v1357_v52  ;;  %v2549_v5 = vrot.slane %v7094_v34, 1  ;;  %5198 = vmatprep.subr.bf16.mxu1 %v5648_v44 }
 0x1ae   : > { %v1890_v63 = vadd.f32 %v7058_v11, %v1889_v16  ;;  %v2017_v27 = vmax.f32 %v1887_v50, 0.0  ;;  %v1677_v39 = vsel %vm1641_vm12, %v1640_v58, %v1359_v15  ;;  %v5649_v50 = vld [vmem:[%s8314_s3 + $0x118] sm:$0xff]   ;;  %v2550_v28 = vrot.slane %v7090_v24, 1 }
 0x1af   : > { %v2020_v17 = vmax.f32 %v1898_v6, 0.0  ;;  %5199 = vmatpush3.bf16.msra.mxu1 %v5649_v50  ;;  %v5654_v50 = vld [vmem:[%s8314_s3 + $0x168] sm:$0xff]  }
 0x1b0   : > { %v2018_v62 = vmax.f32 %v1890_v63, 0.0  ;;  %v1396_v36 = vpop.permute.xlu0 %1395 }
 0x1b1   : > { %v2088_v47 = vpack.c.bf16 %v2020_v17, %v2019_v49  ;;  %v1398_v51 = vpop.permute.xlu1 %1397  ;;  %v1712_v23 = vsel %vm1678_vm13, %v1675_v32, %v1396_v36 }
 0x1b2   : > { %v2087_v2 = vpack.c.bf16 %v2018_v62, %v2017_v27  ;;  %v1714_v26 = vsel %vm1678_vm13, %v1677_v39, %v1398_v51 }
 0x1b3   : > { %v2125_v1 = vshrl.u32 %v2088_v47, 16  ;;  %v2128_v53 = vshll.u32 %v2088_v47, 16 }
 0x1b4   : > { %v2118_v31 = vshrl.u32 %v2087_v2, 16  ;;  %v1435_v57 = vpop.permute.xlu0 %1434  ;;  %v2121_v43 = vshll.u32 %v2087_v2, 16 }
 0x1b5   : > { %v2127_v14 = vrot.slane %v2125_v1, 7  ;;  %v1749_v38 = vsel %vm1715_vm14, %v1712_v23, %v1435_v57  ;;  %v1437_v33 = vpop.permute.xlu1 %1436 }
 0x1b6   : > { %v2120_v12 = vrot.slane %v2118_v31, 7  ;;  %v1751_v4 = vsel %vm1715_vm14, %v1714_v26, %v1437_v33  ;;  %5482 = vmatprep.mubr.msk.bf16.mxu0 %vm1795_vm15, %v1749_v38 }
 0x1b7   : > { %v2130_v30 = vor.u32 %v2128_v53, %v2127_v14  ;;  %5483 = vmatmul.mubr.msk.bf16.gmra.mrb[32].mxu0 %vm1795_vm15, %v1751_v4  ;;  %v7151_v40 = vsel %vm6772_vm2, %v2127_v14, 0  ;;  %v5651_v4 = vld [vmem:[%s8314_s3 + $0x120] sm:$0xff]  }
 0x1b8   : > { %v2123_v10 = vor.u32 %v2121_v43, %v2120_v12  ;;  %v2288_v35 = vsel %vm6772_vm2, %v2120_v12, 0  ;;  %3424 = vmatprep.mubr.bf16.mxu0 %v7094_v34  ;;  %v2349_v29 = vshll.u32 %v7151_v40, 16  ;;  %v7185_v34 = vsel %vm2545_vm4, %v2549_v5, %v2550_v28  ;;  %v5650_v43 = vld [vmem:[%s8314_s3 + $0x160] sm:$0xff]  }
 0x1b9   : > { %v7147_v56 = vsel %vm6772_vm2, 0, %v2130_v30  ;;  %v2337_v59 = vshll.u32 %v2288_v35, 16  ;;  %v2553_v63 = vrot.slane %v2288_v35, 1  ;;  %v5652_v30 = vld [vmem:[%s8314_s3 + $0x1c0] sm:$0xff]   ;;  %v2556_v54 = vrot.slane %v7151_v40, 1  ;;  %5200 = vmatprep.subr.bf16.mxu1 %v5650_v43 }
 0x1ba   : > { %v7155_v48 = vsel %vm6772_vm2, 0, %v2123_v10  ;;  %v2344_v21 = vshll.u32 %v7147_v56, 16  ;;  %v2342_v19 = vshrl.u32 %v7147_v56, 16  ;;  %v2351_v22 = vrot.slane %v2349_v29, 1  ;;  %v5653_v35 = vld [vmem:[%s8314_s3 + $0x180] sm:$0xff]   ;;  %5304 = vmatprep.subr.bf16.mxu0 %v5652_v30  ;;  %5201 = vmatpush3.bf16.msra.mxu1 %v5651_v4 }
 0x1bb   : > { %v2332_v20 = vshll.u32 %v7155_v48, 16  ;;  %v2330_v8 = vshrl.u32 %v7155_v48, 16  ;;  %v2339_v18 = vrot.slane %v2337_v59, 1  ;;  %v2552_v58 = vrot.slane %v7155_v48, 1  ;;  %5202 = vmatprep.subr.bf16.mxu1 %v5654_v50 }
 0x1bc   : > { %v2346_v3 = vrot.slane %v2344_v21, 1  ;;  %v2555_v38 = vrot.slane %v7147_v56, 1 }
 0x1bd   : > { %v2334_v55 = vrot.slane %v2332_v20, 1  ;;  %v7196_v27 = vsel %vm2545_vm4, %v2552_v58, %v2553_v63  ;;  %v5655_v58 = vld [vmem:[%s8314_s3 + $0x128] sm:$0xff]  }
 0x1be   : > { %v2347_v37 = vor.u32 %v2346_v3, %v2342_v19  ;;  %8336 = vst [vmem:[#allocation8_spill] sm:$0xff] %v7196_v27  ;;  %v7230_v40 = vsel %vm2545_vm4, %v2555_v38, %v2556_v54  ;;  %5203 = vmatpush3.bf16.msra.mxu1 %v5655_v58 }
 0x1bf   : > { %3425 = vmatmul.mubr.bf16.vlgmr.msra.gmra.mrb[36].mxu0 %v7160_v61  ;;  %v2335_v46 = vor.u32 %v2334_v55, %v2330_v8 }
 0x1c0   : > { %3432 = vmatprep.mubr.bf16.mxu0 %v7155_v48  ;;  %v7177_v45 = vsel %vm2304_vm3, %v2347_v37, %v2351_v22  ;;  %5305 = vmatpush3.bf16.msra.mxu0 %v5653_v35  ;;  %v5658_v35 = vld [vmem:[%s8314_s3 + $0x170] sm:$0xff]  }
 0x1c1   : > { %v7168_v42 = vsel %vm2304_vm3, %v2335_v46, %v2339_v18  ;;  %5204 = vmatprep.subr.bf16.mxu1 %v5658_v35 }
 0x1c2   : > { %3279 = vmatprep.mubr.bf16.mxu1 %v7168_v42 }
 0x1c3   : > { %3280 = vmatmul.mubr.bf16.gmra.mrb[8].mxu1 %v7155_v48 }
 0x1c4   : > { %3287 = vmatprep.mubr.bf16.mxu1 %v7177_v45 }
 0x1c7   : > { %3433 = vmatmul.mubr.bf16.gmra.mrb[40].mxu0 %v7185_v34 }
 0x1c8   : > { %3440 = vmatprep.mubr.bf16.mxu0 %v7147_v56 }
 0x1ca   : > { %v5460_v52 = vpop.f32.mrb[8].mxu0 }
 0x1cb   : > { %v1911_v6 = vadd.f32 %v5460_v52, %v7058_v11  ;;  %v1902_v15 = vpop.f32.mrb[9].mxu0  ;;  %3288 = vmatmul.mubr.bf16.gmra.mrb[12].mxu1 %v7147_v56 }
 0x1cc   : > { %v1903_v16 = vadd.f32 %v7058_v11, %v1902_v15  ;;  %v5461_v24 = vpop.f32.mrb[10].mxu0  ;;  %v5657_v15 = vld [vmem:[%s8314_s3 + $0x188] sm:$0xff]  }
 0x1cd   : > { %v1914_v49 = vadd.f32 %v5461_v24, %v7058_v11  ;;  %v1905_v17 = vpop.f32.mrb[11].mxu0  ;;  %v2023_v39 = vmax.f32 %v1911_v6, 0.0  ;;  %v5656_v6 = vld [vmem:[%s8314_s3 + $0x1c8] sm:$0xff]  }
 0x1ce   : > { %v1906_v32 = vadd.f32 %v7058_v11, %v1905_v17  ;;  %v2021_v36 = vmax.f32 %v1903_v16, 0.0  ;;  %5306 = vmatprep.subr.bf16.mxu0 %v5656_v6 }
 0x1cf   : > { %v2024_v62 = vmax.f32 %v1914_v49, 0.0  ;;  %3441 = vmatmul.mubr.bf16.gmra.mrb[44].mxu0 %v7196_v27 }
 0x1d0   : > { %v2022_v47 = vmax.f32 %v1906_v32, 0.0  ;;  %5307 = vmatpush3.bf16.msra.mxu0 %v5657_v15 }
 0x1d1   : > { %v2090_v51 = vpack.c.bf16 %v2024_v62, %v2023_v39 }
 0x1d2   : > { %v2089_v2 = vpack.c.bf16 %v2022_v47, %v2021_v36 }
 0x1d3   : > { %v2139_v23 = vshrl.u32 %v2090_v51, 16  ;;  %v2142_v31 = vshll.u32 %v2090_v51, 16 }
 0x1d4   : > { %v2132_v1 = vshrl.u32 %v2089_v2, 16  ;;  %v2135_v14 = vshll.u32 %v2089_v2, 16 }
 0x1d5   : > { %v2141_v26 = vrot.slane %v2139_v23, 7 }
 0x1d6   : > { %v2134_v57 = vrot.slane %v2132_v1, 7 }
 0x1d7   : > { %v2144_v53 = vor.u32 %v2142_v31, %v2141_v26  ;;  %v7221_v25 = vsel %vm6772_vm2, %v2141_v26, 0 }
 0x1d8   : > { %v2137_v33 = vor.u32 %v2135_v14, %v2134_v57  ;;  %v2290_v12 = vsel %vm6772_vm2, %v2134_v57, 0  ;;  %v2373_v19 = vshll.u32 %v7221_v25, 16 }
 0x1d9   : > { %v7214_v10 = vsel %vm6772_vm2, 0, %v2144_v53  ;;  %v2361_v20 = vshll.u32 %v2290_v12, 16  ;;  %v2559_v44 = vrot.slane %v2290_v12, 1 }
 0x1da   : > { %v7225_v60 = vsel %vm6772_vm2, 0, %v2137_v33  ;;  %v2368_v13 = vshll.u32 %v7214_v10, 16  ;;  %v2366_v55 = vshrl.u32 %v7214_v10, 16  ;;  %v2375_v5 = vrot.slane %v2373_v19, 1 }
 0x1db   : > { %3448 = vmatprep.mubr.bf16.mxu0 %v7225_v60  ;;  %v2356_v21 = vshll.u32 %v7225_v60, 16  ;;  %v2354_v3 = vshrl.u32 %v7225_v60, 16  ;;  %v2363_v46 = vrot.slane %v2361_v20, 1  ;;  %v2558_v37 = vrot.slane %v7225_v60, 1 }
 0x1dc   : > { %3449 = vmatmul.mubr.bf16.gmra.mrb[48].mxu0 %v7230_v40  ;;  %v2370_v59 = vrot.slane %v2368_v13, 1  ;;  %v2561_v43 = vrot.slane %v7214_v10, 1  ;;  %v5659_v13 = vld [vmem:[%s8314_s3 + $0x130] sm:$0xff]   ;;  %v2562_v20 = vrot.slane %v7221_v25, 1 }
 0x1dd   : > { %3456 = vmatprep.mubr.bf16.mxu0 %v7214_v10  ;;  %v2358_v8 = vrot.slane %v2356_v21, 1  ;;  %v7251_v52 = vsel %vm2545_vm4, %v2558_v37, %v2559_v44  ;;  %v5660_v25 = vld [vmem:[%s8314_s3 + $0x1d0] sm:$0xff]   ;;  %5205 = vmatpush3.bf16.msra.mxu1 %v5659_v13 }
 0x1de   : > { %v2371_v18 = vor.u32 %v2370_v59, %v2366_v55  ;;  %5308 = vmatprep.subr.bf16.mxu0 %v5660_v25 }
 0x1df   : > { %v2359_v29 = vor.u32 %v2358_v8, %v2354_v3 }
 0x1e0   : > { %v7248_v28 = vsel %vm2304_vm3, %v2371_v18, %v2375_v5  ;;  %v7302_v18 = vsel %vm2545_vm4, %v2561_v43, %v2562_v20 }
 0x1e1   : > { %v7240_v22 = vsel %vm2304_vm3, %v2359_v29, %v2363_v46  ;;  %v5661_v46 = vld [vmem:[%s8314_s3 + $0x190] sm:$0xff]  }
 0x1e2   : > { %3295 = vmatprep.mubr.bf16.mxu1 %v7240_v22  ;;  %5309 = vmatpush3.bf16.msra.mxu0 %v5661_v46  ;;  %v5668_v46 = vld [vmem:[%s8314_s3 + $0x1a0] sm:$0xff]  }
 0x1e3   : > { %3296 = vmatmul.mubr.bf16.gmra.mrb[16].mxu1 %v7225_v60 }
 0x1e4   : > { %3303 = vmatprep.mubr.bf16.mxu1 %v7248_v28  ;;  %3457 = vmatmul.mubr.bf16.gmra.mrb[52].mxu0 %v7251_v52 }
 0x1e8   : > { %v4984_v33 = vpop.f32.mrb[0].mxu1 }
 0x1e9   : > { %v4985_v4 = vpop.f32.mrb[1].mxu1 }
 0x1ea   : > { %v5464_v16 = vpop.f32.mrb[12].mxu0  ;;  %v4987_v21 = vpop.f32.mrb[2].mxu1  ;;  %v7283_v3 = vadd.f32 %v4985_v4, %v4984_v33 }
 0x1eb   : > { %v1927_v24 = vadd.f32 %v5464_v16, %v7058_v11  ;;  %v1918_v63 = vpop.f32.mrb[13].mxu0  ;;  %3304 = vmatmul.mubr.bf16.gmra.mrb[20].mxu1 %v7214_v10  ;;  %v4988_v8 = vpop.f32.mrb[3].mxu1 }
 0x1ec   : > { %v1919_v49 = vadd.f32 %v7058_v11, %v1918_v63  ;;  %v5465_v17 = vpop.f32.mrb[14].mxu0  ;;  %v7306_v50 = vadd.f32 %v4988_v8, %v4987_v21  ;;  %v5667_v8 = vld [vmem:[%s8314_s3 + $0x1e0] sm:$0xff]  }
 0x1ed   : > { %v1930_v32 = vadd.f32 %v5465_v17, %v7058_v11  ;;  %v1921_v39 = vpop.f32.mrb[15].mxu0  ;;  %v2027_v36 = vmax.f32 %v1927_v24, 0.0 }
 0x1ee   : > { %v1922_v62 = vadd.f32 %v7058_v11, %v1921_v39  ;;  %v2025_v51 = vmax.f32 %v1919_v49, 0.0 }
 0x1ef   : > { %v2028_v47 = vmax.f32 %v1930_v32, 0.0 }
 0x1f0   : > { %v2026_v2 = vmax.f32 %v1922_v62, 0.0 }
 0x1f1   : > { %v2092_v23 = vpack.c.bf16 %v2028_v47, %v2027_v36  ;;  %v5662_v36 = vld [vmem:[%s8314_s3 + $0x178] sm:$0xff]  }
 0x1f2   : > { %v2091_v1 = vpack.c.bf16 %v2026_v2, %v2025_v51  ;;  %v5663_v2 = vld [vmem:[%s8314_s3 + $0x138] sm:$0xff]   ;;  %5206 = vmatprep.subr.bf16.mxu1 %v5662_v36 }
 0x1f3   : > { %v2153_v26 = vshrl.u32 %v2092_v23, 16  ;;  %v2156_v14 = vshll.u32 %v2092_v23, 16  ;;  %v5664_v23 = vld [vmem:[%s8314_s3 + $0x1d8] sm:$0xff]   ;;  %5207 = vmatpush3.bf16.msra.mxu1 %v5663_v2 }
 0x1f4   : > { %v2146_v31 = vshrl.u32 %v2091_v1, 16  ;;  %v2149_v38 = vshll.u32 %v2091_v1, 16  ;;  %v5665_v1 = vld [vmem:[%s8314_s3 + $0x198] sm:$0xff]   ;;  %5310 = vmatprep.subr.bf16.mxu0 %v5664_v23 }
 0x1f5   : > { %v2155_v57 = vrot.slane %v2153_v26, 7  ;;  %5311 = vmatpush3.bf16.msra.mxu0 %v5665_v1 }
 0x1f6   : > { %v2148_v53 = vrot.slane %v2146_v31, 7  ;;  %5312 = vmatprep.subr.bf16.mxu0 %v5667_v8 }
 0x1f7   : > { %v2158_v12 = vor.u32 %v2156_v14, %v2155_v57  ;;  %v7287_v55 = vsel %vm6772_vm2, %v2155_v57, 0 }
 0x1f8   : > { %v2151_v30 = vor.u32 %v2149_v38, %v2148_v53  ;;  %v2292_v54 = vsel %vm6772_vm2, %v2148_v53, 0  ;;  %v2397_v16 = vshll.u32 %v7287_v55, 16 }
 0x1f9   : > { %v7281_v59 = vsel %vm6772_vm2, 0, %v2158_v12  ;;  %v2385_v5 = vshll.u32 %v2292_v54, 16  ;;  %v2565_v62 = vrot.slane %v2292_v54, 1  ;;  %5313 = vmatpush3.bf16.msra.mxu0 %v5668_v46 }
 0x1fa   : > { %v7291_v19 = vsel %vm6772_vm2, 0, %v2151_v30  ;;  %v2392_v29 = vshll.u32 %v7281_v59, 16  ;;  %v2390_v15 = vshrl.u32 %v7281_v59, 16  ;;  %v2399_v39 = vrot.slane %v2397_v16, 1  ;;  %v7355_v16 = vld [vmem:[%s8314_s3 + $0x200] sm:$0xff]  }
 0x1fb   : > { %3464 = vmatprep.mubr.bf16.mxu0 %v7291_v19  ;;  %v2380_v37 = vshll.u32 %v7291_v19, 16  ;;  %v2378_v58 = vshrl.u32 %v7291_v19, 16  ;;  %v2387_v63 = vrot.slane %v2385_v5, 1  ;;  %v2564_v17 = vrot.slane %v7291_v19, 1  ;;  %5486 = vmatprep.subr.bf16.mxu1 %v7355_v16 }
 0x1fc   : > { %3465 = vmatmul.mubr.bf16.gmra.mrb[56].mxu0 %v7302_v18  ;;  %v2394_v44 = vrot.slane %v2392_v29, 1 }
 0x1fd   : > { %3472 = vmatprep.mubr.bf16.mxu0 %v7281_v59  ;;  %v2382_v6 = vrot.slane %v2380_v37, 1  ;;  %v7325_v51 = vsel %vm2545_vm4, %v2564_v17, %v2565_v62  ;;  %v5670_v17 = vld [vmem:[%s8314_s3 + $0x1a8] sm:$0xff]  }
 0x1fe   : > { %v2395_v49 = vor.u32 %v2394_v44, %v2390_v15 }
 0x1ff   : > { %v2383_v24 = vor.u32 %v2382_v6, %v2378_v58  ;;  %v2567_v58 = vrot.slane %v7281_v59, 1 }
 0x200   : > { %v7322_v47 = vsel %vm2304_vm3, %v2395_v49, %v2399_v39 }
 0x201   : > { %v7314_v32 = vsel %vm2304_vm3, %v2383_v24, %v2387_v63  ;;  %v5669_v24 = vld [vmem:[%s8314_s3 + $0x1e8] sm:$0xff]   ;;  %v2568_v63 = vrot.slane %v7287_v55, 1 }
 0x202   : > { %3311 = vmatprep.mubr.bf16.mxu1 %v7314_v32  ;;  %5314 = vmatprep.subr.bf16.mxu0 %v5669_v24 }
 0x203   : > { %3312 = vmatmul.mubr.bf16.gmra.mrb[24].mxu1 %v7291_v19  ;;  %v7380_v55 = vsel %vm2545_vm4, %v2567_v58, %v2568_v63  ;;  %5315 = vmatpush3.bf16.msra.mxu0 %v5670_v17 }
 0x204   : > { %3319 = vmatprep.mubr.bf16.mxu1 %v7322_v47  ;;  %3473 = vmatmul.mubr.bf16.gmra.mrb[60].mxu0 %v7325_v51 }
 0x20a   : > { %v5468_v26 = vpop.f32.mrb[16].mxu0 }
 0x20b   : > { %v1943_v31 = vadd.f32 %v5468_v26, %v7058_v11  ;;  %v1934_v57 = vpop.f32.mrb[17].mxu0  ;;  %3320 = vmatmul.mubr.bf16.gmra.mrb[28].mxu1 %v7281_v59 }
 0x20c   : > { %v1935_v14 = vadd.f32 %v7058_v11, %v1934_v57  ;;  %v5469_v53 = vpop.f32.mrb[18].mxu0 }
 0x20d   : > { %v1946_v38 = vadd.f32 %v5469_v53, %v7058_v11  ;;  %v1937_v33 = vpop.f32.mrb[19].mxu0  ;;  %v2031_v43 = vmax.f32 %v1943_v31, 0.0  ;;  %v5671_v53 = vld [vmem:[%s8314_s3 + $0x1f0] sm:$0xff]  }
 0x20e   : > { %v1938_v12 = vadd.f32 %v7058_v11, %v1937_v33  ;;  %v2029_v30 = vmax.f32 %v1935_v14, 0.0  ;;  %5316 = vmatprep.subr.bf16.mxu0 %v5671_v53 }
 0x20f   : > { %v2032_v4 = vmax.f32 %v1946_v38, 0.0  ;;  %v5672_v38 = vld [vmem:[%s8314_s3 + $0x1b0] sm:$0xff]  }
 0x210   : > { %v2030_v54 = vmax.f32 %v1938_v12, 0.0  ;;  %5317 = vmatpush3.bf16.msra.mxu0 %v5672_v38 }
 0x211   : > { %v2094_v35 = vpack.c.bf16 %v2032_v4, %v2031_v43 }
 0x212   : > { %v2093_v13 = vpack.c.bf16 %v2030_v54, %v2029_v30 }
 0x213   : > { %v2167_v21 = vshrl.u32 %v2094_v35, 16  ;;  %v2170_v25 = vshll.u32 %v2094_v35, 16 }
 0x214   : > { %v2160_v20 = vshrl.u32 %v2093_v13, 16  ;;  %v2163_v5 = vshll.u32 %v2093_v13, 16  ;;  %v5673_v13 = vld [vmem:[%s8314_s3 + $0x1f8] sm:$0xff]  }
 0x215   : > { %v2169_v29 = vrot.slane %v2167_v21, 7  ;;  %v5674_v21 = vld [vmem:[%s8314_s3 + $0x1b8] sm:$0xff]   ;;  %5318 = vmatprep.subr.bf16.mxu0 %v5673_v13 }
 0x216   : > { %v2162_v37 = vrot.slane %v2160_v20, 7  ;;  %5319 = vmatpush3.bf16.msra.mxu0 %v5674_v21 }
 0x217   : > { %v2172_v44 = vor.u32 %v2170_v25, %v2169_v29  ;;  %v7370_v39 = vsel %vm6772_vm2, %v2169_v29, 0 }
 0x218   : > { %v2165_v6 = vor.u32 %v2163_v5, %v2162_v37  ;;  %v2294_v15 = vsel %vm6772_vm2, %v2162_v37, 0  ;;  %v2421_v14 = vshll.u32 %v7370_v39, 16 }
 0x219   : > { %v7363_v49 = vsel %vm6772_vm2, 0, %v2172_v44  ;;  %v2409_v23 = vshll.u32 %v2294_v15, 16  ;;  %v2571_v35 = vrot.slane %v2294_v15, 1 }
 0x21a   : > { %v7374_v62 = vsel %vm6772_vm2, 0, %v2165_v6  ;;  %v2416_v36 = vshll.u32 %v7363_v49, 16  ;;  %v2414_v57 = vshrl.u32 %v7363_v49, 16  ;;  %v2423_v54 = vrot.slane %v2421_v14, 1 }
 0x21b   : > { %3480 = vmatprep.mubr.bf16.mxu0 %v7374_v62  ;;  %v2404_v2 = vshll.u32 %v7374_v62, 16  ;;  %v2402_v26 = vshrl.u32 %v7374_v62, 16  ;;  %v2411_v12 = vrot.slane %v2409_v23, 1  ;;  %v2570_v4 = vrot.slane %v7374_v62, 1 }
 0x21c   : > { %3481 = vmatmul.mubr.bf16.gmra.mrb[64].mxu0 %v7380_v55  ;;  %v2418_v1 = vrot.slane %v2416_v36, 1  ;;  %v2573_v38 = vrot.slane %v7363_v49, 1 }
 0x21d   : > { %3488 = vmatprep.mubr.bf16.mxu0 %v7363_v49  ;;  %v2406_v31 = vrot.slane %v2404_v2, 1  ;;  %v7410_v8 = vsel %vm2545_vm4, %v2570_v4, %v2571_v35 }
 0x21e   : > { %v2419_v43 = vor.u32 %v2418_v1, %v2414_v57 }
 0x21f   : > { %v2407_v33 = vor.u32 %v2406_v31, %v2402_v26 }
 0x220   : > { %v7407_v20 = vsel %vm2304_vm3, %v2419_v43, %v2423_v54  ;;  %v2574_v43 = vrot.slane %v7370_v39, 1 }
 0x221   : > { %v7396_v30 = vsel %vm2304_vm3, %v2407_v33, %v2411_v12 }
 0x222   : > { %3327 = vmatprep.mubr.bf16.mxu1 %v7396_v30  ;;  %v7436_v21 = vsel %vm2545_vm4, %v2573_v38, %v2574_v43 }
 0x223   : > { %3328 = vmatmul.mubr.bf16.gmra.mrb[32].mxu1 %v7374_v62 }
 0x224   : > { %3335 = vmatprep.mubr.bf16.mxu1 %v7407_v20  ;;  %3489 = vmatmul.mubr.bf16.gmra.mrb[68].mxu0 %v7410_v8 }
 0x22a   : > { %v5472_v29 = vpop.f32.mrb[20].mxu0 }
 0x22b   : > { %v1959_v25 = vadd.f32 %v5472_v29, %v7058_v11  ;;  %v1950_v46 = vpop.f32.mrb[21].mxu0  ;;  %3336 = vmatmul.mubr.bf16.gmra.mrb[36].mxu1 %v7363_v49 }
 0x22c   : > { %v1951_v37 = vadd.f32 %v7058_v11, %v1950_v46  ;;  %v5473_v5 = vpop.f32.mrb[22].mxu0 }
 0x22d   : > { %v1962_v44 = vadd.f32 %v5473_v5, %v7058_v11  ;;  %v1953_v58 = vpop.f32.mrb[23].mxu0  ;;  %v2035_v15 = vmax.f32 %v1959_v25, 0.0 }
 0x22e   : > { %v1954_v6 = vadd.f32 %v7058_v11, %v1953_v58  ;;  %v2033_v63 = vmax.f32 %v1951_v37, 0.0 }
 0x22f   : > { %v2036_v24 = vmax.f32 %v1962_v44, 0.0 }
 0x230   : > { %v2034_v17 = vmax.f32 %v1954_v6, 0.0 }
 0x231   : > { %v2096_v36 = vpack.c.bf16 %v2036_v24, %v2035_v15 }
 0x232   : > { %v2095_v2 = vpack.c.bf16 %v2034_v17, %v2033_v63 }
 0x233   : > { %v2181_v23 = vshrl.u32 %v2096_v36, 16  ;;  %v2184_v31 = vshll.u32 %v2096_v36, 16 }
 0x234   : > { %v2174_v1 = vshrl.u32 %v2095_v2, 16  ;;  %v2177_v14 = vshll.u32 %v2095_v2, 16 }
 0x235   : > { %v2183_v26 = vrot.slane %v2181_v23, 7 }
 0x236   : > { %v2176_v57 = vrot.slane %v2174_v1, 7 }
 0x237   : > { %v2186_v53 = vor.u32 %v2184_v31, %v2183_v26  ;;  %v2297_v54 = vsel %vm6772_vm2, %v2183_v26, 0 }
 0x238   : > { %v2179_v33 = vor.u32 %v2177_v14, %v2176_v57  ;;  %v2296_v12 = vsel %vm6772_vm2, %v2176_v57, 0  ;;  %v2445_v44 = vshll.u32 %v2297_v54, 16 }
 0x239   : > { %v7425_v4 = vsel %vm6772_vm2, 0, %v2186_v53  ;;  %v2433_v29 = vshll.u32 %v2296_v12, 16  ;;  %v2577_v36 = vrot.slane %v2296_v12, 1 }
 0x23a   : > { %v7431_v35 = vsel %vm6772_vm2, 0, %v2179_v33  ;;  %v2440_v13 = vshll.u32 %v7425_v4, 16  ;;  %v2438_v5 = vshrl.u32 %v7425_v4, 16  ;;  %v2447_v17 = vrot.slane %v2445_v44, 1 }
 0x23b   : > { %3496 = vmatprep.mubr.bf16.mxu0 %v7431_v35  ;;  %v2428_v39 = vshll.u32 %v7431_v35, 16  ;;  %v2426_v46 = vshrl.u32 %v7431_v35, 16  ;;  %v2435_v6 = vrot.slane %v2433_v29, 1  ;;  %v2576_v24 = vrot.slane %v7431_v35, 1 }
 0x23c   : > { %3497 = vmatmul.mubr.bf16.gmra.mrb[72].mxu0 %v7436_v21  ;;  %v2442_v25 = vrot.slane %v2440_v13, 1 }
 0x23d   : > { %3504 = vmatprep.mubr.bf16.mxu0 %v7425_v4  ;;  %v2430_v37 = vrot.slane %v2428_v39, 1  ;;  %v7453_v23 = vsel %vm2545_vm4, %v2576_v24, %v2577_v36  ;;  %v2579_v24 = vrot.slane %v7425_v4, 1 }
 0x23e   : > { %v2443_v15 = vor.u32 %v2442_v25, %v2438_v5 }
 0x23f   : > { %v2431_v58 = vor.u32 %v2430_v37, %v2426_v46 }
 0x240   : > { %v7450_v2 = vsel %vm2304_vm3, %v2443_v15, %v2447_v17 }
 0x241   : > { %v7445_v63 = vsel %vm2304_vm3, %v2431_v58, %v2435_v6 }
 0x242   : > { %3343 = vmatprep.mubr.bf16.mxu1 %v7445_v63 }
 0x243   : > { %3344 = vmatmul.mubr.bf16.gmra.mrb[40].mxu1 %v7431_v35 }
 0x244   : > { %3351 = vmatprep.mubr.bf16.mxu1 %v7450_v2  ;;  %3505 = vmatmul.mubr.bf16.gmra.mrb[76].mxu0 %v7453_v23 }
 0x24a   : > { %v5476_v1 = vpop.f32.mrb[24].mxu0 }
 0x24b   : > { %v1975_v26 = vadd.f32 %v5476_v1, %v7058_v11  ;;  %v1966_v31 = vpop.f32.mrb[25].mxu0  ;;  %3352 = vmatmul.mubr.bf16.gmra.mrb[44].mxu1 %v7425_v4  ;;  %v2580_v1 = vrot.slane %v2297_v54, 1 }
 0x24c   : > { %v1967_v57 = vadd.f32 %v7058_v11, %v1966_v31  ;;  %v5477_v14 = vpop.f32.mrb[26].mxu0 }
 0x24d   : > { %v1978_v53 = vadd.f32 %v5477_v14, %v7058_v11  ;;  %v1969_v38 = vpop.f32.mrb[27].mxu0  ;;  %v2039_v12 = vmax.f32 %v1975_v26, 0.0 }
 0x24e   : > { %v1970_v33 = vadd.f32 %v7058_v11, %v1969_v38  ;;  %v2037_v13 = vmax.f32 %v1967_v57, 0.0 }
 0x24f   : > { %v2040_v43 = vmax.f32 %v1978_v53, 0.0  ;;  %v7480_v53 = vsel %vm2545_vm4, %v2579_v24, %v2580_v1 }
 0x250   : > { %v2038_v39 = vmax.f32 %v1970_v33, 0.0 }
 0x251   : > { %v2098_v29 = vpack.c.bf16 %v2040_v43, %v2039_v12 }
 0x252   : > { %v2097_v25 = vpack.c.bf16 %v2038_v39, %v2037_v13 }
 0x253   : > { %v2195_v46 = vshrl.u32 %v2098_v29, 16  ;;  %v2198_v44 = vshll.u32 %v2098_v29, 16 }
 0x254   : > { %v2188_v37 = vshrl.u32 %v2097_v25, 16  ;;  %v2191_v6 = vshll.u32 %v2097_v25, 16 }
 0x255   : > { %v2197_v5 = vrot.slane %v2195_v46, 7 }
 0x256   : > { %v2190_v58 = vrot.slane %v2188_v37, 7 }
 0x257   : > { %v2200_v15 = vor.u32 %v2198_v44, %v2197_v5  ;;  %v7471_v31 = vsel %vm6772_vm2, %v2197_v5, 0 }
 0x258   : > { %v2193_v17 = vor.u32 %v2191_v6, %v2190_v58  ;;  %v2298_v36 = vsel %vm6772_vm2, %v2190_v58, 0  ;;  %v2469_v39 = vshll.u32 %v7471_v31, 16 }
 0x259   : > { %v7467_v26 = vsel %vm6772_vm2, 0, %v2200_v15  ;;  %v2457_v38 = vshll.u32 %v2298_v36, 16  ;;  %v2583_v58 = vrot.slane %v2298_v36, 1 }
 0x25a   : > { %8337 = vst [vmem:[#allocation9_spill] sm:$0xff] %v7467_v26  ;;  %v7475_v57 = vsel %vm6772_vm2, 0, %v2193_v17  ;;  %v2464_v14 = vshll.u32 %v7467_v26, 16  ;;  %v2462_v13 = vshrl.u32 %v7467_v26, 16  ;;  %v2471_v44 = vrot.slane %v2469_v39, 1 }
 0x25b   : > { %3512 = vmatprep.mubr.bf16.mxu0 %v7475_v57  ;;  %v2452_v54 = vshll.u32 %v7475_v57, 16  ;;  %v2450_v12 = vshrl.u32 %v7475_v57, 16  ;;  %v2459_v25 = vrot.slane %v2457_v38, 1  ;;  %v2582_v37 = vrot.slane %v7475_v57, 1 }
 0x25c   : > { %3513 = vmatmul.mubr.bf16.gmra.mrb[80].mxu0 %v7480_v53  ;;  %v2466_v33 = vrot.slane %v2464_v14, 1 }
 0x25d   : > { %3520 = vmatprep.mubr.bf16.mxu0 %v7467_v26  ;;  %v2454_v43 = vrot.slane %v2452_v54, 1  ;;  %v7498_v15 = vsel %vm2545_vm4, %v2582_v37, %v2583_v58 }
 0x25e   : > { %v2467_v46 = vor.u32 %v2466_v33, %v2462_v13 }
 0x25f   : > { %v2455_v29 = vor.u32 %v2454_v43, %v2450_v12 }
 0x260   : > { %v7495_v6 = vsel %vm2304_vm3, %v2467_v46, %v2471_v44 }
 0x261   : > { %v7490_v5 = vsel %vm2304_vm3, %v2455_v29, %v2459_v25 }
 0x262   : > { %3359 = vmatprep.mubr.bf16.mxu1 %v7490_v5 }
 0x263   : > { %3360 = vmatmul.mubr.bf16.gmra.mrb[48].mxu1 %v7475_v57 }
 0x264   : > { %3367 = vmatprep.mubr.bf16.mxu1 %v7495_v6  ;;  %3521 = vmatmul.mubr.bf16.gmra.mrb[84].mxu0 %v7498_v15 }
 0x26a   : > { %v5480_v24 = vpop.f32.mrb[28].mxu0 }
 0x26b   : > { %v1991_v17 = vadd.f32 %v5480_v24, %v7058_v11  ;;  %v1982_v1 = vpop.f32.mrb[29].mxu0  ;;  %3368 = vmatmul.mubr.bf16.gmra.mrb[52].mxu1 %v7467_v26 }
 0x26c   : > { %v1983_v36 = vadd.f32 %v7058_v11, %v1982_v1  ;;  %v5481_v14 = vpop.f32.mrb[30].mxu0  ;;  %v2585_v1 = vrot.slane %v7467_v26, 1 }
 0x26d   : > { %v1994_v54 = vadd.f32 %v5481_v14, %v7058_v11  ;;  %v1985_v38 = vpop.f32.mrb[31].mxu0  ;;  %v2043_v12 = vmax.f32 %v1991_v17, 0.0 }
 0x26e   : > { %v1986_v33 = vadd.f32 %v7058_v11, %v1985_v38  ;;  %v2041_v13 = vmax.f32 %v1983_v36, 0.0  ;;  %v2586_v36 = vrot.slane %v7471_v31, 1 }
 0x26f   : > { %v2044_v43 = vmax.f32 %v1994_v54, 0.0 }
 0x270   : > { %v2042_v39 = vmax.f32 %v1986_v33, 0.0  ;;  %v7528_v31 = vsel %vm2545_vm4, %v2585_v1, %v2586_v36 }
 0x271   : > { %v2100_v29 = vpack.c.bf16 %v2044_v43, %v2043_v12 }
 0x272   : > { %v2099_v25 = vpack.c.bf16 %v2042_v39, %v2041_v13 }
 0x273   : > { %v2209_v46 = vshrl.u32 %v2100_v29, 16  ;;  %v2212_v58 = vshll.u32 %v2100_v29, 16 }
 0x274   : > { %v2202_v37 = vshrl.u32 %v2099_v25, 16  ;;  %v2205_v61 = vshll.u32 %v2099_v25, 16 }
 0x275   : > { %v2211_v44 = vrot.slane %v2209_v46, 7 }
 0x276   : > { %v2204_v24 = vrot.slane %v2202_v37, 7 }
 0x277   : > { %v2214_v7 = vor.u32 %v2212_v58, %v2211_v44  ;;  %v7517_v38 = vsel %vm6772_vm2, %v2211_v44, 0 }
 0x278   : > { %v2207_v41 = vor.u32 %v2205_v61, %v2204_v24  ;;  %v2300_v14 = vsel %vm6772_vm2, %v2204_v24, 0  ;;  %v4990_v11 = vpop.f32.mrb[4].mxu1  ;;  %v2493_v44 = vshll.u32 %v7517_v38, 16 }
 0x279   : > { %v4991_v17 = vpop.f32.mrb[5].mxu1  ;;  %v7513_v54 = vsel %vm6772_vm2, 0, %v2214_v7  ;;  %v2481_v39 = vshll.u32 %v2300_v14, 16 }
 0x27a   : > { %v7519_v33 = vadd.f32 %v4991_v17, %v4990_v11  ;;  %v4993_v12 = vpop.f32.mrb[6].mxu1  ;;  %v7523_v61 = vsel %vm6772_vm2, 0, %v2207_v41  ;;  %v2488_v43 = vshll.u32 %v7513_v54, 16  ;;  %v2486_v37 = vshrl.u32 %v7513_v54, 16 }
 0x27b   : > { %8338 = vst [vmem:[#allocation10_spill] sm:$0xff] %v7523_v61  ;;  %v4994_v13 = vpop.f32.mrb[7].mxu1  ;;  %3528 = vmatprep.mubr.bf16.mxu0 %v7523_v61  ;;  %v2476_v7 = vshll.u32 %v7523_v61, 16  ;;  %v2474_v41 = vshrl.u32 %v7523_v61, 16  ;;  %v2483_v24 = vrot.slane %v2481_v39, 1  ;;  %v2588_v11 = vrot.slane %v7523_v61, 1 }
 0x27c   : > { %v7531_v29 = vadd.f32 %v4994_v13, %v4993_v12  ;;  %3529 = vmatmul.mubr.bf16.gmra.mrb[88].mxu0 %v7528_v31  ;;  %v2490_v25 = vrot.slane %v2488_v43, 1  ;;  %v2495_v36 = vrot.slane %v2493_v44, 1  ;;  %v2589_v12 = vrot.slane %v2300_v14, 1  ;;  %v5810_v14 = vld [vmem:[%s8313_s2] ss:$0 sm:$0xff] }
 0x27d   : > { %3536 = vmatprep.mubr.bf16.mxu0 %v7513_v54  ;;  %v2478_v46 = vrot.slane %v2476_v7, 1 }
 0x27e   : > { %v2491_v1 = vor.u32 %v2490_v25, %v2486_v37  ;;  %v7548_v13 = vsel %vm2545_vm4, %v2588_v11, %v2589_v12 }
 0x27f   : > { %v2479_v58 = vor.u32 %v2478_v46, %v2474_v41 }
 0x280   : > { %v7545_v43 = vsel %vm2304_vm3, %v2491_v1, %v2495_v36  ;;  %v5675_v1 = vld [vmem:[%s8314_s3 + $0x208] sm:$0xff]  }
 0x281   : > { %v7540_v17 = vsel %vm2304_vm3, %v2479_v58, %v2483_v24  ;;  %8339 = vst [vmem:[#allocation11_spill] sm:$0xff] %v7545_v43  ;;  %v7560_v24 = vld [vmem:[%s8315_s4] ss:$0 sm:$0xff] }
 0x282   : > { %3375 = vmatprep.mubr.bf16.mxu1 %v7540_v17  ;;  %v3266_v11 = vadd.f32 %v7283_v3, %v7560_v24  ;;  %v5676_v3 = vld [vmem:[%s8314_s3 + $0x210] sm:$0xff]  }
 0x283   : > { %3376 = vmatmul.mubr.bf16.gmra.mrb[56].mxu1 %v7523_v61 }
 0x284   : > { %3383 = vmatprep.mubr.bf16.mxu1 %v7545_v43  ;;  %3537 = vmatmul.mubr.bf16.gmra.mrb[92].mxu0 %v7548_v13  ;;  %v2592_v43 = vrot.slane %v7517_v38, 1  ;;  %v3274_v38 = vadd.f32 %v7519_v33, %v7560_v24 }
 0x28a   : > { %v5484_v7 = vpop.f32.mrb[32].mxu0 }
 0x28b   : > { %v1998_v39 = vpop.f32.mrb[33].mxu0  ;;  %3384 = vmatmul.mubr.bf16.gmra.mrb[60].mxu1 %v7513_v54  ;;  %v3269_v7 = vadd.f32 %v7306_v50, %v7560_v24 }
 0x28c   : > { %v1999_v25 = vadd.f32 %v5810_v14, %v1998_v39  ;;  %v5485_v41 = vpop.f32.mrb[34].mxu0  ;;  %3585 = vmatprep.mubr.bf16.mxu1 %v7185_v34 }
 0x28d   : > { %v2001_v46 = vpop.f32.mrb[35].mxu0 }
 0x28e   : > { %v2045_v37 = vmax.f32 %v1999_v25, 0.0  ;;  %v2002_v44 = vadd.f32 %v5810_v14, %v2001_v46 }
 0x290   : > { %v2046_v58 = vmax.f32 %v2002_v44, 0.0 }
 0x292   : > { %v2101_v36 = vpack.c.bf16 %v2046_v58, %v2045_v37  ;;  %v5096_v12 = vpop.f32.mrb[36].mxu0 }
 0x293   : > { %3586 = vmatmul.mubr.bf16.vlgmr.msra.gmra.mrb[64].mxu1 %v7108_v9  ;;  %v5097_v34 = vpop.f32.mrb[37].mxu0 }
 0x294   : > { %v2216_v39 = vshrl.u32 %v2101_v36, 16  ;;  %v2219_v14 = vshll.u32 %v2101_v36, 16  ;;  %5487 = vmatpush3.bf16.msra.mxu1 %v7355_v16  ;;  %3593 = vmatprep.mubr.bf16.mxu1 %v7196_v27  ;;  %v5098_v25 = vadd.f32 %v5097_v34, %v5096_v12  ;;  %v5099_v41 = vpop.f32.mrb[38].mxu0  ;;  %v2591_v36 = vrot.slane %v7513_v54, 1 }
 0x295   : > { %v5100_v46 = vpop.f32.mrb[39].mxu0  ;;  %5488 = vmatprep.subr.bf16.mxu1 %v5675_v1 }
 0x296   : > { %v7575_v37 = vrot.slane %v2216_v39, 7  ;;  %v4996_v9 = vpop.f32.mrb[8].mxu1  ;;  %v7577_v44 = vadd.f32 %v5098_v25, %v3266_v11  ;;  %v5101_v50 = vadd.f32 %v5100_v46, %v5099_v41  ;;  %v5677_v25 = vld [vmem:[%s8314_s3 + $0x218] sm:$0xff]   ;;  %v3277_v46 = vadd.f32 %v7531_v29, %v7560_v24  ;;  %v5679_v29 = vld [vmem:[%s8314_s3 + $0x228] sm:$0xff]  }
 0x297   : > { %v4997_v58 = vpop.f32.mrb[9].mxu1 }
 0x298   : > { %v2221_v16 = vor.u32 %v2219_v14, %v7575_v37  ;;  %v4998_v27 = vadd.f32 %v4997_v58, %v4996_v9  ;;  %v4999_v12 = vpop.f32.mrb[10].mxu1  ;;  %v7581_v34 = vadd.f32 %v5101_v50, %v3269_v7  ;;  %5489 = vmatpush3.bf16.msra.mxu1 %v5675_v1  ;;  %v7594_v1 = vsel %vm2545_vm4, %v2591_v36, %v2592_v43 }
 0x299   : > { %v5000_v61 = vpop.f32.mrb[11].mxu1  ;;  %5490 = vmatprep.subr.bf16.mxu1 %v5676_v3 }
 0x29a   : > { %v5001_v39 = vadd.f32 %v5000_v61, %v4999_v12  ;;  %v5102_v26 = vpop.f32.mrb[40].mxu0  ;;  %v7586_v11 = vsel %vm6772_vm2, 0, %v2221_v16 }
 0x29b   : > { %v5103_v14 = vpop.f32.mrb[41].mxu0  ;;  %3544 = vmatprep.mubr.bf16.mxu0 %v7586_v11  ;;  %3594 = vmatmul.mubr.bf16.gmra.mrb[68].mxu1 %v7168_v42 }
 0x29c   : > { %v5104_v61 = vadd.f32 %v5103_v14, %v5102_v26  ;;  %v5105_v7 = vpop.f32.mrb[42].mxu0  ;;  %3545 = vmatmul.mubr.bf16.gmra.mrb[96].mxu0 %v7594_v1  ;;  %3601 = vmatprep.mubr.bf16.mxu1 %v7230_v40  ;;  %v5678_v26 = vld [vmem:[%s8314_s3 + $0x220] sm:$0xff]  }
 0x29d   : > { %v5106_v41 = vpop.f32.mrb[43].mxu0  ;;  %3746 = vmatprep.mubr.bf16.mxu0 %v7168_v42  ;;  %5491 = vmatpush3.bf16.msra.mxu1 %v5676_v3 }
 0x29e   : > { %v7603_v9 = vadd.f32 %v5104_v61, %v3274_v38  ;;  %v5107_v43 = vadd.f32 %v5106_v41, %v5105_v7  ;;  %v5002_v50 = vpop.f32.mrb[12].mxu1  ;;  %5492 = vmatprep.subr.bf16.mxu1 %v5677_v25  ;;  %v3282_v38 = vadd.f32 %v4998_v27, %v7560_v24  ;;  %v5680_v27 = vld [vmem:[%s8314_s3 + $0x230] sm:$0xff]  }
 0x29f   : > { %v5003_v33 = vpop.f32.mrb[13].mxu1 }
 0x2a0   : > { %v7608_v58 = vadd.f32 %v5107_v43, %v3277_v46  ;;  %v5004_v36 = vadd.f32 %v5003_v33, %v5002_v50  ;;  %v5005_v16 = vpop.f32.mrb[14].mxu1 }
 0x2a1   : > { %v5006_v12 = vpop.f32.mrb[15].mxu1  ;;  %5493 = vmatpush3.bf16.msra.mxu1 %v5677_v25  ;;  %v3285_v25 = vadd.f32 %v5001_v39, %v7560_v24 }
 0x2a2   : > { %v5007_v42 = vadd.f32 %v5006_v12, %v5005_v16  ;;  %v5108_v3 = vpop.f32.mrb[44].mxu0  ;;  %5494 = vmatprep.subr.bf16.mxu1 %v5678_v26 }
 0x2a3   : > { %v5109_v14 = vpop.f32.mrb[45].mxu0  ;;  %3602 = vmatmul.mubr.bf16.gmra.mrb[72].mxu1 %v7177_v45 }
 0x2a4   : > { %v5110_v61 = vadd.f32 %v5109_v14, %v5108_v3  ;;  %v5111_v7 = vpop.f32.mrb[46].mxu0  ;;  %3609 = vmatprep.mubr.bf16.mxu1 %v7251_v52  ;;  %3747 = vmatmul.mubr.bf16.vlgmr.msra.gmra.mrb[100].mxu0 %v7155_v48  ;;  %v5681_v48 = vld [vmem:[%s8314_s3 + $0x238] sm:$0xff]   ;;  %v3293_v3 = vadd.f32 %v5007_v42, %v7560_v24 }
 0x2a5   : > { %v5112_v41 = vpop.f32.mrb[47].mxu0  ;;  %3754 = vmatprep.mubr.bf16.mxu0 %v7177_v45  ;;  %5495 = vmatpush3.bf16.msra.mxu1 %v5678_v26  ;;  %v3290_v26 = vadd.f32 %v5004_v36, %v7560_v24 }
 0x2a6   : > { %v7619_v46 = vadd.f32 %v5110_v61, %v3282_v38  ;;  %v5113_v43 = vadd.f32 %v5112_v41, %v5111_v7  ;;  %5496 = vmatprep.subr.bf16.mxu1 %v5679_v29 }
 0x2a8   : > { %v7624_v50 = vadd.f32 %v5113_v43, %v3285_v25 }
 0x2a9   : > { %5497 = vmatpush3.bf16.msra.mxu1 %v5679_v29 }
 0x2aa   : > { %5498 = vmatprep.subr.bf16.mxu1 %v5680_v27 }
 0x2ab   : > { %3610 = vmatmul.mubr.bf16.gmra.mrb[76].mxu1 %v7240_v22 }
 0x2ac   : > { %3617 = vmatprep.mubr.bf16.mxu1 %v7302_v18  ;;  %3755 = vmatmul.mubr.bf16.gmra.mrb[104].mxu0 %v7147_v56 }
 0x2ad   : > { %3762 = vmatprep.mubr.bf16.mxu0 %v7240_v22  ;;  %5499 = vmatpush3.bf16.msra.mxu1 %v5680_v27 }
 0x2ae   : > { %5500 = vmatprep.subr.bf16.mxu1 %v5681_v48 }
 0x2af   : > { %v5114_v45 = vpop.f32.mrb[48].mxu0 }
 0x2b0   : > { %v5115_v39 = vpop.f32.mrb[49].mxu0 }
 0x2b1   : > { %v5116_v33 = vadd.f32 %v5115_v39, %v5114_v45  ;;  %v5117_v16 = vpop.f32.mrb[50].mxu0  ;;  %5501 = vmatpush3.bf16.msra.mxu1 %v5681_v48 }
 0x2b2   : > { %v5118_v12 = vpop.f32.mrb[51].mxu0 }
 0x2b3   : > { %v7635_v29 = vadd.f32 %v5116_v33, %v3290_v26  ;;  %v5119_v14 = vadd.f32 %v5118_v12, %v5117_v16  ;;  %3618 = vmatmul.mubr.bf16.gmra.mrb[80].mxu1 %v7248_v28 }
 0x2b4   : > { %3625 = vmatprep.mubr.bf16.mxu1 %v7325_v51  ;;  %3763 = vmatmul.mubr.bf16.gmra.mrb[108].mxu0 %v7225_v60 }
 0x2b5   : > { %v7640_v56 = vadd.f32 %v5119_v14, %v3293_v3  ;;  %3770 = vmatprep.mubr.bf16.mxu0 %v7248_v28 }
 0x2b6   : > { %v5008_v22 = vpop.f32.mrb[16].mxu1 }
 0x2b7   : > { %v5009_v36 = vpop.f32.mrb[17].mxu1  ;;  %v5120_v38 = vpop.f32.mrb[52].mxu0 }
 0x2b8   : > { %v5010_v61 = vadd.f32 %v5009_v36, %v5008_v22  ;;  %v5011_v7 = vpop.f32.mrb[18].mxu1  ;;  %v5121_v41 = vpop.f32.mrb[53].mxu0 }
 0x2b9   : > { %v5122_v42 = vadd.f32 %v5121_v41, %v5120_v38  ;;  %v5012_v25 = vpop.f32.mrb[19].mxu1  ;;  %v5123_v43 = vpop.f32.mrb[54].mxu0 }
 0x2ba   : > { %v3298_v27 = vadd.f32 %v5010_v61, %v7560_v24  ;;  %v5013_v48 = vadd.f32 %v5012_v25, %v5011_v7  ;;  %v5124_v45 = vpop.f32.mrb[55].mxu0 }
 0x2bb   : > { %v5125_v39 = vadd.f32 %v5124_v45, %v5123_v43  ;;  %3626 = vmatmul.mubr.bf16.gmra.mrb[84].mxu1 %v7314_v32 }
 0x2bc   : > { %v7645_v60 = vadd.f32 %v5122_v42, %v3298_v27  ;;  %v3301_v28 = vadd.f32 %v5013_v48, %v7560_v24  ;;  %3633 = vmatprep.mubr.bf16.mxu1 %v7380_v55  ;;  %3771 = vmatmul.mubr.bf16.gmra.mrb[112].mxu0 %v7214_v10 }
 0x2bd   : > { %3778 = vmatprep.mubr.bf16.mxu0 %v7314_v32 }
 0x2be   : > { %v7651_v26 = vadd.f32 %v5125_v39, %v3301_v28  ;;  %v5014_v33 = vpop.f32.mrb[20].mxu1 }
 0x2bf   : > { %v5015_v16 = vpop.f32.mrb[21].mxu1 }
 0x2c0   : > { %v5016_v12 = vadd.f32 %v5015_v16, %v5014_v33  ;;  %v5017_v3 = vpop.f32.mrb[22].mxu1 }
 0x2c1   : > { %v5018_v14 = vpop.f32.mrb[23].mxu1 }
 0x2c2   : > { %v5019_v22 = vadd.f32 %v5018_v14, %v5017_v3  ;;  %v3306_v36 = vadd.f32 %v5016_v12, %v7560_v24 }
 0x2c3   : > { %3634 = vmatmul.mubr.bf16.gmra.mrb[88].mxu1 %v7322_v47 }
 0x2c4   : > { %3641 = vmatprep.mubr.bf16.mxu1 %v7410_v8  ;;  %3779 = vmatmul.mubr.bf16.gmra.mrb[116].mxu0 %v7291_v19  ;;  %v3309_v41 = vadd.f32 %v5019_v22, %v7560_v24 }
 0x2c5   : > { %3786 = vmatprep.mubr.bf16.mxu0 %v7322_v47 }
 0x2cb   : > { %3642 = vmatmul.mubr.bf16.gmra.mrb[92].mxu1 %v7396_v30 }
 0x2cc   : > { %3649 = vmatprep.mubr.bf16.mxu1 %v7436_v21  ;;  %3787 = vmatmul.mubr.bf16.gmra.mrb[120].mxu0 %v7281_v59 }
 0x2cd   : > { %3794 = vmatprep.mubr.bf16.mxu0 %v7396_v30 }
 0x2cf   : > { %v5126_v10 = vpop.f32.mrb[56].mxu0 }
 0x2d0   : > { %v5127_v32 = vpop.f32.mrb[57].mxu0 }
 0x2d1   : > { %v5128_v38 = vadd.f32 %v5127_v32, %v5126_v10  ;;  %v5129_v61 = vpop.f32.mrb[58].mxu0 }
 0x2d2   : > { %v5130_v7 = vpop.f32.mrb[59].mxu0 }
 0x2d3   : > { %v7663_v19 = vadd.f32 %v5128_v38, %v3306_v36  ;;  %v5131_v47 = vadd.f32 %v5130_v7, %v5129_v61  ;;  %3650 = vmatmul.mubr.bf16.gmra.mrb[96].mxu1 %v7407_v20 }
 0x2d4   : > { %3657 = vmatprep.mubr.bf16.mxu1 %v7453_v23  ;;  %3795 = vmatmul.mubr.bf16.gmra.mrb[124].mxu0 %v7374_v62 }
 0x2d5   : > { %v7668_v59 = vadd.f32 %v5131_v47, %v3309_v41  ;;  %3802 = vmatprep.mubr.bf16.mxu0 %v7407_v20 }
 0x2d6   : > { %v5020_v30 = vpop.f32.mrb[24].mxu1 }
 0x2d7   : > { %v5021_v42 = vpop.f32.mrb[25].mxu1  ;;  %v5132_v25 = vpop.f32.mrb[60].mxu0 }
 0x2d8   : > { %v5022_v43 = vadd.f32 %v5021_v42, %v5020_v30  ;;  %v5023_v27 = vpop.f32.mrb[26].mxu1  ;;  %v5133_v48 = vpop.f32.mrb[61].mxu0 }
 0x2d9   : > { %v5134_v45 = vadd.f32 %v5133_v48, %v5132_v25  ;;  %v5024_v39 = vpop.f32.mrb[27].mxu1  ;;  %v5135_v28 = vpop.f32.mrb[62].mxu0 }
 0x2da   : > { %v3314_v33 = vadd.f32 %v5022_v43, %v7560_v24  ;;  %v5025_v16 = vadd.f32 %v5024_v39, %v5023_v27  ;;  %v5136_v12 = vpop.f32.mrb[63].mxu0 }
 0x2db   : > { %v5137_v3 = vadd.f32 %v5136_v12, %v5135_v28  ;;  %3658 = vmatmul.mubr.bf16.gmra.mrb[100].mxu1 %v7445_v63 }
 0x2dc   : > { %v7673_v62 = vadd.f32 %v5134_v45, %v3314_v33  ;;  %v3317_v20 = vadd.f32 %v5025_v16, %v7560_v24  ;;  %3665 = vmatprep.mubr.bf16.mxu1 %v7480_v53  ;;  %3803 = vmatmul.mubr.bf16.gmra.mrb[128].mxu0 %v7363_v49 }
 0x2dd   : > { %3810 = vmatprep.mubr.bf16.mxu0 %v7445_v63 }
 0x2de   : > { %v7679_v14 = vadd.f32 %v5137_v3, %v3317_v20  ;;  %v5026_v22 = vpop.f32.mrb[28].mxu1 }
 0x2df   : > { %v5027_v10 = vpop.f32.mrb[29].mxu1 }
 0x2e0   : > { %v5028_v32 = vadd.f32 %v5027_v10, %v5026_v22  ;;  %v5029_v36 = vpop.f32.mrb[30].mxu1  ;;  %v8340_v22 = vld [vmem:[#allocation9_spill] sm:$0xff]  ;;  %v2302_v10 = vsel %vm6772_vm2, %v7575_v37, 0  ;;  %v8341_v37 = vld [vmem:[#allocation11_spill] sm:$0xff] }
 0x2e1   : > { %v5030_v38 = vpop.f32.mrb[31].mxu1  ;;  %v2618_v0 = vshll.u32 %v2302_v10, 16 }
 0x2e2   : > { %v5031_v61 = vadd.f32 %v5030_v38, %v5029_v36  ;;  %v3322_v7 = vadd.f32 %v5028_v32, %v7560_v24  ;;  %v2613_v38 = vshll.u32 %v7586_v11, 16 }
 0x2e3   : > { %3666 = vmatmul.mubr.bf16.gmra.mrb[104].mxu1 %v7450_v2 }
 0x2e4   : > { %3673 = vmatprep.mubr.bf16.mxu1 %v7498_v15  ;;  %3811 = vmatmul.mubr.bf16.gmra.mrb[132].mxu0 %v7431_v35  ;;  %v3325_v42 = vadd.f32 %v5031_v61, %v7560_v24 }
 0x2e5   : > { %3818 = vmatprep.mubr.bf16.mxu0 %v7450_v2 }
 0x2eb   : > { %3674 = vmatmul.mubr.bf16.gmra.mrb[108].mxu1 %v7490_v5 }
 0x2ec   : > { %3681 = vmatprep.mubr.bf16.mxu1 %v7528_v31  ;;  %3819 = vmatmul.mubr.bf16.gmra.mrb[136].mxu0 %v7425_v4 }
 0x2ed   : > { %3826 = vmatprep.mubr.bf16.mxu0 %v7490_v5 }
 0x2ef   : > { %v5138_v49 = vpop.f32.mrb[64].mxu0 }
 0x2f0   : > { %v5139_v63 = vpop.f32.mrb[65].mxu0 }
 0x2f1   : > { %v5140_v41 = vadd.f32 %v5139_v63, %v5138_v49  ;;  %v5141_v47 = vpop.f32.mrb[66].mxu0  ;;  %v2625_v49 = vrot.slane %v7586_v11, 1  ;;  %v2626_v63 = vrot.slane %v2302_v10, 1 }
 0x2f2   : > { %v5142_v30 = vpop.f32.mrb[67].mxu0 }
 0x2f3   : > { %v7691_v35 = vadd.f32 %v5140_v41, %v3322_v7  ;;  %v5143_v2 = vadd.f32 %v5142_v30, %v5141_v47  ;;  %3682 = vmatmul.mubr.bf16.gmra.mrb[112].mxu1 %v7495_v6 }
 0x2f4   : > { %3689 = vmatprep.mubr.bf16.mxu1 %v7548_v13  ;;  %3827 = vmatmul.mubr.bf16.gmra.mrb[140].mxu0 %v7475_v57 }
 0x2f5   : > { %v7696_v4 = vadd.f32 %v5143_v2, %v3325_v42  ;;  %3834 = vmatprep.mubr.bf16.mxu0 %v7495_v6  ;;  %v2611_v42 = vshrl.u32 %v7586_v11, 16  ;;  %v2615_v2 = vrot.slane %v2613_v38, 1 }
 0x2f6   : > { %v5032_v5 = vpop.f32.mrb[32].mxu1 }
 0x2f7   : > { %v5033_v25 = vpop.f32.mrb[33].mxu1  ;;  %v5144_v43 = vpop.f32.mrb[68].mxu0 }
 0x2f8   : > { %v5034_v27 = vadd.f32 %v5033_v25, %v5032_v5  ;;  %v5035_v48 = vpop.f32.mrb[34].mxu1  ;;  %v5145_v45 = vpop.f32.mrb[69].mxu0  ;;  %v8342_v5 = vld [vmem:[#allocation10_spill] sm:$0xff]  ;;  %v2616_v25 = vor.u32 %v2615_v2, %v2611_v42 }
 0x2f9   : > { %v5146_v39 = vadd.f32 %v5145_v45, %v5144_v43  ;;  %v5036_v28 = vpop.f32.mrb[35].mxu1  ;;  %v5147_v33 = vpop.f32.mrb[70].mxu0  ;;  %v2620_v43 = vrot.slane %v2618_v0, 1  ;;  %v8345_v0 = vld [vmem:[#allocation5_spill] sm:$0xff] }
 0x2fa   : > { %v3330_v16 = vadd.f32 %v5034_v27, %v7560_v24  ;;  %v5037_v12 = vadd.f32 %v5036_v28, %v5035_v48  ;;  %v5148_v3 = vpop.f32.mrb[71].mxu0  ;;  %v8343_v48 = vld [vmem:[#allocation8_spill] sm:$0xff] }
 0x2fb   : > { %v5149_v20 = vadd.f32 %v5148_v3, %v5147_v33  ;;  %3690 = vmatmul.mubr.bf16.gmra.mrb[116].mxu1 %v7540_v17  ;;  %v2621_v27 = vsel %vm2304_vm3, %v2616_v25, %v2620_v43 }
 0x2fc   : > { %v7701_v57 = vadd.f32 %v5146_v39, %v3330_v16  ;;  %v3333_v6 = vadd.f32 %v5037_v12, %v7560_v24  ;;  %3697 = vmatprep.mubr.bf16.mxu1 %v7594_v1  ;;  %3835 = vmatmul.mubr.bf16.gmra.mrb[144].mxu0 %v8340_v22  ;;  %v8344_v22 = vld [vmem:[#allocation6_spill] sm:$0xff] }
 0x2fd   : > { %3842 = vmatprep.mubr.bf16.mxu0 %v7540_v17  ;;  %v7717_v17 = vsel %vm2545_vm4, %v2625_v49, %v2626_v63 }
 0x2fe   : > { %v7710_v32 = vadd.f32 %v5149_v20, %v3333_v6  ;;  %v5038_v36 = vpop.f32.mrb[36].mxu1 }
 0x2ff   : > { %v5039_v61 = vpop.f32.mrb[37].mxu1 }
 0x300   : > { %v5040_v7 = vadd.f32 %v5039_v61, %v5038_v36  ;;  %v5041_v41 = vpop.f32.mrb[38].mxu1 }
 0x301   : > { %v5042_v47 = vpop.f32.mrb[39].mxu1 }
 0x302   : > { %v5043_v30 = vadd.f32 %v5042_v47, %v5041_v41  ;;  %v3338_v28 = vadd.f32 %v5040_v7, %v7560_v24 }
 0x303   : > { %3698 = vmatmul.mubr.bf16.gmra.mrb[120].mxu1 %v8341_v37 }
 0x304   : > { %3705 = vmatprep.mubr.bf16.mxu1 %v7717_v17  ;;  %3843 = vmatmul.mubr.bf16.gmra.mrb[148].mxu0 %v8342_v5  ;;  %v3341_v3 = vadd.f32 %v5043_v30, %v7560_v24 }
 0x305   : > { %3850 = vmatprep.mubr.bf16.mxu0 %v8341_v37 }
 0x30b   : > { %3706 = vmatmul.mubr.bf16.gmra.mrb[124].mxu1 %v2621_v27 }
 0x30c   : > { %3851 = vmatmul.mubr.bf16.gmra.mrb[152].mxu0 %v7513_v54  ;;  %5502 = vmatprep.mubr.bf16.mxu1 %v8343_v48 }
 0x30d   : > { %3858 = vmatprep.mubr.bf16.mxu0 %v2621_v27 }
 0x30f   : > { %v5150_v45 = vpop.f32.mrb[72].mxu0 }
 0x310   : > { %v5151_v39 = vpop.f32.mrb[73].mxu0 }
 0x311   : > { %v5152_v33 = vadd.f32 %v5151_v39, %v5150_v45  ;;  %v5153_v16 = vpop.f32.mrb[74].mxu0 }
 0x312   : > { %v5154_v12 = vpop.f32.mrb[75].mxu0 }
 0x313   : > { %v7727_v20 = vadd.f32 %v5152_v33, %v3338_v28  ;;  %v5155_v6 = vadd.f32 %v5154_v12, %v5153_v16  ;;  %5503 = vmatmul.mubr.bf16.vlgmr.msra.gmra.mrb[128].mxu1 %v7230_v40 }
 0x314   : > { %3859 = vmatmul.mubr.bf16.gmra.mrb[156].mxu0 %v7586_v11  ;;  %5506 = vmatprep.mubr.bf16.mxu1 %v7251_v52 }
 0x315   : > { %v7732_v54 = vadd.f32 %v5155_v6, %v3341_v3  ;;  %3866 = vmatprep.mubr.bf16.mxu0 %v8344_v22 }
 0x316   : > { %v5044_v10 = vpop.f32.mrb[40].mxu1 }
 0x317   : > { %v5045_v36 = vpop.f32.mrb[41].mxu1  ;;  %v5156_v38 = vpop.f32.mrb[76].mxu0 }
 0x318   : > { %v5046_v61 = vadd.f32 %v5045_v36, %v5044_v10  ;;  %v5047_v49 = vpop.f32.mrb[42].mxu1  ;;  %v5157_v63 = vpop.f32.mrb[77].mxu0 }
 0x319   : > { %v5158_v7 = vadd.f32 %v5157_v63, %v5156_v38  ;;  %v5048_v41 = vpop.f32.mrb[43].mxu1  ;;  %v5159_v47 = vpop.f32.mrb[78].mxu0 }
 0x31a   : > { %v3346_v30 = vadd.f32 %v5046_v61, %v7560_v24  ;;  %v5049_v40 = vadd.f32 %v5048_v41, %v5047_v49  ;;  %v5160_v42 = vpop.f32.mrb[79].mxu0 }
 0x31b   : > { %v5161_v11 = vadd.f32 %v5160_v42, %v5159_v47  ;;  %5507 = vmatmul.mubr.bf16.gmra.mrb[132].mxu1 %v7302_v18 }
 0x31c   : > { %v7737_v52 = vadd.f32 %v5158_v7, %v3346_v30  ;;  %v3349_v2 = vadd.f32 %v5049_v40, %v7560_v24  ;;  %3867 = vmatmul.mubr.bf16.gmra.mrb[160].mxu0 %v8345_v0  ;;  %5510 = vmatprep.mubr.bf16.mxu1 %v7325_v51 }
 0x31e   : > { %v7742_v37 = vadd.f32 %v5161_v11, %v3349_v2  ;;  %v5050_v5 = vpop.f32.mrb[44].mxu1 }
 0x31f   : > { %v5051_v25 = vpop.f32.mrb[45].mxu1 }
 0x320   : > { %v5052_v43 = vadd.f32 %v5051_v25, %v5050_v5  ;;  %v5053_v27 = vpop.f32.mrb[46].mxu1  ;;  %v8346_v25 = vld [vmem:[#allocation7_spill] sm:$0xff] }
 0x321   : > { %v5054_v48 = vpop.f32.mrb[47].mxu1 }
 0x322   : > { %v5055_v45 = vadd.f32 %v5054_v48, %v5053_v27  ;;  %v3354_v51 = vadd.f32 %v5052_v43, %v7560_v24 }
 0x323   : > { %5511 = vmatmul.mubr.bf16.gmra.mrb[136].mxu1 %v7380_v55 }
 0x324   : > { %5514 = vmatprep.mubr.bf16.mxu1 %v7410_v8  ;;  %v3357_v12 = vadd.f32 %v5055_v45, %v7560_v24 }
 0x32b   : > { %5515 = vmatmul.mubr.bf16.gmra.mrb[140].mxu1 %v7436_v21 }
 0x32c   : > { %5518 = vmatprep.mubr.bf16.mxu1 %v7453_v23 }
 0x32f   : > { %v5162_v18 = vpop.f32.mrb[80].mxu0 }
 0x330   : > { %v5163_v39 = vpop.f32.mrb[81].mxu0 }
 0x331   : > { %v5164_v28 = vadd.f32 %v5163_v39, %v5162_v18  ;;  %v5165_v33 = vpop.f32.mrb[82].mxu0 }
 0x332   : > { %v5166_v16 = vpop.f32.mrb[83].mxu0 }
 0x333   : > { %v7750_v3 = vadd.f32 %v5164_v28, %v3354_v51  ;;  %v5167_v6 = vadd.f32 %v5166_v16, %v5165_v33  ;;  %5519 = vmatmul.mubr.bf16.gmra.mrb[144].mxu1 %v7480_v53 }
 0x334   : > { %5522 = vmatprep.mubr.bf16.mxu1 %v7498_v15 }
 0x335   : > { %v7754_v55 = vadd.f32 %v5167_v6, %v3357_v12 }
 0x336   : > { %v5056_v8 = vpop.f32.mrb[48].mxu1 }
 0x337   : > { %v5057_v21 = vpop.f32.mrb[49].mxu1  ;;  %v5168_v23 = vpop.f32.mrb[84].mxu0 }
 0x338   : > { %v5058_v22 = vadd.f32 %v5057_v21, %v5056_v8  ;;  %v5059_v10 = vpop.f32.mrb[50].mxu1  ;;  %v5169_v36 = vpop.f32.mrb[85].mxu0 }
 0x339   : > { %v5170_v38 = vadd.f32 %v5169_v36, %v5168_v23  ;;  %v5060_v61 = vpop.f32.mrb[51].mxu1  ;;  %v5171_v49 = vpop.f32.mrb[86].mxu0 }
 0x33a   : > { %v3362_v63 = vadd.f32 %v5058_v22, %v7560_v24  ;;  %v5061_v7 = vadd.f32 %v5060_v61, %v5059_v10  ;;  %v5172_v41 = vpop.f32.mrb[87].mxu0 }
 0x33b   : > { %v5173_v47 = vadd.f32 %v5172_v41, %v5171_v49  ;;  %5523 = vmatmul.mubr.bf16.gmra.mrb[148].mxu1 %v7528_v31 }
 0x33c   : > { %v7758_v53 = vadd.f32 %v5170_v38, %v3362_v63  ;;  %v3365_v15 = vadd.f32 %v5061_v7, %v7560_v24  ;;  %5526 = vmatprep.mubr.bf16.mxu1 %v7548_v13 }
 0x33e   : > { %v7762_v30 = vadd.f32 %v5173_v47, %v3365_v15  ;;  %v5062_v40 = vpop.f32.mrb[52].mxu1 }
 0x33f   : > { %v5063_v42 = vpop.f32.mrb[53].mxu1 }
 0x340   : > { %v5064_v11 = vadd.f32 %v5063_v42, %v5062_v40  ;;  %v5065_v2 = vpop.f32.mrb[54].mxu1 }
 0x341   : > { %v5066_v0 = vpop.f32.mrb[55].mxu1 }
 0x342   : > { %v5067_v5 = vadd.f32 %v5066_v0, %v5065_v2  ;;  %v3370_v27 = vadd.f32 %v5064_v11, %v7560_v24 }
 0x343   : > { %5527 = vmatmul.mubr.bf16.gmra.mrb[152].mxu1 %v7594_v1 }
 0x344   : > { %5530 = vmatprep.mubr.bf16.mxu1 %v7717_v17  ;;  %v3373_v18 = vadd.f32 %v5067_v5, %v7560_v24 }
 0x34b   : > { %5531 = vmatmul.mubr.bf16.gmra.mrb[156].mxu1 %v8346_v25 }
 0x34f   : > { %v5174_v31 = vpop.f32.mrb[88].mxu0 }
 0x350   : > { %v5175_v43 = vpop.f32.mrb[89].mxu0 }
 0x351   : > { %v5176_v48 = vadd.f32 %v5175_v43, %v5174_v31  ;;  %v5177_v13 = vpop.f32.mrb[90].mxu0 }
 0x352   : > { %v5178_v45 = vpop.f32.mrb[91].mxu0 }
 0x353   : > { %v7769_v39 = vadd.f32 %v5176_v48, %v3370_v27  ;;  %v5179_v51 = vadd.f32 %v5178_v45, %v5177_v13 }
 0x355   : > { %v7771_v28 = vadd.f32 %v5179_v51, %v3373_v18 }
 0x356   : > { %v5068_v33 = vpop.f32.mrb[56].mxu1 }
 0x357   : > { %v5069_v1 = vpop.f32.mrb[57].mxu1  ;;  %v5180_v16 = vpop.f32.mrb[92].mxu0 }
 0x358   : > { %v5070_v17 = vadd.f32 %v5069_v1, %v5068_v33  ;;  %v5071_v12 = vpop.f32.mrb[58].mxu1  ;;  %v5181_v6 = vpop.f32.mrb[93].mxu0 }
 0x359   : > { %v5182_v8 = vadd.f32 %v5181_v6, %v5180_v16  ;;  %v5072_v21 = vpop.f32.mrb[59].mxu1  ;;  %v5183_v23 = vpop.f32.mrb[94].mxu0 }
 0x35a   : > { %v3378_v22 = vadd.f32 %v5070_v17, %v7560_v24  ;;  %v5073_v10 = vadd.f32 %v5072_v21, %v5071_v12  ;;  %v5184_v36 = vpop.f32.mrb[95].mxu0 }
 0x35b   : > { %v5185_v38 = vadd.f32 %v5184_v36, %v5183_v23 }
 0x35c   : > { %v7774_v61 = vadd.f32 %v5182_v8, %v3378_v22  ;;  %v3381_v49 = vadd.f32 %v5073_v10, %v7560_v24 }
 0x35e   : > { %v7777_v63 = vadd.f32 %v5185_v38, %v3381_v49  ;;  %v5074_v7 = vpop.f32.mrb[60].mxu1 }
 0x35f   : > { %v5075_v41 = vpop.f32.mrb[61].mxu1 }
 0x360   : > { %v5076_v47 = vadd.f32 %v5075_v41, %v5074_v7  ;;  %v5077_v15 = vpop.f32.mrb[62].mxu1 }
 0x361   : > { %v5078_v40 = vpop.f32.mrb[63].mxu1 }
 0x362   : > { %v5079_v42 = vadd.f32 %v5078_v40, %v5077_v15  ;;  %v3386_v16 = vadd.f32 %v5076_v47, %v7560_v24 }
 0x364   : > { %v3389_v11 = vadd.f32 %v5079_v42, %v7560_v24 }
 0x366   : > { %v5208_v2 = vpop.f32.mrb[64].mxu1 }
 0x367   : > { %v5209_v0 = vpop.f32.mrb[65].mxu1 }
 0x368   : > { %v5210_v5 = vadd.f32 %v5209_v0, %v5208_v2  ;;  %v5211_v25 = vpop.f32.mrb[66].mxu1 }
 0x369   : > { %v5212_v31 = vpop.f32.mrb[67].mxu1 }
 0x36a   : > { %v3588_v43 = vadd.f32 %v5210_v5, %v7577_v44  ;;  %v5213_v27 = vadd.f32 %v5212_v31, %v5211_v25 }
 0x36c   : > { %v3591_v48 = vadd.f32 %v5213_v27, %v7581_v34 }
 0x36e   : > { %v5214_v13 = vpop.f32.mrb[68].mxu1 }
 0x36f   : > { %v5186_v45 = vpop.f32.mrb[96].mxu0  ;;  %v5215_v18 = vpop.f32.mrb[69].mxu1 }
 0x370   : > { %v5216_v51 = vadd.f32 %v5215_v18, %v5214_v13  ;;  %v5187_v33 = vpop.f32.mrb[97].mxu0  ;;  %v5217_v1 = vpop.f32.mrb[70].mxu1 }
 0x371   : > { %v5188_v17 = vadd.f32 %v5187_v33, %v5186_v45  ;;  %v5189_v12 = vpop.f32.mrb[98].mxu0  ;;  %v5218_v6 = vpop.f32.mrb[71].mxu1 }
 0x372   : > { %v3596_v8 = vadd.f32 %v5216_v51, %v7603_v9  ;;  %v5219_v21 = vadd.f32 %v5218_v6, %v5217_v1  ;;  %v5190_v23 = vpop.f32.mrb[99].mxu0 }
 0x373   : > { %v7784_v22 = vadd.f32 %v5188_v17, %v3386_v16  ;;  %v5191_v44 = vadd.f32 %v5190_v23, %v5189_v12 }
 0x374   : > { %v3599_v34 = vadd.f32 %v5219_v21, %v7608_v58 }
 0x375   : > { %v7787_v10 = vadd.f32 %v5191_v44, %v3389_v11 }
 0x376   : > { %v5220_v36 = vpop.f32.mrb[72].mxu1 }
 0x377   : > { %v5221_v38 = vpop.f32.mrb[73].mxu1  ;;  %v5320_v49 = vpop.f32.mrb[100].mxu0 }
 0x378   : > { %v5222_v7 = vadd.f32 %v5221_v38, %v5220_v36  ;;  %v5223_v41 = vpop.f32.mrb[74].mxu1  ;;  %v5321_v24 = vpop.f32.mrb[101].mxu0 }
 0x379   : > { %v5322_v47 = vadd.f32 %v5321_v24, %v5320_v49  ;;  %v5224_v15 = vpop.f32.mrb[75].mxu1  ;;  %v5323_v40 = vpop.f32.mrb[102].mxu0 }
 0x37a   : > { %v3604_v9 = vadd.f32 %v5222_v7, %v7619_v46  ;;  %v5225_v42 = vadd.f32 %v5224_v15, %v5223_v41  ;;  %v5324_v2 = vpop.f32.mrb[103].mxu0 }
 0x37b   : > { %v5325_v0 = vadd.f32 %v5324_v2, %v5323_v40  ;;  %v7790_v5 = vadd.f32 %v5322_v47, %v3588_v43 }
 0x37c   : > { %v3607_v58 = vadd.f32 %v5225_v42, %v7624_v50 }
 0x37d   : > { %v7793_v11 = vadd.f32 %v5325_v0, %v3591_v48 }
 0x37e   : > { %v5226_v25 = vpop.f32.mrb[76].mxu1 }
 0x37f   : > { %v5227_v31 = vpop.f32.mrb[77].mxu1  ;;  %v5326_v27 = vpop.f32.mrb[104].mxu0 }
 0x380   : > { %v5228_v13 = vadd.f32 %v5227_v31, %v5226_v25  ;;  %v5229_v45 = vpop.f32.mrb[78].mxu1  ;;  %v5327_v18 = vpop.f32.mrb[105].mxu0 }
 0x381   : > { %v5328_v51 = vadd.f32 %v5327_v18, %v5326_v27  ;;  %v5230_v33 = vpop.f32.mrb[79].mxu1  ;;  %v5329_v1 = vpop.f32.mrb[106].mxu0 }
 0x382   : > { %v3612_v46 = vadd.f32 %v5228_v13, %v7635_v29  ;;  %v5231_v16 = vadd.f32 %v5230_v33, %v5229_v45  ;;  %v5330_v17 = vpop.f32.mrb[107].mxu0 }
 0x383   : > { %v5331_v12 = vadd.f32 %v5330_v17, %v5329_v1  ;;  %v7796_v43 = vadd.f32 %v5328_v51, %v3596_v8 }
 0x384   : > { %v3615_v50 = vadd.f32 %v5231_v16, %v7640_v56 }
 0x385   : > { %v7799_v48 = vadd.f32 %v5331_v12, %v3599_v34 }
 0x386   : > { %v5232_v6 = vpop.f32.mrb[80].mxu1 }
 0x387   : > { %v5233_v21 = vpop.f32.mrb[81].mxu1  ;;  %v5332_v23 = vpop.f32.mrb[108].mxu0 }
 0x388   : > { %v5234_v44 = vadd.f32 %v5233_v21, %v5232_v6  ;;  %v5235_v36 = vpop.f32.mrb[82].mxu1  ;;  %v5333_v38 = vpop.f32.mrb[109].mxu0 }
 0x389   : > { %v5334_v49 = vadd.f32 %v5333_v38, %v5332_v23  ;;  %v5236_v7 = vpop.f32.mrb[83].mxu1  ;;  %v5335_v41 = vpop.f32.mrb[110].mxu0 }
 0x38a   : > { %v3620_v29 = vadd.f32 %v5234_v44, %v7645_v60  ;;  %v5237_v24 = vadd.f32 %v5236_v7, %v5235_v36  ;;  %v5336_v47 = vpop.f32.mrb[111].mxu0 }
 0x38b   : > { %v5337_v15 = vadd.f32 %v5336_v47, %v5335_v41  ;;  %v7802_v8 = vadd.f32 %v5334_v49, %v3604_v9 }
 0x38c   : > { %v3623_v56 = vadd.f32 %v5237_v24, %v7651_v26 }
 0x38d   : > { %v7805_v34 = vadd.f32 %v5337_v15, %v3607_v58 }
 0x38e   : > { %v5238_v40 = vpop.f32.mrb[84].mxu1 }
 0x38f   : > { %v5239_v42 = vpop.f32.mrb[85].mxu1  ;;  %v5338_v2 = vpop.f32.mrb[112].mxu0 }
 0x390   : > { %v5240_v0 = vadd.f32 %v5239_v42, %v5238_v40  ;;  %v5241_v25 = vpop.f32.mrb[86].mxu1  ;;  %v5339_v31 = vpop.f32.mrb[113].mxu0 }
 0x391   : > { %v5340_v27 = vadd.f32 %v5339_v31, %v5338_v2  ;;  %v5242_v13 = vpop.f32.mrb[87].mxu1  ;;  %v5341_v45 = vpop.f32.mrb[114].mxu0 }
 0x392   : > { %v3628_v60 = vadd.f32 %v5240_v0, %v7663_v19  ;;  %v5243_v18 = vadd.f32 %v5242_v13, %v5241_v25  ;;  %v5342_v51 = vpop.f32.mrb[115].mxu0 }
 0x393   : > { %v5343_v33 = vadd.f32 %v5342_v51, %v5341_v45  ;;  %v7808_v9 = vadd.f32 %v5340_v27, %v3612_v46 }
 0x394   : > { %v3631_v26 = vadd.f32 %v5243_v18, %v7668_v59 }
 0x395   : > { %v7811_v58 = vadd.f32 %v5343_v33, %v3615_v50 }
 0x396   : > { %v5244_v1 = vpop.f32.mrb[88].mxu1 }
 0x397   : > { %v5245_v16 = vpop.f32.mrb[89].mxu1  ;;  %v5344_v17 = vpop.f32.mrb[116].mxu0 }
 0x398   : > { %v5246_v12 = vadd.f32 %v5245_v16, %v5244_v1  ;;  %v5247_v6 = vpop.f32.mrb[90].mxu1  ;;  %v5345_v21 = vpop.f32.mrb[117].mxu0 }
 0x399   : > { %v5346_v23 = vadd.f32 %v5345_v21, %v5344_v17  ;;  %v5248_v44 = vpop.f32.mrb[91].mxu1  ;;  %v5347_v36 = vpop.f32.mrb[118].mxu0 }
 0x39a   : > { %v3636_v19 = vadd.f32 %v5246_v12, %v7673_v62  ;;  %v5249_v38 = vadd.f32 %v5248_v44, %v5247_v6  ;;  %v5348_v49 = vpop.f32.mrb[119].mxu0 }
 0x39b   : > { %v5349_v7 = vadd.f32 %v5348_v49, %v5347_v36  ;;  %v7814_v46 = vadd.f32 %v5346_v23, %v3620_v29 }
 0x39c   : > { %v3639_v59 = vadd.f32 %v5249_v38, %v7679_v14 }
 0x39d   : > { %v7817_v50 = vadd.f32 %v5349_v7, %v3623_v56 }
 0x39e   : > { %v5250_v41 = vpop.f32.mrb[92].mxu1 }
 0x39f   : > { %v5251_v24 = vpop.f32.mrb[93].mxu1  ;;  %v5350_v47 = vpop.f32.mrb[120].mxu0 }
 0x3a0   : > { %v5252_v15 = vadd.f32 %v5251_v24, %v5250_v41  ;;  %v5253_v40 = vpop.f32.mrb[94].mxu1  ;;  %v5351_v42 = vpop.f32.mrb[121].mxu0 }
 0x3a1   : > { %v5352_v2 = vadd.f32 %v5351_v42, %v5350_v47  ;;  %v5254_v0 = vpop.f32.mrb[95].mxu1  ;;  %v5353_v25 = vpop.f32.mrb[122].mxu0 }
 0x3a2   : > { %v3644_v62 = vadd.f32 %v5252_v15, %v7691_v35  ;;  %v5255_v31 = vadd.f32 %v5254_v0, %v5253_v40  ;;  %v5354_v27 = vpop.f32.mrb[123].mxu0 }
 0x3a3   : > { %v5355_v13 = vadd.f32 %v5354_v27, %v5353_v25  ;;  %v7820_v29 = vadd.f32 %v5352_v2, %v3628_v60 }
 0x3a4   : > { %v3647_v14 = vadd.f32 %v5255_v31, %v7696_v4 }
 0x3a5   : > { %v7823_v56 = vadd.f32 %v5355_v13, %v3631_v26 }
 0x3a6   : > { %v5256_v45 = vpop.f32.mrb[96].mxu1 }
 0x3a7   : > { %v5257_v18 = vpop.f32.mrb[97].mxu1  ;;  %v5356_v51 = vpop.f32.mrb[124].mxu0 }
 0x3a8   : > { %v5258_v33 = vadd.f32 %v5257_v18, %v5256_v45  ;;  %v5259_v1 = vpop.f32.mrb[98].mxu1  ;;  %v5357_v16 = vpop.f32.mrb[125].mxu0 }
 0x3a9   : > { %v5358_v17 = vadd.f32 %v5357_v16, %v5356_v51  ;;  %v5260_v12 = vpop.f32.mrb[99].mxu1  ;;  %v5359_v6 = vpop.f32.mrb[126].mxu0 }
 0x3aa   : > { %v3652_v35 = vadd.f32 %v5258_v33, %v7701_v57  ;;  %v5261_v21 = vadd.f32 %v5260_v12, %v5259_v1  ;;  %v5360_v23 = vpop.f32.mrb[127].mxu0 }
 0x3ab   : > { %v5361_v44 = vadd.f32 %v5360_v23, %v5359_v6  ;;  %v7826_v60 = vadd.f32 %v5358_v17, %v3636_v19 }
 0x3ac   : > { %v3655_v4 = vadd.f32 %v5261_v21, %v7710_v32 }
 0x3ad   : > { %v7829_v26 = vadd.f32 %v5361_v44, %v3639_v59 }
 0x3ae   : > { %v5262_v36 = vpop.f32.mrb[100].mxu1 }
 0x3af   : > { %v5263_v38 = vpop.f32.mrb[101].mxu1  ;;  %v5362_v49 = vpop.f32.mrb[128].mxu0 }
 0x3b0   : > { %v5264_v7 = vadd.f32 %v5263_v38, %v5262_v36  ;;  %v5265_v41 = vpop.f32.mrb[102].mxu1  ;;  %v5363_v24 = vpop.f32.mrb[129].mxu0 }
 0x3b1   : > { %v5364_v47 = vadd.f32 %v5363_v24, %v5362_v49  ;;  %v5266_v15 = vpop.f32.mrb[103].mxu1  ;;  %v5365_v40 = vpop.f32.mrb[130].mxu0 }
 0x3b2   : > { %v3660_v57 = vadd.f32 %v5264_v7, %v7727_v20  ;;  %v5267_v42 = vadd.f32 %v5266_v15, %v5265_v41  ;;  %v5366_v2 = vpop.f32.mrb[131].mxu0 }
 0x3b3   : > { %v5367_v0 = vadd.f32 %v5366_v2, %v5365_v40  ;;  %v7832_v19 = vadd.f32 %v5364_v47, %v3644_v62 }
 0x3b4   : > { %v3663_v32 = vadd.f32 %v5267_v42, %v7732_v54 }
 0x3b5   : > { %v7835_v59 = vadd.f32 %v5367_v0, %v3647_v14 }
 0x3b6   : > { %v5268_v25 = vpop.f32.mrb[104].mxu1 }
 0x3b7   : > { %v5269_v31 = vpop.f32.mrb[105].mxu1  ;;  %v5368_v27 = vpop.f32.mrb[132].mxu0 }
 0x3b8   : > { %v5270_v13 = vadd.f32 %v5269_v31, %v5268_v25  ;;  %v5271_v45 = vpop.f32.mrb[106].mxu1  ;;  %v5369_v18 = vpop.f32.mrb[133].mxu0 }
 0x3b9   : > { %v5370_v51 = vadd.f32 %v5369_v18, %v5368_v27  ;;  %v5272_v33 = vpop.f32.mrb[107].mxu1  ;;  %v5371_v1 = vpop.f32.mrb[134].mxu0 }
 0x3ba   : > { %v3668_v20 = vadd.f32 %v5270_v13, %v7737_v52  ;;  %v5273_v16 = vadd.f32 %v5272_v33, %v5271_v45  ;;  %v5372_v17 = vpop.f32.mrb[135].mxu0 }
 0x3bb   : > { %v5373_v12 = vadd.f32 %v5372_v17, %v5371_v1  ;;  %v7838_v62 = vadd.f32 %v5370_v51, %v3652_v35 }
 0x3bc   : > { %v3671_v54 = vadd.f32 %v5273_v16, %v7742_v37 }
 0x3bd   : > { %v7841_v14 = vadd.f32 %v5373_v12, %v3655_v4 }
 0x3be   : > { %v5274_v6 = vpop.f32.mrb[108].mxu1 }
 0x3bf   : > { %v5275_v21 = vpop.f32.mrb[109].mxu1  ;;  %v5374_v23 = vpop.f32.mrb[136].mxu0 }
 0x3c0   : > { %v5276_v44 = vadd.f32 %v5275_v21, %v5274_v6  ;;  %v5277_v36 = vpop.f32.mrb[110].mxu1  ;;  %v5375_v38 = vpop.f32.mrb[137].mxu0 }
 0x3c1   : > { %v5376_v49 = vadd.f32 %v5375_v38, %v5374_v23  ;;  %v5278_v7 = vpop.f32.mrb[111].mxu1  ;;  %v5377_v41 = vpop.f32.mrb[138].mxu0 }
 0x3c2   : > { %v3676_v52 = vadd.f32 %v5276_v44, %v7750_v3  ;;  %v5279_v24 = vadd.f32 %v5278_v7, %v5277_v36  ;;  %v5378_v47 = vpop.f32.mrb[139].mxu0 }
 0x3c3   : > { %v5379_v15 = vadd.f32 %v5378_v47, %v5377_v41  ;;  %v7844_v35 = vadd.f32 %v5376_v49, %v3660_v57 }
 0x3c4   : > { %v3679_v37 = vadd.f32 %v5279_v24, %v7754_v55 }
 0x3c5   : > { %v7847_v4 = vadd.f32 %v5379_v15, %v3663_v32 }
 0x3c6   : > { %v5280_v40 = vpop.f32.mrb[112].mxu1 }
 0x3c7   : > { %v5281_v42 = vpop.f32.mrb[113].mxu1  ;;  %v5380_v2 = vpop.f32.mrb[140].mxu0 }
 0x3c8   : > { %v5282_v0 = vadd.f32 %v5281_v42, %v5280_v40  ;;  %v5283_v25 = vpop.f32.mrb[114].mxu1  ;;  %v5381_v31 = vpop.f32.mrb[141].mxu0 }
 0x3c9   : > { %v5382_v27 = vadd.f32 %v5381_v31, %v5380_v2  ;;  %v5284_v13 = vpop.f32.mrb[115].mxu1  ;;  %v5383_v45 = vpop.f32.mrb[142].mxu0 }
 0x3ca   : > { %v3684_v3 = vadd.f32 %v5282_v0, %v7758_v53  ;;  %v5285_v18 = vadd.f32 %v5284_v13, %v5283_v25  ;;  %v5384_v51 = vpop.f32.mrb[143].mxu0 }
 0x3cb   : > { %v5385_v33 = vadd.f32 %v5384_v51, %v5383_v45  ;;  %v7850_v57 = vadd.f32 %v5382_v27, %v3668_v20 }
 0x3cc   : > { %v3687_v55 = vadd.f32 %v5285_v18, %v7762_v30  ;;  %v4036_v18 = vlaneseq }
 0x3cd   : > { %v7853_v32 = vadd.f32 %v5385_v33, %v3671_v54 }
 0x3ce   : > { %v5286_v1 = vpop.f32.mrb[116].mxu1 }
 0x3cf   : > { %v5287_v16 = vpop.f32.mrb[117].mxu1  ;;  %v5386_v17 = vpop.f32.mrb[144].mxu0 }
 0x3d0   : > { %v5288_v12 = vadd.f32 %v5287_v16, %v5286_v1  ;;  %v5289_v6 = vpop.f32.mrb[118].mxu1  ;;  %v5387_v21 = vpop.f32.mrb[145].mxu0 }
 0x3d1   : > { %v5388_v23 = vadd.f32 %v5387_v21, %v5386_v17  ;;  %v5290_v44 = vpop.f32.mrb[119].mxu1  ;;  %v5389_v36 = vpop.f32.mrb[146].mxu0 }
 0x3d2   : > { %v3692_v53 = vadd.f32 %v5288_v12, %v7769_v39  ;;  %v5291_v38 = vadd.f32 %v5290_v44, %v5289_v6  ;;  %v5390_v49 = vpop.f32.mrb[147].mxu0 }
 0x3d3   : > { %v5391_v7 = vadd.f32 %v5390_v49, %v5389_v36  ;;  %v7856_v20 = vadd.f32 %v5388_v23, %v3676_v52 }
 0x3d4   : > { %v3695_v30 = vadd.f32 %v5291_v38, %v7771_v28 }
 0x3d5   : > { %v7859_v54 = vadd.f32 %v5391_v7, %v3679_v37 }
 0x3d6   : > { %v5292_v41 = vpop.f32.mrb[120].mxu1 }
 0x3d7   : > { %v5293_v24 = vpop.f32.mrb[121].mxu1  ;;  %v5392_v47 = vpop.f32.mrb[148].mxu0 }
 0x3d8   : > { %v5294_v15 = vadd.f32 %v5293_v24, %v5292_v41  ;;  %v5295_v40 = vpop.f32.mrb[122].mxu1  ;;  %v5393_v42 = vpop.f32.mrb[149].mxu0 }
 0x3d9   : > { %v5394_v2 = vadd.f32 %v5393_v42, %v5392_v47  ;;  %v5296_v0 = vpop.f32.mrb[123].mxu1  ;;  %v5395_v25 = vpop.f32.mrb[150].mxu0 }
 0x3da   : > { %v3700_v39 = vadd.f32 %v5294_v15, %v7774_v61  ;;  %v5297_v31 = vadd.f32 %v5296_v0, %v5295_v40  ;;  %v5396_v27 = vpop.f32.mrb[151].mxu0 }
 0x3db   : > { %v5397_v13 = vadd.f32 %v5396_v27, %v5395_v25  ;;  %v7862_v52 = vadd.f32 %v5394_v2, %v3684_v3  ;;  %v7868_v3 = vand.u32 127, %v4036_v18 }
 0x3dc   : > { %v3703_v28 = vadd.f32 %v5297_v31, %v7777_v63 }
 0x3dd   : > { %v7865_v37 = vadd.f32 %v5397_v13, %v3687_v55  ;;  %vm4038_vm5 = vcmp.lt.s32.totalorder %v7868_v3, 8 }
 0x3de   : > { %v5298_v45 = vpop.f32.mrb[124].mxu1 }
 0x3df   : > { %v5299_v51 = vpop.f32.mrb[125].mxu1  ;;  %v5398_v33 = vpop.f32.mrb[152].mxu0 }
 0x3e0   : > { %v5300_v1 = vadd.f32 %v5299_v51, %v5298_v45  ;;  %v5301_v16 = vpop.f32.mrb[126].mxu1  ;;  %v5399_v17 = vpop.f32.mrb[153].mxu0 }
 0x3e1   : > { %v5400_v12 = vadd.f32 %v5399_v17, %v5398_v33  ;;  %v5302_v6 = vpop.f32.mrb[127].mxu1  ;;  %v5401_v21 = vpop.f32.mrb[154].mxu0 }
 0x3e2   : > { %v3708_v61 = vadd.f32 %v5300_v1, %v7784_v22  ;;  %v5303_v23 = vadd.f32 %v5302_v6, %v5301_v16  ;;  %v5402_v44 = vpop.f32.mrb[155].mxu0 }
 0x3e3   : > { %v5403_v36 = vadd.f32 %v5402_v44, %v5401_v21  ;;  %v7870_v63 = vadd.f32 %v5400_v12, %v3692_v53 }
 0x3e4   : > { %v3711_v55 = vadd.f32 %v5303_v23, %v7787_v10 }
 0x3e5   : > { %v7873_v38 = vadd.f32 %v5403_v36, %v3695_v30 }
 0x3e6   : > { %v5504_v49 = vpop.f32.mrb[128].mxu1 }
 0x3e7   : > { %v3918_v7 = vadd.f32 %v5504_v49, %v7796_v43  ;;  %v5404_v41 = vpop.f32.mrb[156].mxu0  ;;  %v3909_v24 = vpop.f32.mrb[129].mxu1 }
 0x3e8   : > { %v3910_v22 = vadd.f32 %v3909_v24, %v7790_v5  ;;  %v5405_v47 = vpop.f32.mrb[157].mxu0  ;;  %v5505_v15 = vpop.f32.mrb[130].mxu1 }
 0x3e9   : > { %v5406_v40 = vadd.f32 %v5405_v47, %v5404_v41  ;;  %v3921_v42 = vadd.f32 %v5505_v15, %v7799_v48  ;;  %v5407_v53 = vpop.f32.mrb[158].mxu0  ;;  %v3912_v2 = vpop.f32.mrb[131].mxu1  ;;  %v7881_v10 = vsel %vm4038_vm5, %v3918_v7, -1e+30 }
 0x3ea   : > { %v3913_v30 = vadd.f32 %v3912_v2, %v7793_v11  ;;  %v5408_v0 = vpop.f32.mrb[159].mxu0  ;;  %4077 = vmax.xlane.f32.xlu0 %v7881_v10  ;;  %v7894_v48 = vsel %vm4038_vm5, %v3910_v22, -1e+30 }
 0x3eb   : > { %v5409_v43 = vadd.f32 %v5408_v0, %v5407_v53  ;;  %v7885_v25 = vadd.f32 %v5406_v40, %v3700_v39  ;;  %v7908_v12 = vsel %vm4038_vm5, %v3921_v42, -1e+30 }
 0x3ec   : > { %v7889_v5 = vsel %vm4038_vm5, %v3913_v30, -1e+30 }
 0x3ed   : > { %4075 = vmax.xlane.f32.xlu1 %v7889_v5  ;;  %v7896_v31 = vadd.f32 %v5409_v43, %v3703_v28 }
 0x3ee   : > { %v5508_v27 = vpop.f32.mrb[132].mxu1  ;;  %4073 = vmax.xlane.f32.xlu0 %v7894_v48 }
 0x3ef   : > { %v3934_v11 = vadd.f32 %v5508_v27, %v7808_v9  ;;  %v5410_v13 = vpop.f32.mrb[160].mxu0  ;;  %v3925_v39 = vpop.f32.mrb[133].mxu1 }
 0x3f0   : > { %v3926_v45 = vadd.f32 %v3925_v39, %v7802_v8  ;;  %v5411_v18 = vpop.f32.mrb[161].mxu0  ;;  %v5509_v51 = vpop.f32.mrb[134].mxu1 }
 0x3f1   : > { %v5412_v33 = vadd.f32 %v5411_v18, %v5410_v13  ;;  %v3937_v1 = vadd.f32 %v5509_v51, %v7811_v58  ;;  %v5413_v16 = vpop.f32.mrb[162].mxu0  ;;  %v3928_v17 = vpop.f32.mrb[135].mxu1  ;;  %v7904_v28 = vsel %vm4038_vm5, %v3934_v11, -1e+30 }
 0x3f2   : > { %v3929_v9 = vadd.f32 %v3928_v17, %v7805_v34  ;;  %v5414_v6 = vpop.f32.mrb[163].mxu0  ;;  %4085 = vmax.xlane.f32.xlu1 %v7904_v28  ;;  %4079 = vmax.xlane.f32.xlu0 %v7908_v12  ;;  %v7917_v58 = vsel %vm4038_vm5, %v3926_v45, -1e+30 }
 0x3f3   : > { %v5415_v8 = vadd.f32 %v5414_v6, %v5413_v16  ;;  %v7913_v21 = vadd.f32 %v5412_v33, %v3708_v61  ;;  %v7921_v23 = vsel %vm4038_vm5, %v3937_v1, -1e+30 }
 0x3f5   : > { %v7923_v44 = vadd.f32 %v5415_v8, %v3711_v55  ;;  %v7936_v55 = vsel %vm4038_vm5, %v3929_v9, -1e+30 }
 0x3f6   : > { %v5512_v36 = vpop.f32.mrb[136].mxu1  ;;  %4081 = vmax.xlane.f32.xlu1 %v7917_v58  ;;  %4087 = vmax.xlane.f32.xlu0 %v7921_v23 }
 0x3f7   : > { %v3950_v34 = vadd.f32 %v5512_v36, %v7820_v29  ;;  %v3941_v49 = vpop.f32.mrb[137].mxu1 }
 0x3f8   : > { %v3942_v61 = vadd.f32 %v3941_v49, %v7814_v46  ;;  %v5513_v7 = vpop.f32.mrb[138].mxu1 }
 0x3f9   : > { %v3953_v41 = vadd.f32 %v5513_v7, %v7823_v56  ;;  %v3944_v24 = vpop.f32.mrb[139].mxu1  ;;  %v7932_v22 = vsel %vm4038_vm5, %v3950_v34, -1e+30 }
 0x3fa   : > { %v3945_v47 = vadd.f32 %v3944_v24, %v7817_v50  ;;  %4093 = vmax.xlane.f32.xlu1 %v7932_v22  ;;  %4083 = vmax.xlane.f32.xlu0 %v7936_v55  ;;  %v7943_v46 = vsel %vm4038_vm5, %v3942_v61, -1e+30 }
 0x3fb   : > { %v7947_v29 = vsel %vm4038_vm5, %v3953_v41, -1e+30 }
 0x3fc   : > { %v7960_v0 = vsel %vm4038_vm5, %v3945_v47, -1e+30 }
 0x3fe   : > { %v5516_v56 = vpop.f32.mrb[140].mxu1  ;;  %4089 = vmax.xlane.f32.xlu1 %v7943_v46  ;;  %4095 = vmax.xlane.f32.xlu0 %v7947_v29 }
 0x3ff   : > { %v3966_v15 = vadd.f32 %v5516_v56, %v7832_v19  ;;  %v3957_v50 = vpop.f32.mrb[141].mxu1 }
 0x400   : > { %v3958_v40 = vadd.f32 %v3957_v50, %v7826_v60  ;;  %v5517_v42 = vpop.f32.mrb[142].mxu1 }
 0x401   : > { %v3969_v53 = vadd.f32 %v5517_v42, %v7835_v59  ;;  %v3960_v2 = vpop.f32.mrb[143].mxu1  ;;  %v7956_v30 = vsel %vm4038_vm5, %v3966_v15, -1e+30 }
 0x402   : > { %v3961_v43 = vadd.f32 %v3960_v2, %v7829_v26  ;;  %4101 = vmax.xlane.f32.xlu1 %v7956_v30  ;;  %4091 = vmax.xlane.f32.xlu0 %v7960_v0  ;;  %v7967_v60 = vsel %vm4038_vm5, %v3958_v40, -1e+30 }
 0x403   : > { %v7971_v19 = vsel %vm4038_vm5, %v3969_v53, -1e+30 }
 0x404   : > { %v7984_v51 = vsel %vm4038_vm5, %v3961_v43, -1e+30 }
 0x406   : > { %v5520_v59 = vpop.f32.mrb[144].mxu1  ;;  %4097 = vmax.xlane.f32.xlu1 %v7967_v60  ;;  %4103 = vmax.xlane.f32.xlu0 %v7971_v19 }
 0x407   : > { %v3982_v27 = vadd.f32 %v5520_v59, %v7844_v35  ;;  %v3973_v26 = vpop.f32.mrb[145].mxu1 }
 0x408   : > { %v3974_v11 = vadd.f32 %v3973_v26, %v7838_v62  ;;  %v5521_v13 = vpop.f32.mrb[146].mxu1 }
 0x409   : > { %v3985_v39 = vadd.f32 %v5521_v13, %v7847_v4  ;;  %v3976_v45 = vpop.f32.mrb[147].mxu1  ;;  %v7980_v18 = vsel %vm4038_vm5, %v3982_v27, -1e+30 }
 0x40a   : > { %v3977_v33 = vadd.f32 %v3976_v45, %v7841_v14  ;;  %4109 = vmax.xlane.f32.xlu1 %v7980_v18  ;;  %4099 = vmax.xlane.f32.xlu0 %v7984_v51  ;;  %v7991_v62 = vsel %vm4038_vm5, %v3974_v11, -1e+30 }
 0x40b   : > { %v7995_v35 = vsel %vm4038_vm5, %v3985_v39, -1e+30 }
 0x40c   : > { %v8008_v36 = vsel %vm4038_vm5, %v3977_v33, -1e+30 }
 0x40e   : > { %v5524_v4 = vpop.f32.mrb[148].mxu1  ;;  %4105 = vmax.xlane.f32.xlu1 %v7991_v62  ;;  %4111 = vmax.xlane.f32.xlu0 %v7995_v35 }
 0x40f   : > { %v3998_v1 = vadd.f32 %v5524_v4, %v7856_v20  ;;  %v3989_v14 = vpop.f32.mrb[149].mxu1 }
 0x410   : > { %v3990_v16 = vadd.f32 %v3989_v14, %v7850_v57  ;;  %v5525_v17 = vpop.f32.mrb[150].mxu1 }
 0x411   : > { %v4001_v9 = vadd.f32 %v5525_v17, %v7859_v54  ;;  %v3992_v6 = vpop.f32.mrb[151].mxu1  ;;  %v8004_v8 = vsel %vm4038_vm5, %v3998_v1, -1e+30 }
 0x412   : > { %v3993_v34 = vadd.f32 %v3992_v6, %v7853_v32  ;;  %4117 = vmax.xlane.f32.xlu1 %v8004_v8  ;;  %4107 = vmax.xlane.f32.xlu0 %v8008_v36  ;;  %v8015_v57 = vsel %vm4038_vm5, %v3990_v16, -1e+30 }
 0x413   : > { %v8019_v20 = vsel %vm4038_vm5, %v4001_v9, -1e+30 }
 0x414   : > { %v8032_v56 = vsel %vm4038_vm5, %v3993_v34, -1e+30 }
 0x416   : > { %v5528_v54 = vpop.f32.mrb[152].mxu1  ;;  %4113 = vmax.xlane.f32.xlu1 %v8015_v57  ;;  %4119 = vmax.xlane.f32.xlu0 %v8019_v20 }
 0x417   : > { %v4014_v49 = vadd.f32 %v5528_v54, %v7870_v63  ;;  %v4005_v32 = vpop.f32.mrb[153].mxu1 }
 0x418   : > { %v4006_v61 = vadd.f32 %v4005_v32, %v7862_v52  ;;  %v5529_v7 = vpop.f32.mrb[154].mxu1 }
 0x419   : > { %v4017_v41 = vadd.f32 %v5529_v7, %v7873_v38  ;;  %v4008_v24 = vpop.f32.mrb[155].mxu1  ;;  %v8028_v47 = vsel %vm4038_vm5, %v4014_v49, -1e+30 }
 0x41a   : > { %v4009_v15 = vadd.f32 %v4008_v24, %v7865_v37  ;;  %4125 = vmax.xlane.f32.xlu1 %v8028_v47  ;;  %4115 = vmax.xlane.f32.xlu0 %v8032_v56  ;;  %v8039_v52 = vsel %vm4038_vm5, %v4006_v61, -1e+30 }
 0x41b   : > { %v8043_v63 = vsel %vm4038_vm5, %v4017_v41, -1e+30 }
 0x41c   : > { %v8052_v43 = vsel %vm4038_vm5, %v4009_v15, -1e+30 }
 0x41e   : > { %v5532_v38 = vpop.f32.mrb[156].mxu1  ;;  %4121 = vmax.xlane.f32.xlu1 %v8039_v52  ;;  %4127 = vmax.xlane.f32.xlu0 %v8043_v63 }
 0x41f   : > { %v4030_v50 = vadd.f32 %v5532_v38, %v7913_v21  ;;  %v4021_v37 = vpop.f32.mrb[157].mxu1 }
 0x420   : > { %v4022_v40 = vadd.f32 %v4021_v37, %v7885_v25  ;;  %v5533_v42 = vpop.f32.mrb[158].mxu1 }
 0x421   : > { %v4033_v53 = vadd.f32 %v5533_v42, %v7923_v44  ;;  %v4024_v2 = vpop.f32.mrb[159].mxu1 }
 0x422   : > { %v4025_v59 = vadd.f32 %v4024_v2, %v7896_v31  ;;  %4123 = vmax.xlane.f32.xlu0 %v8052_v43  ;;  %v8058_v27 = vsel %vm4038_vm5, %v4022_v40, -1e+30  ;;  %v8072_v31 = vsel %vm4038_vm5, %v4030_v50, -1e+30 }
 0x423   : > { %4129 = vmax.xlane.f32.xlu1 %v8058_v27  ;;  %v8063_v25 = vsel %vm4038_vm5, %v4033_v53, -1e+30 }
 0x424   : > { %v8067_v21 = vsel %vm4038_vm5, %v4025_v59, -1e+30 }
 0x426   : > { %4131 = vmax.xlane.f32.xlu0 %v8067_v21 }
 0x427   : > { %4133 = vmax.xlane.f32.xlu1 %v8072_v31 }
 0x42a   : > { %4135 = vmax.xlane.f32.xlu0 %v8063_v25 }
 0x477   : > { %v4078_v44 = vpop.xlane.xlu0 %4077 }
 0x478   : > { %v4139_v26 = vsub.f32 %v7881_v10, %v4078_v44 }
 0x47a   : > { %v4173_v11 = vmul.f32 1.442695, %v4139_v26  ;;  %v4076_v13 = vpop.xlane.xlu1 %4075 }
 0x47b   : > { %v4074_v39 = vpop.xlane.xlu0 %4073  ;;  %v4138_v16 = vsub.f32 %v7889_v5, %v4076_v13 }
 0x47c   : > { %5682 = vpow2.f32 %v4173_v11  ;;  %v4137_v45 = vsub.f32 %v7894_v48, %v4074_v39 }
 0x47d   : > { %v4171_v54 = vmul.f32 1.442695, %v4138_v16 }
 0x47e   : > { %v4169_v33 = vmul.f32 1.442695, %v4137_v45 }
 0x47f   : > { %v4086_v4 = vpop.xlane.xlu1 %4085  ;;  %v4080_v1 = vpop.xlane.xlu0 %4079 }
 0x480   : > { %5684 = vpow2.f32 %v4169_v33  ;;  %v4143_v3 = vsub.f32 %v7904_v28, %v4086_v4  ;;  %v4140_v14 = vsub.f32 %v7908_v12, %v4080_v1 }
 0x482   : > { %v4181_v17 = vmul.f32 1.442695, %v4143_v3  ;;  %v4175_v9 = vmul.f32 1.442695, %v4140_v14 }
 0x483   : > { %v4082_v6 = vpop.xlane.xlu1 %4081  ;;  %v4088_v10 = vpop.xlane.xlu0 %4087 }
 0x484   : > { %5686 = vpow2.f32 %v4181_v17  ;;  %v4141_v34 = vsub.f32 %v7917_v58, %v4082_v6  ;;  %v4144_v48 = vsub.f32 %v7921_v23, %v4088_v10 }
 0x485   : > { %5688 = vpow2.f32 %v4175_v9 }
 0x486   : > { %v8083_v49 = vpop.eup %5682  ;;  %v4177_v32 = vmul.f32 1.442695, %v4141_v34  ;;  %v4183_v12 = vmul.f32 1.442695, %v4144_v48 }
 0x487   : > { %v4094_v61 = vpop.xlane.xlu1 %4093  ;;  %v4084_v28 = vpop.xlane.xlu0 %4083  ;;  %4237 = vadd.xlane.f32.xlu1 %v8083_v49 }
 0x488   : > { %5690 = vpow2.f32 %v4177_v32  ;;  %v4147_v5 = vsub.f32 %v7932_v22, %v4094_v61  ;;  %v4142_v7 = vsub.f32 %v7936_v55, %v4084_v28 }
 0x489   : > { %5692 = vpow2.f32 %v4171_v54 }
 0x48a   : > { %v8088_v41 = vpop.eup %5684  ;;  %v4189_v58 = vmul.f32 1.442695, %v4147_v5  ;;  %v4179_v38 = vmul.f32 1.442695, %v4142_v7 }
 0x48b   : > { %v4090_v24 = vpop.xlane.xlu1 %4089  ;;  %v4096_v15 = vpop.xlane.xlu0 %4095  ;;  %4233 = vadd.xlane.f32.xlu1 %v8088_v41 }
 0x48c   : > { %5694 = vpow2.f32 %v4189_v58  ;;  %v4145_v23 = vsub.f32 %v7943_v46, %v4090_v24  ;;  %v4148_v50 = vsub.f32 %v7947_v29, %v4096_v15 }
 0x48d   : > { %5696 = vpow2.f32 %v4183_v12 }
 0x48e   : > { %v8093_v37 = vpop.eup %5686  ;;  %v4185_v22 = vmul.f32 1.442695, %v4145_v23  ;;  %v4191_v46 = vmul.f32 1.442695, %v4148_v50 }
 0x48f   : > { %v8095_v40 = vpop.eup %5688  ;;  %v4102_v55 = vpop.xlane.xlu1 %4101  ;;  %4245 = vadd.xlane.f32.xlu1 %v8093_v37 }
 0x490   : > { %v4092_v42 = vpop.xlane.xlu0 %4091  ;;  %5698 = vpow2.f32 %v4185_v22  ;;  %v4151_v53 = vsub.f32 %v7956_v30, %v4102_v55  ;;  %4239 = vadd.xlane.f32.xlu0 %v8095_v40 }
 0x491   : > { %5700 = vpow2.f32 %v4179_v38  ;;  %v4146_v2 = vsub.f32 %v7960_v0, %v4092_v42 }
 0x492   : > { %v8101_v59 = vpop.eup %5690  ;;  %v4197_v29 = vmul.f32 1.442695, %v4151_v53 }
 0x493   : > { %v8103_v44 = vpop.eup %5692  ;;  %v4098_v26 = vpop.xlane.xlu1 %4097  ;;  %4241 = vadd.xlane.f32.xlu1 %v8101_v59  ;;  %v4187_v30 = vmul.f32 1.442695, %v4146_v2 }
 0x494   : > { %v4104_v11 = vpop.xlane.xlu0 %4103  ;;  %5702 = vpow2.f32 %v4197_v29  ;;  %v4149_v13 = vsub.f32 %v7967_v60, %v4098_v26  ;;  %4235 = vadd.xlane.f32.xlu0 %v8103_v44 }
 0x495   : > { %5704 = vpow2.f32 %v4191_v46  ;;  %v4152_v39 = vsub.f32 %v7971_v19, %v4104_v11 }
 0x496   : > { %v8109_v45 = vpop.eup %5694  ;;  %v4193_v0 = vmul.f32 1.442695, %v4149_v13 }
 0x497   : > { %v8111_v33 = vpop.eup %5696  ;;  %v4110_v4 = vpop.xlane.xlu1 %4109  ;;  %4253 = vadd.xlane.f32.xlu1 %v8109_v45  ;;  %v4199_v60 = vmul.f32 1.442695, %v4152_v39 }
 0x498   : > { %v4100_v1 = vpop.xlane.xlu0 %4099  ;;  %5706 = vpow2.f32 %v4193_v0  ;;  %v4155_v3 = vsub.f32 %v7980_v18, %v4110_v4  ;;  %4247 = vadd.xlane.f32.xlu0 %v8111_v33 }
 0x499   : > { %5708 = vpow2.f32 %v4187_v30  ;;  %v4150_v14 = vsub.f32 %v7984_v51, %v4100_v1 }
 0x49a   : > { %v8117_v16 = vpop.eup %5698  ;;  %v4205_v19 = vmul.f32 1.442695, %v4155_v3 }
 0x49b   : > { %v8119_v17 = vpop.eup %5700  ;;  %v4106_v9 = vpop.xlane.xlu1 %4105  ;;  %4249 = vadd.xlane.f32.xlu1 %v8117_v16  ;;  %v4195_v18 = vmul.f32 1.442695, %v4150_v14 }
 0x49c   : > { %v4112_v6 = vpop.xlane.xlu0 %4111  ;;  %5710 = vpow2.f32 %v4205_v19  ;;  %v4153_v10 = vsub.f32 %v7991_v62, %v4106_v9  ;;  %4243 = vadd.xlane.f32.xlu0 %v8119_v17 }
 0x49d   : > { %5712 = vpow2.f32 %v4199_v60  ;;  %v4156_v34 = vsub.f32 %v7995_v35, %v4112_v6 }
 0x49e   : > { %v8125_v54 = vpop.eup %5702  ;;  %v4201_v51 = vmul.f32 1.442695, %v4153_v10 }
 0x49f   : > { %v8127_v48 = vpop.eup %5704  ;;  %v4118_v32 = vpop.xlane.xlu1 %4117  ;;  %4261 = vadd.xlane.f32.xlu1 %v8125_v54  ;;  %v4207_v62 = vmul.f32 1.442695, %v4156_v34 }
 0x4a0   : > { %v4108_v61 = vpop.xlane.xlu0 %4107  ;;  %5714 = vpow2.f32 %v4201_v51  ;;  %v4159_v28 = vsub.f32 %v8004_v8, %v4118_v32  ;;  %4255 = vadd.xlane.f32.xlu0 %v8127_v48 }
 0x4a1   : > { %5716 = vpow2.f32 %v4195_v18  ;;  %v4154_v5 = vsub.f32 %v8008_v36, %v4108_v61 }
 0x4a2   : > { %v8133_v12 = vpop.eup %5706  ;;  %v4213_v35 = vmul.f32 1.442695, %v4159_v28 }
 0x4a3   : > { %v8135_v7 = vpop.eup %5708  ;;  %v4114_v58 = vpop.xlane.xlu1 %4113  ;;  %4257 = vadd.xlane.f32.xlu1 %v8133_v12  ;;  %v4203_v8 = vmul.f32 1.442695, %v4154_v5 }
 0x4a4   : > { %v4120_v24 = vpop.xlane.xlu0 %4119  ;;  %5718 = vpow2.f32 %v4213_v35  ;;  %v4157_v15 = vsub.f32 %v8015_v57, %v4114_v58  ;;  %4251 = vadd.xlane.f32.xlu0 %v8135_v7 }
 0x4a5   : > { %5720 = vpow2.f32 %v4207_v62  ;;  %v4160_v23 = vsub.f32 %v8019_v20, %v4120_v24 }
 0x4a6   : > { %v8141_v38 = vpop.eup %5710  ;;  %v4209_v36 = vmul.f32 1.442695, %v4157_v15 }
 0x4a7   : > { %v8143_v50 = vpop.eup %5712  ;;  %v4126_v22 = vpop.xlane.xlu1 %4125  ;;  %4269 = vadd.xlane.f32.xlu1 %v8141_v38  ;;  %v4215_v57 = vmul.f32 1.442695, %v4160_v23 }
 0x4a8   : > { %v4116_v55 = vpop.xlane.xlu0 %4115  ;;  %5722 = vpow2.f32 %v4209_v36  ;;  %v4163_v42 = vsub.f32 %v8028_v47, %v4126_v22  ;;  %4263 = vadd.xlane.f32.xlu0 %v8143_v50 }
 0x4a9   : > { %5724 = vpow2.f32 %v4203_v8  ;;  %v4158_v53 = vsub.f32 %v8032_v56, %v4116_v55 }
 0x4aa   : > { %v8149_v46 = vpop.eup %5714  ;;  %v4221_v20 = vmul.f32 1.442695, %v4163_v42 }
 0x4ab   : > { %v8151_v2 = vpop.eup %5716  ;;  %v4122_v29 = vpop.xlane.xlu1 %4121  ;;  %4265 = vadd.xlane.f32.xlu1 %v8149_v46  ;;  %v4211_v13 = vmul.f32 1.442695, %v4158_v53 }
 0x4ac   : > { %v4128_v26 = vpop.xlane.xlu0 %4127  ;;  %5726 = vpow2.f32 %v4221_v20  ;;  %v4161_v11 = vsub.f32 %v8039_v52, %v4122_v29  ;;  %4259 = vadd.xlane.f32.xlu0 %v8151_v2 }
 0x4ad   : > { %v4164_v47 = vsub.f32 %v8043_v63, %v4128_v26  ;;  %5728 = vpow2.f32 %v4215_v57 }
 0x4ae   : > { %v8157_v30 = vpop.eup %5718  ;;  %v4217_v56 = vmul.f32 1.442695, %v4161_v11 }
 0x4af   : > { %v8159_v39 = vpop.eup %5720  ;;  %4277 = vadd.xlane.f32.xlu1 %v8157_v30  ;;  %v4223_v4 = vmul.f32 1.442695, %v4164_v47 }
 0x4b0   : > { %v4124_v0 = vpop.xlane.xlu0 %4123  ;;  %5730 = vpow2.f32 %v4217_v56  ;;  %4271 = vadd.xlane.f32.xlu0 %v8159_v39  ;;  %v4130_v52 = vpop.xlane.xlu1 %4129 }
 0x4b1   : > { %v4162_v1 = vsub.f32 %v8052_v43, %v4124_v0  ;;  %5732 = vpow2.f32 %v4211_v13  ;;  %v4165_v63 = vsub.f32 %v8058_v27, %v4130_v52 }
 0x4b2   : > { %v8165_v3 = vpop.eup %5722  ;;  %5734 = vpow2.f32 %v4223_v4 }
 0x4b3   : > { %v8167_v60 = vpop.eup %5724  ;;  %v4225_v14 = vmul.f32 1.442695, %v4165_v63  ;;  %4273 = vadd.xlane.f32.xlu1 %v8165_v3  ;;  %v4219_v9 = vmul.f32 1.442695, %v4162_v1 }
 0x4b4   : > { %v4132_v19 = vpop.xlane.xlu0 %4131  ;;  %4267 = vadd.xlane.f32.xlu0 %v8167_v60  ;;  %v4134_v6 = vpop.xlane.xlu1 %4133 }
 0x4b5   : > { %5736 = vpow2.f32 %v4225_v14  ;;  %v4166_v43 = vsub.f32 %v8067_v21, %v4132_v19  ;;  %v4167_v10 = vsub.f32 %v8072_v31, %v4134_v6 }
 0x4b6   : > { %v8173_v18 = vpop.eup %5726  ;;  %5738 = vpow2.f32 %v4219_v9 }
 0x4b7   : > { %v8175_v27 = vpop.eup %5728  ;;  %v4229_v34 = vmul.f32 1.442695, %v4167_v10  ;;  %4285 = vadd.xlane.f32.xlu1 %v8173_v18  ;;  %v4227_v32 = vmul.f32 1.442695, %v4166_v43 }
 0x4b8   : > { %v4136_v51 = vpop.xlane.xlu0 %4135  ;;  %4279 = vadd.xlane.f32.xlu0 %v8175_v27 }
 0x4b9   : > { %5740 = vpow2.f32 %v4229_v34  ;;  %v4168_v61 = vsub.f32 %v8063_v25, %v4136_v51 }
 0x4ba   : > { %v8180_v28 = vpop.eup %5730  ;;  %5742 = vpow2.f32 %v4227_v32 }
 0x4bb   : > { %v8182_v21 = vpop.eup %5732  ;;  %4281 = vadd.xlane.f32.xlu1 %v8180_v28  ;;  %v4231_v31 = vmul.f32 1.442695, %v4168_v61 }
 0x4bc   : > { %4275 = vadd.xlane.f32.xlu0 %v8182_v21  ;;  %v8186_v62 = vpop.eup %5734 }
 0x4bd   : > { %5744 = vpow2.f32 %v4231_v31 }
 0x4bf   : > { %v8188_v5 = vpop.eup %5736 }
 0x4c0   : > { %4287 = vadd.xlane.f32.xlu0 %v8186_v62  ;;  %4289 = vadd.xlane.f32.xlu1 %v8188_v5  ;;  %v8192_v25 = vpop.eup %5738 }
 0x4c3   : > { %v8194_v35 = vpop.eup %5740 }
 0x4c4   : > { %4283 = vadd.xlane.f32.xlu0 %v8192_v25  ;;  %4293 = vadd.xlane.f32.xlu1 %v8194_v35  ;;  %v8198_v58 = vpop.eup %5742 }
 0x4c7   : > { %v8201_v24 = vpop.eup %5744 }
 0x4c8   : > { %4291 = vadd.xlane.f32.xlu0 %v8198_v58 }
 0x4cc   : > { %4295 = vadd.xlane.f32.xlu0 %v8201_v24 }
 0x514   : > { %v4238_v15 = vpop.xlane.xlu1 %4237 }
 0x515   : > { %5746 = vrcp.f32 %v4238_v15 }
 0x518   : > { %v4234_v8 = vpop.xlane.xlu1 %4233 }
 0x51c   : > { %v4246_v23 = vpop.xlane.xlu1 %4245 }
 0x51d   : > { %v4240_v36 = vpop.xlane.xlu0 %4239 }
 0x51e   : > { %5748 = vrcp.f32 %v4240_v36 }
 0x51f   : > { %5750 = vrcp.f32 %v4234_v8  ;;  %v5747_v53 = vpop.eup %5746 }
 0x520   : > { %v4242_v22 = vpop.xlane.xlu1 %4241  ;;  %v4331_v26 = vmul.f32 %v5747_v53, %v8083_v49 }
 0x521   : > { %v4236_v55 = vpop.xlane.xlu0 %4235 }
 0x522   : > { %5752 = vrcp.f32 %v4236_v55 }
 0x523   : > { %5754 = vrcp.f32 %v4246_v23 }
 0x524   : > { %v4254_v42 = vpop.xlane.xlu1 %4253 }
 0x525   : > { %v4248_v57 = vpop.xlane.xlu0 %4247 }
 0x526   : > { %5756 = vrcp.f32 %v4248_v57 }
 0x527   : > { %5758 = vrcp.f32 %v4242_v22 }
 0x528   : > { %v5749_v20 = vpop.eup %5748  ;;  %v4250_v29 = vpop.xlane.xlu1 %4249 }
 0x529   : > { %v4332_v11 = vmul.f32 %v5749_v20, %v8095_v40  ;;  %v4244_v47 = vpop.xlane.xlu0 %4243  ;;  %v5751_v13 = vpop.eup %5750 }
 0x52a   : > { %5760 = vrcp.f32 %v4244_v47  ;;  %v4329_v1 = vmul.f32 %v5751_v13, %v8088_v41 }
 0x52b   : > { %v4858_v56 = vpack.c.bf16 %v4332_v11, %v4331_v26  ;;  %5762 = vrcp.f32 %v4254_v42 }
 0x52c   : > { %v5753_v0 = vpop.eup %5752  ;;  %v4262_v4 = vpop.xlane.xlu1 %4261 }
 0x52d   : > { %4930 = vst [vmem:[%s8210_s14 + $0x8] sm:$0xff] %v4858_v56   ;;  %v4330_v52 = vmul.f32 %v5753_v0, %v8103_v44  ;;  %v4256_v63 = vpop.xlane.xlu0 %4255  ;;  %v5755_v49 = vpop.eup %5754 }
 0x52e   : > { %5764 = vrcp.f32 %v4256_v63  ;;  %v4335_v9 = vmul.f32 %v5755_v49, %v8093_v37 }
 0x52f   : > { %v4853_v40 = vpack.c.bf16 %v4330_v52, %v4329_v1  ;;  %5766 = vrcp.f32 %v4250_v29 }
 0x530   : > { %v5757_v14 = vpop.eup %5756  ;;  %v4258_v19 = vpop.xlane.xlu1 %4257 }
 0x531   : > { %4854 = vst [vmem:[%s8210_s14] sm:$0xff] %v4853_v40   ;;  %v4336_v41 = vmul.f32 %v5757_v14, %v8111_v33  ;;  %v4252_v6 = vpop.xlane.xlu0 %4251  ;;  %v5759_v43 = vpop.eup %5758 }
 0x532   : > { %5768 = vrcp.f32 %v4252_v6  ;;  %v4333_v51 = vmul.f32 %v5759_v43, %v8101_v59 }
 0x533   : > { %v4868_v10 = vpack.c.bf16 %v4336_v41, %v4335_v9  ;;  %5770 = vrcp.f32 %v4262_v4 }
 0x534   : > { %v5761_v34 = vpop.eup %5760  ;;  %v4270_v44 = vpop.xlane.xlu1 %4269 }
 0x535   : > { %4932 = vst [vmem:[%s8210_s14 + $0x18] sm:$0xff] %v4868_v10   ;;  %v4334_v32 = vmul.f32 %v5761_v34, %v8119_v17  ;;  %v4264_v61 = vpop.xlane.xlu0 %4263  ;;  %v5763_v31 = vpop.eup %5762 }
 0x536   : > { %5772 = vrcp.f32 %v4264_v61  ;;  %v4339_v8 = vmul.f32 %v5763_v31, %v8109_v45 }
 0x537   : > { %v4863_v37 = vpack.c.bf16 %v4334_v32, %v4333_v51  ;;  %5774 = vrcp.f32 %v4258_v19 }
 0x538   : > { %v5765_v15 = vpop.eup %5764  ;;  %v4266_v33 = vpop.xlane.xlu1 %4265 }
 0x539   : > { %4931 = vst [vmem:[%s8210_s14 + $0x10] sm:$0xff] %v4863_v37   ;;  %v4340_v23 = vmul.f32 %v5765_v15, %v8127_v48  ;;  %v4260_v36 = vpop.xlane.xlu0 %4259  ;;  %v5767_v22 = vpop.eup %5766 }
 0x53a   : > { %5776 = vrcp.f32 %v4260_v36  ;;  %v4337_v42 = vmul.f32 %v5767_v22, %v8117_v16 }
 0x53b   : > { %v4878_v59 = vpack.c.bf16 %v4340_v23, %v4339_v8  ;;  %5778 = vrcp.f32 %v4270_v44 }
 0x53c   : > { %v5769_v55 = vpop.eup %5768  ;;  %v4278_v17 = vpop.xlane.xlu1 %4277 }
 0x53d   : > { %4934 = vst [vmem:[%s8210_s14 + $0x28] sm:$0xff] %v4878_v59   ;;  %v4338_v57 = vmul.f32 %v5769_v55, %v8135_v7  ;;  %v4272_v53 = vpop.xlane.xlu0 %4271  ;;  %v5771_v20 = vpop.eup %5770 }
 0x53e   : > { %5780 = vrcp.f32 %v4272_v53  ;;  %v4343_v26 = vmul.f32 %v5771_v20, %v8125_v54 }
 0x53f   : > { %v4873_v45 = vpack.c.bf16 %v4338_v57, %v4337_v42  ;;  %5782 = vrcp.f32 %v4266_v33 }
 0x540   : > { %v5773_v29 = vpop.eup %5772  ;;  %v4274_v48 = vpop.xlane.xlu1 %4273 }
 0x541   : > { %4933 = vst [vmem:[%s8210_s14 + $0x20] sm:$0xff] %v4873_v45   ;;  %v4344_v11 = vmul.f32 %v5773_v29, %v8143_v50  ;;  %v4268_v47 = vpop.xlane.xlu0 %4267  ;;  %v5775_v13 = vpop.eup %5774 }
 0x542   : > { %5784 = vrcp.f32 %v4268_v47  ;;  %v4341_v0 = vmul.f32 %v5775_v13, %v8133_v12 }
 0x543   : > { %v4888_v16 = vpack.c.bf16 %v4344_v11, %v4343_v26  ;;  %5786 = vrcp.f32 %v4278_v17 }
 0x544   : > { %v5777_v56 = vpop.eup %5776  ;;  %v4286_v7 = vpop.xlane.xlu1 %4285 }
 0x545   : > { %4936 = vst [vmem:[%s8210_s14 + $0x38] sm:$0xff] %v4888_v16   ;;  %v4342_v4 = vmul.f32 %v5777_v56, %v8151_v2  ;;  %v4280_v1 = vpop.xlane.xlu0 %4279  ;;  %v5779_v52 = vpop.eup %5778 }
 0x546   : > { %5788 = vrcp.f32 %v4280_v1  ;;  %v4347_v50 = vmul.f32 %v5779_v52, %v8141_v38 }
 0x547   : > { %v4883_v54 = vpack.c.bf16 %v4342_v4, %v4341_v0  ;;  %5790 = vrcp.f32 %v4274_v48 }
 0x548   : > { %v5781_v63 = vpop.eup %5780  ;;  %v4282_v14 = vpop.xlane.xlu1 %4281 }
 0x549   : > { %4935 = vst [vmem:[%s8210_s14 + $0x30] sm:$0xff] %v4883_v54   ;;  %v4348_v49 = vmul.f32 %v5781_v63, %v8159_v39  ;;  %v4276_v40 = vpop.xlane.xlu0 %4275  ;;  %v5783_v19 = vpop.eup %5782 }
 0x54a   : > { %5792 = vrcp.f32 %v4276_v40  ;;  %v4345_v2 = vmul.f32 %v5783_v19, %v8149_v46 }
 0x54b   : > { %v4898_v12 = vpack.c.bf16 %v4348_v49, %v4347_v50  ;;  %5794 = vrcp.f32 %v4286_v7 }
 0x54c   : > { %v5785_v9 = vpop.eup %5784 }
 0x54d   : > { %4938 = vst [vmem:[%s8210_s14 + $0x48] sm:$0xff] %v4898_v12   ;;  %v4346_v41 = vmul.f32 %v5785_v9, %v8167_v60  ;;  %v4288_v6 = vpop.xlane.xlu0 %4287  ;;  %v5787_v43 = vpop.eup %5786 }
 0x54e   : > { %5796 = vrcp.f32 %v4288_v6  ;;  %v4290_v10 = vpop.xlane.xlu1 %4289  ;;  %v4351_v34 = vmul.f32 %v5787_v43, %v8157_v30 }
 0x54f   : > { %v4893_v38 = vpack.c.bf16 %v4346_v41, %v4345_v2  ;;  %5798 = vrcp.f32 %v4282_v14 }
 0x550   : > { %v5789_v39 = vpop.eup %5788 }
 0x551   : > { %4937 = vst [vmem:[%s8210_s14 + $0x40] sm:$0xff] %v4893_v38   ;;  %v4352_v44 = vmul.f32 %v5789_v39, %v8175_v27  ;;  %v4284_v51 = vpop.xlane.xlu0 %4283  ;;  %v5791_v32 = vpop.eup %5790 }
 0x552   : > { %5800 = vrcp.f32 %v4284_v51  ;;  %v4349_v60 = vmul.f32 %v5791_v32, %v8165_v3  ;;  %v4294_v37 = vpop.xlane.xlu1 %4293 }
 0x553   : > { %v4908_v46 = vpack.c.bf16 %v4352_v44, %v4351_v34  ;;  %5802 = vrcp.f32 %v4290_v10 }
 0x554   : > { %v5793_v61 = vpop.eup %5792 }
 0x555   : > { %4940 = vst [vmem:[%s8210_s14 + $0x58] sm:$0xff] %v4908_v46   ;;  %v4350_v31 = vmul.f32 %v5793_v61, %v8182_v21  ;;  %v4292_v15 = vpop.xlane.xlu0 %4291  ;;  %v5795_v33 = vpop.eup %5794 }
 0x556   : > { %5804 = vrcp.f32 %v4292_v15  ;;  %v4355_v27 = vmul.f32 %v5795_v33, %v8173_v18 }
 0x557   : > { %v4903_v30 = vpack.c.bf16 %v4350_v31, %v4349_v60  ;;  %5806 = vrcp.f32 %v4294_v37 }
 0x558   : > { %v5797_v8 = vpop.eup %5796 }
 0x559   : > { %4939 = vst [vmem:[%s8210_s14 + $0x50] sm:$0xff] %v4903_v30   ;;  %v4356_v23 = vmul.f32 %v5797_v8, %v8186_v62  ;;  %v4296_v36 = vpop.xlane.xlu0 %4295  ;;  %v5799_v3 = vpop.eup %5798 }
 0x55a   : > { %5808 = vrcp.f32 %v4296_v36  ;;  %v4353_v59 = vmul.f32 %v5799_v3, %v8180_v28 }
 0x55b   : > { %v4918_v21 = vpack.c.bf16 %v4356_v23, %v4355_v27 }
 0x55c   : > { %v5801_v22 = vpop.eup %5800 }
 0x55d   : > { %4942 = vst [vmem:[%s8210_s14 + $0x68] sm:$0xff] %v4918_v21   ;;  %v4354_v55 = vmul.f32 %v5801_v22, %v8192_v25  ;;  %v5803_v17 = vpop.eup %5802 }
 0x55e   : > { %v4357_v62 = vmul.f32 %v5803_v17, %v8188_v5 }
 0x55f   : > { %v4913_v42 = vpack.c.bf16 %v4354_v55, %v4353_v59 }
 0x560   : > { %v5805_v18 = vpop.eup %5804 }
 0x561   : > { %4941 = vst [vmem:[%s8210_s14 + $0x60] sm:$0xff] %v4913_v42   ;;  %v4358_v57 = vmul.f32 %v5805_v18, %v8198_v58  ;;  %v5807_v53 = vpop.eup %5806 }
 0x562   : > { %v4359_v28 = vmul.f32 %v5807_v53, %v8194_v35 }
 0x563   : > { %v4923_v20 = vpack.c.bf16 %v4358_v57, %v4357_v62 }
 0x564   : > { %v5809_v45 = vpop.eup %5808 }
 0x565   : > { %4943 = vst [vmem:[%s8210_s14 + $0x70] sm:$0xff] %v4923_v20   ;;  %v4360_v25 = vmul.f32 %v5809_v45, %v8201_v24 }
 0x567   : > { %v4928_v5 = vpack.c.bf16 %v4360_v25, %v4359_v28 }
 0x569   : > { %4944 = vst [vmem:[%s8210_s14 + $0x78] sm:$0xff] %v4928_v5  }
 0x56a   : > { %5824 = shalt.err (!%p5821_p3)
}
 0x56b   : > { %s5825_s25 = scalar_lea.hbm %s8261_s10, 2048  ;;  %s5829_s11 = scalar_lea.hbm %s8316_s5, 4096 }
 0x56c   : > { %p5826_p4 = scmp.ne.s32.totalorder %s8261_s10, %s5825_s25  ;;  %p5830_p9 = scmp.lt.u32.totalorder %s8261_s10, %s8316_s5 }
 0x56d   : > { %p5831_p10 = scmp.lt.u32.totalorder %s5829_s11, %s5825_s25  ;;  %p5833_p12 = scmp.lt.u32.totalorder %s5825_s25, %s8261_s10 }
 0x56e   : > { %p5827_p7 = pnand %p5826_p4, %p5954_p5 }
 0x56f   : > { %p5832_p11 = por %p5831_p10, %p5830_p9 }
 0x570   : > { %p5828_p8 = pneg %p5827_p7 }
 0x571   : > { %p5834_p13 = por %p5833_p12, %p5832_p11 }
 0x573   : > { %p5835_p0 = pnand %p5834_p13, %p5828_p8 }
 0x575   : > { %5838 = shalt.err (!%p5835_p0)
}
 0x576   : > { %s5885_s13 = smov 4  }
 0x577   : > { %5536 = dma.vmem_to_hbm [thread:$0]  (%p5954_p5), %s8263_s7, 2048, %s8261_s10, %s8268_s22, %s5882_s12, %s5882_s12, %s5885_s13  }
 0x578 PF: > { %p5542_p1 = scmp.ge.s32.totalorder %s5873_s21, 2  ;;  %s4550_s8 = sand.u32 1, %s5861_s18  }
 0x579   : > { %s4551_s16 = scalar_lea.sflag [#allocation3], %s4550_s8 }
 0x57a   : > { %p5539_p2 = pnand %p5542_p1, %p5958_p6 }
 0x57c   : > { %5856 = dma.done.wait (!%p5539_p2), %s4551_s16, 2048  }
 0x57d   : > { %5858 = vsyncadd (!%p5539_p2), %s4551_s16, 4294965248  ;;  %p15_p3 = scmp.ge.s32.totalorder %s5941_s24, 4   ;;  %s8347_s18 = smov %s5865_s19 }
 0x57e   : > { %s8348_s19 = smov %s5869_s20  ;;  %s8349_s20 = smov %s5952_s27 }
 0x57f   : > { %s8350_s21 = smov %s5941_s24  ;;  %17 = sbr.rel (!%p15_p3) target bundleno = 3 (0x3), region = 75 }
 0x586   :  { %4556 = vsyncpa [#allocation3], 1 }
 0x587   :  { %4558 = vsyncpa [#allocation3 + $0x1], 1 }

</bundles_post_ra>
